<compile_context>
chip_gen: v5e
topology: v5e:2x2
jax: 0.10.0
libtpu: 0.0.40
codegen_flags: <defaults>
</compile_context>

<pallas_src>
import functools

import jax
import jax.numpy as jnp
from jax.experimental import pallas as pl
from jax.experimental.pallas import tpu as pltpu


# ----------------------------------------------------------------------------
# Fused kernel: gates + gated-GRU episode + memory update, all iterations.
# ----------------------------------------------------------------------------
def _fused_memory_kernel(
    facts2d_ref,   # (T*B, E)  facts, t-major (row t*B + b = facts[b, t])
    qrep_ref,      # (T*B, E)  question broadcast over T (precomputed in wrapper)
    sel_ref,       # (T*B, B)  0/1 selection matrix: row t*B+b picks batch b
    q_ref,         # (B, E)
    m0_ref,        # (B, E)
    h0_ref,        # (B, E)
    w1a_ref,       # (2E, H)   W1 rows for [c*q, |c-q|]   (iteration-invariant)
    w1b_ref,       # (2E, H)   W1 rows for [c*m, |c-m|]   (per-iteration)
    b1_ref,        # (1, H)
    w2r_ref,       # (1, H)    transposed w2
    b2_ref,        # (1, 1)
    wi_ref,        # (E, 3E)
    bi_ref,        # (1, 3E)
    wh_ref,        # (E, 3E)
    bh_ref,        # (1, 3E)
    wtm_ref,       # (E, E)    Wt rows acting on m
    wth_ref,       # (E, E)    Wt rows acting on e (episode)
    wtq_ref,       # (E, E)    Wt rows acting on q (iteration-invariant)
    bt_ref,        # (1, E)
    out_ref,       # (B, E)
    *,
    num_iterations,
):
    facts2d = facts2d_ref[...]                  # (T*B, E)
    qrep = qrep_ref[...]                        # (T*B, E)
    sel = sel_ref[...]                          # (T*B, B)
    q = q_ref[...]                              # (B, E)
    B, E = q.shape
    T = facts2d.shape[0] // B

    w1a = w1a_ref[...]
    w1b = w1b_ref[...]
    b1 = b1_ref[...]
    w2r = w2r_ref[...]                          # (1, H)
    b2 = b2_ref[...]                            # (1, 1)
    wi = wi_ref[...]
    bi = bi_ref[...]
    wh = wh_ref[...]
    bh = bh_ref[...]
    wtm = wtm_ref[...]
    wth = wth_ref[...]
    wtq = wtq_ref[...]
    bt = bt_ref[...]

    # ---- iteration-invariant precompute (hoisted once) ----
    f0 = facts2d * qrep                         # c * q
    f2 = jnp.abs(facts2d - qrep)                # |c - q|
    zq = jnp.concatenate([f0, f2], axis=-1)     # (T*B, 2E)
    gate_q = jnp.dot(zq, w1a, preferred_element_type=jnp.float32) + b1  # (T*B, H)
    # Input-side GRU matmul hoisted out of the recurrence: one MXU dot.
    gi_all = jnp.dot(facts2d, wi, preferred_element_type=jnp.float32) + bi  # (T*B, 3E)
    # Question part of the memory-update matmul hoisted out of the loop.
    mem_q = jnp.dot(q, wtq, preferred_element_type=jnp.float32) + bt        # (B, E)
    bh_b = jnp.broadcast_to(bh, (B, 3 * E))     # hoisted broadcast
    h0 = h0_ref[...]                            # (B, E)

    m = m0_ref[...]                             # (B, E)
    for _ in range(num_iterations):             # static unroll
        # ---- attention gates: half of the (4E,H) matmul is hoisted; only the
        #      memory-dependent (T*B, 2E) @ (2E, H) dot runs per iteration ----
        m_rep = jnp.dot(sel, m, preferred_element_type=jnp.float32)   # (T*B, E)
        f1 = facts2d * m_rep                    # c * m
        f3 = jnp.abs(facts2d - m_rep)           # |c - m|
        zm = jnp.concatenate([f1, f3], axis=-1)                        # (T*B, 2E)
        hg = jnp.tanh(gate_q + jnp.dot(zm, w1b,
                                       preferred_element_type=jnp.float32))
        # second "matmul" (H -> 1) as a VPU multiply + lane reduce (no MXU matvec)
        s = jnp.sum(hg * w2r, axis=-1, keepdims=True) + b2             # (T*B, 1)
        g = jax.nn.sigmoid(s)                                          # (T*B, 1)

        # ---- soft-gated GRU episode over the facts (statically unrolled) ----
        h = h0
        for t in range(T):
            gi = gi_all[t * B:(t + 1) * B, :]   # (B, 3E) static slice
            gt = g[t * B:(t + 1) * B, :]        # (B, 1)  static slice
            gh = jnp.dot(h, wh, preferred_element_type=jnp.float32) + bh_b
            r = jax.nn.sigmoid(gi[:, 0:E] + gh[:, 0:E])
            zt = jax.nn.sigmoid(gi[:, E:2 * E] + gh[:, E:2 * E])
            n = jnp.tanh(gi[:, 2 * E:3 * E] + r * gh[:, 2 * E:3 * E])
            h_gru = (1.0 - zt) * n + zt * h
            h = gt * h_gru + (1.0 - gt) * h

        # ---- memory update: q part hoisted; two (B,E)@(E,E) dots remain ----
        m = jnp.maximum(
            jnp.dot(m, wtm, preferred_element_type=jnp.float32)
            + jnp.dot(h, wth, preferred_element_type=jnp.float32)
            + mem_q,
            0.0,
        )

    out_ref[...] = m


# ----------------------------------------------------------------------------
# Parameter init (matches the PyTorch module's weight shapes)
# ----------------------------------------------------------------------------
def init_params(key, embedding_size, middle_number):
    E, H = embedding_size, middle_number
    ks = jax.random.split(key, 8)
    scale = 0.1
    return dict(
        w1=scale * jax.random.normal(ks[0], (4 * E, H), jnp.float32),
        b1=jnp.zeros((1, H), jnp.float32),
        w2=scale * jax.random.normal(ks[1], (H, 1), jnp.float32),
        b2=jnp.zeros((1, 1), jnp.float32),
        wi=scale * jax.random.normal(ks[2], (E, 3 * E), jnp.float32),
        wh=scale * jax.random.normal(ks[3], (E, 3 * E), jnp.float32),
        bi=scale * jax.random.normal(ks[4], (1, 3 * E), jnp.float32),
        bh=scale * jax.random.normal(ks[5], (1, 3 * E), jnp.float32),
        wt=scale * jax.random.normal(ks[6], (3 * E, E), jnp.float32),
        bt=scale * jax.random.normal(ks[7], (1, E), jnp.float32),
    )


# ----------------------------------------------------------------------------
# Wrapper: single pallas_call, whole problem VMEM-resident (grid=()).
# ----------------------------------------------------------------------------
@functools.partial(jax.jit, static_argnames=("num_iterations",))
def memory_module_forward(params, m0, facts, question, num_iterations, h0=0.0):
    B, T, E = facts.shape
    # Layout prep (cheap XLA ops, once per call): t-major flatten + broadcasts
    # + weight splits so the kernel can hoist all question-dependent matmuls.
    facts2d = jnp.swapaxes(facts, 0, 1).reshape(T * B, E)      # row t*B+b = facts[b,t]
    q_rep = jnp.tile(question, (T, 1))                          # (T*B, E)
    sel = jnp.tile(jnp.eye(B, dtype=jnp.float32), (T, 1))       # (T*B, B)
    h0_vec = jnp.full((B, E), h0, dtype=jnp.float32)

    w1 = params["w1"]                                           # (4E, H)
    w1a = jnp.concatenate([w1[0:E], w1[2 * E:3 * E]], axis=0)   # rows for c*q, |c-q|
    w1b = jnp.concatenate([w1[E:2 * E], w1[3 * E:4 * E]], axis=0)  # rows for c*m, |c-m|
    w2r = params["w2"].T                                        # (1, H)
    wt = params["wt"]                                           # (3E, E)
    wtm, wth, wtq = wt[0:E], wt[E:2 * E], wt[2 * E:3 * E]

    kernel = functools.partial(_fused_memory_kernel, num_iterations=num_iterations)
    vmem = pl.BlockSpec(memory_space=pltpu.MemorySpace.VMEM)
    return pl.pallas_call(
        kernel,
        out_shape=jax.ShapeDtypeStruct((B, E), jnp.float32),
        in_specs=[vmem] * 19,
        out_specs=vmem,
    )(
        facts2d, q_rep, sel, question, m0, h0_vec,
        w1a, w1b, params["b1"], w2r, params["b2"],
        params["wi"], params["bi"], params["wh"], params["bh"],
        wtm, wth, wtq, params["bt"],
    )


# ----------------------------------------------------------------------------
# Pure-JAX reference (same math, unsplit weights) for correctness check
# ----------------------------------------------------------------------------
def _reference(params, m0, facts, question, num_iterations, h0=0.0):
    B, T, E = facts.shape
    m = m0
    for _ in range(num_iterations):
        q = question[:, None, :]
        mm = m[:, None, :]
        z = jnp.concatenate(
            [facts * q, facts * mm, jnp.abs(facts - q), jnp.abs(facts - mm)], axis=-1
        )
        h = jnp.tanh(jnp.einsum("btf,fh->bth", z, params["w1"]) + params["b1"])
        g = jax.nn.sigmoid(
            (jnp.einsum("bth,hk->btk", h, params["w2"]) + params["b2"])[..., 0]
        )
        hstate = jnp.full((B, E), h0, jnp.float32)
        for t in range(T):
            x = facts[:, t, :]
            gt = g[:, t:t + 1]
            gi = x @ params["wi"] + params["bi"]
            gh = hstate @ params["wh"] + params["bh"]
            r = jax.nn.sigmoid(gi[:, :E] + gh[:, :E])
            zt = jax.nn.sigmoid(gi[:, E:2 * E] + gh[:, E:2 * E])
            n = jnp.tanh(gi[:, 2 * E:] + r * gh[:, 2 * E:])
            h_gru = (1.0 - zt) * n + zt * hstate
            hstate = gt * h_gru + (1.0 - gt) * hstate
        cat = jnp.concatenate([m, hstate, question], axis=-1)
        m = jnp.maximum(cat @ params["wt"] + params["bt"], 0.0)
    return m


if __name__ == "__main__":
    B, T, E, H = 2, 8, 32, 16   # batch, num facts, embedding_size, middle_number
    num_iterations = 3

    key = jax.random.PRNGKey(0)
    k_m, k_f, k_q, k_p = jax.random.split(key, 4)
    m0 = jax.random.normal(k_m, (B, E), jnp.float32)
    facts = jax.random.normal(k_f, (B, T, E), jnp.float32)
    question = jax.random.normal(k_q, (B, E), jnp.float32)
    params = init_params(k_p, E, H)

    out = memory_module_forward(params, m0, facts, question, num_iterations)
    out = jax.block_until_ready(out)

    ref = _reference(params, m0, facts, question, num_iterations)
    assert out.shape == (B, E)
    assert jnp.allclose(out, ref, atol=1e-4, rtol=1e-4), "mismatch vs reference"

    print("KERNEL_OK")
</pallas_src>

<mosaic_0001>
module attributes {stable_mosaic.version = 11 : i64} {
  func.func @_fused_memory_kernel(%arg0: memref<16x32xf32, #tpu.memory_space<vmem>>, %arg1: memref<16x32xf32, #tpu.memory_space<vmem>>, %arg2: memref<16x2xf32, #tpu.memory_space<vmem>>, %arg3: memref<2x32xf32, #tpu.memory_space<vmem>>, %arg4: memref<2x32xf32, #tpu.memory_space<vmem>>, %arg5: memref<2x32xf32, #tpu.memory_space<vmem>>, %arg6: memref<64x16xf32, #tpu.memory_space<vmem>>, %arg7: memref<64x16xf32, #tpu.memory_space<vmem>>, %arg8: memref<1x16xf32, #tpu.memory_space<vmem>>, %arg9: memref<1x16xf32, #tpu.memory_space<vmem>>, %arg10: memref<1x1xf32, #tpu.memory_space<vmem>>, %arg11: memref<32x96xf32, #tpu.memory_space<vmem>>, %arg12: memref<1x96xf32, #tpu.memory_space<vmem>>, %arg13: memref<32x96xf32, #tpu.memory_space<vmem>>, %arg14: memref<1x96xf32, #tpu.memory_space<vmem>>, %arg15: memref<32x32xf32, #tpu.memory_space<vmem>>, %arg16: memref<32x32xf32, #tpu.memory_space<vmem>>, %arg17: memref<32x32xf32, #tpu.memory_space<vmem>>, %arg18: memref<1x32xf32, #tpu.memory_space<vmem>>, %arg19: memref<2x32xf32, #tpu.memory_space<vmem>>) attributes {dimension_semantics = [], scalar_prefetch = 0 : i64, scratch_operands = 0 : i64, tpu.core_type = #tpu.core_type<tc>} {
    %c0 = arith.constant 0 : index
    %c0_0 = arith.constant 0 : index
    %0 = vector.load %arg0[%c0, %c0_0] : memref<16x32xf32, #tpu.memory_space<vmem>>, vector<16x32xf32>
    %c0_1 = arith.constant 0 : index
    %c0_2 = arith.constant 0 : index
    %1 = vector.load %arg1[%c0_1, %c0_2] : memref<16x32xf32, #tpu.memory_space<vmem>>, vector<16x32xf32>
    %c0_3 = arith.constant 0 : index
    %c0_4 = arith.constant 0 : index
    %2 = vector.load %arg2[%c0_3, %c0_4] : memref<16x2xf32, #tpu.memory_space<vmem>>, vector<16x2xf32>
    %c0_5 = arith.constant 0 : index
    %c0_6 = arith.constant 0 : index
    %3 = vector.load %arg3[%c0_5, %c0_6] : memref<2x32xf32, #tpu.memory_space<vmem>>, vector<2x32xf32>
    %c0_7 = arith.constant 0 : index
    %c0_8 = arith.constant 0 : index
    %4 = vector.load %arg6[%c0_7, %c0_8] : memref<64x16xf32, #tpu.memory_space<vmem>>, vector<64x16xf32>
    %c0_9 = arith.constant 0 : index
    %c0_10 = arith.constant 0 : index
    %5 = vector.load %arg7[%c0_9, %c0_10] : memref<64x16xf32, #tpu.memory_space<vmem>>, vector<64x16xf32>
    %c0_11 = arith.constant 0 : index
    %c0_12 = arith.constant 0 : index
    %6 = vector.load %arg8[%c0_11, %c0_12] : memref<1x16xf32, #tpu.memory_space<vmem>>, vector<1x16xf32>
    %c0_13 = arith.constant 0 : index
    %c0_14 = arith.constant 0 : index
    %7 = vector.load %arg9[%c0_13, %c0_14] : memref<1x16xf32, #tpu.memory_space<vmem>>, vector<1x16xf32>
    %c0_15 = arith.constant 0 : index
    %c0_16 = arith.constant 0 : index
    %8 = vector.load %arg10[%c0_15, %c0_16] : memref<1x1xf32, #tpu.memory_space<vmem>>, vector<1x1xf32>
    %c0_17 = arith.constant 0 : index
    %c0_18 = arith.constant 0 : index
    %9 = vector.load %arg11[%c0_17, %c0_18] : memref<32x96xf32, #tpu.memory_space<vmem>>, vector<32x96xf32>
    %c0_19 = arith.constant 0 : index
    %c0_20 = arith.constant 0 : index
    %10 = vector.load %arg12[%c0_19, %c0_20] : memref<1x96xf32, #tpu.memory_space<vmem>>, vector<1x96xf32>
    %c0_21 = arith.constant 0 : index
    %c0_22 = arith.constant 0 : index
    %11 = vector.load %arg13[%c0_21, %c0_22] : memref<32x96xf32, #tpu.memory_space<vmem>>, vector<32x96xf32>
    %c0_23 = arith.constant 0 : index
    %c0_24 = arith.constant 0 : index
    %12 = vector.load %arg14[%c0_23, %c0_24] : memref<1x96xf32, #tpu.memory_space<vmem>>, vector<1x96xf32>
    %c0_25 = arith.constant 0 : index
    %c0_26 = arith.constant 0 : index
    %13 = vector.load %arg15[%c0_25, %c0_26] : memref<32x32xf32, #tpu.memory_space<vmem>>, vector<32x32xf32>
    %c0_27 = arith.constant 0 : index
    %c0_28 = arith.constant 0 : index
    %14 = vector.load %arg16[%c0_27, %c0_28] : memref<32x32xf32, #tpu.memory_space<vmem>>, vector<32x32xf32>
    %c0_29 = arith.constant 0 : index
    %c0_30 = arith.constant 0 : index
    %15 = vector.load %arg17[%c0_29, %c0_30] : memref<32x32xf32, #tpu.memory_space<vmem>>, vector<32x32xf32>
    %c0_31 = arith.constant 0 : index
    %c0_32 = arith.constant 0 : index
    %16 = vector.load %arg18[%c0_31, %c0_32] : memref<1x32xf32, #tpu.memory_space<vmem>>, vector<1x32xf32>
    %17 = arith.mulf %0, %1 : vector<16x32xf32>
    %18 = arith.subf %0, %1 : vector<16x32xf32>
    %19 = math.absf %18 : vector<16x32xf32>
    %20 = tpu.concatenate %17, %19 in 1 : vector<16x32xf32>, vector<16x32xf32> -> vector<16x64xf32>
    %cst = arith.constant dense<0.000000e+00> : vector<16x16xf32>
    %21 = tpu.matmul %20, %4, %cst {dimension_numbers = #tpu.dot_dimension_numbers<[1], [0], [0], [1], [0, 0, 1, 1], [], []>} : vector<16x64xf32>, vector<64x16xf32>, vector<16x16xf32> -> vector<16x16xf32>
    %22 = vector.broadcast %6 : vector<1x16xf32> to vector<16x16xf32>
    %23 = arith.addf %21, %22 : vector<16x16xf32>
    %cst_33 = arith.constant dense<0.000000e+00> : vector<16x96xf32>
    %24 = tpu.matmul %0, %9, %cst_33 {dimension_numbers = #tpu.dot_dimension_numbers<[1], [0], [0], [1], [0, 0, 1, 1], [], []>} : vector<16x32xf32>, vector<32x96xf32>, vector<16x96xf32> -> vector<16x96xf32>
    %25 = vector.broadcast %10 : vector<1x96xf32> to vector<16x96xf32>
    %26 = arith.addf %24, %25 : vector<16x96xf32>
    %cst_34 = arith.constant dense<0.000000e+00> : vector<2x32xf32>
    %27 = tpu.matmul %3, %15, %cst_34 {dimension_numbers = #tpu.dot_dimension_numbers<[1], [0], [0], [1], [0, 0, 1, 1], [], []>} : vector<2x32xf32>, vector<32x32xf32>, vector<2x32xf32> -> vector<2x32xf32>
    %28 = vector.broadcast %16 : vector<1x32xf32> to vector<2x32xf32>
    %29 = arith.addf %27, %28 : vector<2x32xf32>
    %30 = vector.shape_cast %12 : vector<1x96xf32> to vector<1x96xf32>
    %31 = vector.broadcast %30 : vector<1x96xf32> to vector<2x96xf32>
    %c0_35 = arith.constant 0 : index
    %c0_36 = arith.constant 0 : index
    %32 = vector.load %arg5[%c0_35, %c0_36] : memref<2x32xf32, #tpu.memory_space<vmem>>, vector<2x32xf32>
    %c0_37 = arith.constant 0 : index
    %c0_38 = arith.constant 0 : index
    %33 = vector.load %arg4[%c0_37, %c0_38] : memref<2x32xf32, #tpu.memory_space<vmem>>, vector<2x32xf32>
    %cst_39 = arith.constant dense<0.000000e+00> : vector<16x32xf32>
    %34 = tpu.matmul %2, %33, %cst_39 {dimension_numbers = #tpu.dot_dimension_numbers<[1], [0], [0], [1], [0, 0, 1, 1], [], []>} : vector<16x2xf32>, vector<2x32xf32>, vector<16x32xf32> -> vector<16x32xf32>
    %35 = arith.mulf %0, %34 : vector<16x32xf32>
    %36 = arith.subf %0, %34 : vector<16x32xf32>
    %37 = math.absf %36 : vector<16x32xf32>
    %38 = tpu.concatenate %35, %37 in 1 : vector<16x32xf32>, vector<16x32xf32> -> vector<16x64xf32>
    %cst_40 = arith.constant dense<0.000000e+00> : vector<16x16xf32>
    %39 = tpu.matmul %38, %5, %cst_40 {dimension_numbers = #tpu.dot_dimension_numbers<[1], [0], [0], [1], [0, 0, 1, 1], [], []>} : vector<16x64xf32>, vector<64x16xf32>, vector<16x16xf32> -> vector<16x16xf32>
    %40 = arith.addf %23, %39 : vector<16x16xf32>
    %41 = math.tanh %40 : vector<16x16xf32>
    %42 = vector.broadcast %7 : vector<1x16xf32> to vector<16x16xf32>
    %43 = arith.mulf %41, %42 : vector<16x16xf32>
    %cst_41 = arith.constant dense<0.000000e+00> : vector<16xf32>
    %44 = vector.multi_reduction <add>, %43, %cst_41 [1] : vector<16x16xf32> to vector<16xf32>
    %45 = vector.shape_cast %44 : vector<16xf32> to vector<16x1xf32>
    %46 = vector.broadcast %8 : vector<1x1xf32> to vector<16x1xf32>
    %47 = arith.addf %45, %46 : vector<16x1xf32>
    %48 = arith.negf %47 : vector<16x1xf32>
    %49 = math.exp %48 : vector<16x1xf32>
    %cst_42 = arith.constant 1.000000e+00 : f32
    %50 = vector.broadcast %cst_42 : f32 to vector<16x1xf32>
    %51 = arith.addf %50, %49 : vector<16x1xf32>
    %52 = arith.divf %50, %51 : vector<16x1xf32>
    %53 = vector.extract_strided_slice %26 {offsets = [0, 0], sizes = [2, 96], strides = [1, 1]} : vector<16x96xf32> to vector<2x96xf32>
    %54 = vector.extract_strided_slice %52 {offsets = [0, 0], sizes = [2, 1], strides = [1, 1]} : vector<16x1xf32> to vector<2x1xf32>
    %cst_43 = arith.constant dense<0.000000e+00> : vector<2x96xf32>
    %55 = tpu.matmul %32, %11, %cst_43 {dimension_numbers = #tpu.dot_dimension_numbers<[1], [0], [0], [1], [0, 0, 1, 1], [], []>} : vector<2x32xf32>, vector<32x96xf32>, vector<2x96xf32> -> vector<2x96xf32>
    %56 = arith.addf %55, %31 : vector<2x96xf32>
    %57 = vector.extract_strided_slice %53 {offsets = [0, 0], sizes = [2, 32], strides = [1, 1]} : vector<2x96xf32> to vector<2x32xf32>
    %58 = vector.extract_strided_slice %56 {offsets = [0, 0], sizes = [2, 32], strides = [1, 1]} : vector<2x96xf32> to vector<2x32xf32>
    %59 = arith.addf %57, %58 : vector<2x32xf32>
    %60 = arith.negf %59 : vector<2x32xf32>
    %61 = math.exp %60 : vector<2x32xf32>
    %cst_44 = arith.constant 1.000000e+00 : f32
    %62 = vector.broadcast %cst_44 : f32 to vector<2x32xf32>
    %63 = arith.addf %62, %61 : vector<2x32xf32>
    %64 = arith.divf %62, %63 : vector<2x32xf32>
    %65 = vector.extract_strided_slice %53 {offsets = [0, 32], sizes = [2, 32], strides = [1, 1]} : vector<2x96xf32> to vector<2x32xf32>
    %66 = vector.extract_strided_slice %56 {offsets = [0, 32], sizes = [2, 32], strides = [1, 1]} : vector<2x96xf32> to vector<2x32xf32>
    %67 = arith.addf %65, %66 : vector<2x32xf32>
    %68 = arith.negf %67 : vector<2x32xf32>
    %69 = math.exp %68 : vector<2x32xf32>
    %cst_45 = arith.constant 1.000000e+00 : f32
    %70 = vector.broadcast %cst_45 : f32 to vector<2x32xf32>
    %71 = arith.addf %70, %69 : vector<2x32xf32>
    %72 = arith.divf %70, %71 : vector<2x32xf32>
    %73 = vector.extract_strided_slice %53 {offsets = [0, 64], sizes = [2, 32], strides = [1, 1]} : vector<2x96xf32> to vector<2x32xf32>
    %74 = vector.extract_strided_slice %56 {offsets = [0, 64], sizes = [2, 32], strides = [1, 1]} : vector<2x96xf32> to vector<2x32xf32>
    %75 = arith.mulf %64, %74 : vector<2x32xf32>
    %76 = arith.addf %73, %75 : vector<2x32xf32>
    %77 = math.tanh %76 : vector<2x32xf32>
    %cst_46 = arith.constant 1.000000e+00 : f32
    %78 = vector.broadcast %cst_46 : f32 to vector<2x32xf32>
    %79 = arith.subf %78, %72 : vector<2x32xf32>
    %80 = arith.mulf %79, %77 : vector<2x32xf32>
    %81 = arith.mulf %72, %32 : vector<2x32xf32>
    %82 = arith.addf %80, %81 : vector<2x32xf32>
    %83 = vector.broadcast %54 : vector<2x1xf32> to vector<2x32xf32>
    %84 = arith.mulf %83, %82 : vector<2x32xf32>
    %cst_47 = arith.constant 1.000000e+00 : f32
    %85 = vector.broadcast %cst_47 : f32 to vector<2x1xf32>
    %86 = arith.subf %85, %54 : vector<2x1xf32>
    %87 = vector.broadcast %86 : vector<2x1xf32> to vector<2x32xf32>
    %88 = arith.mulf %87, %32 : vector<2x32xf32>
    %89 = arith.addf %84, %88 : vector<2x32xf32>
    %90 = vector.extract_strided_slice %26 {offsets = [2, 0], sizes = [2, 96], strides = [1, 1]} : vector<16x96xf32> to vector<2x96xf32>
    %91 = vector.extract_strided_slice %52 {offsets = [2, 0], sizes = [2, 1], strides = [1, 1]} : vector<16x1xf32> to vector<2x1xf32>
    %cst_48 = arith.constant dense<0.000000e+00> : vector<2x96xf32>
    %92 = tpu.matmul %89, %11, %cst_48 {dimension_numbers = #tpu.dot_dimension_numbers<[1], [0], [0], [1], [0, 0, 1, 1], [], []>} : vector<2x32xf32>, vector<32x96xf32>, vector<2x96xf32> -> vector<2x96xf32>
    %93 = arith.addf %92, %31 : vector<2x96xf32>
    %94 = vector.extract_strided_slice %90 {offsets = [0, 0], sizes = [2, 32], strides = [1, 1]} : vector<2x96xf32> to vector<2x32xf32>
    %95 = vector.extract_strided_slice %93 {offsets = [0, 0], sizes = [2, 32], strides = [1, 1]} : vector<2x96xf32> to vector<2x32xf32>
    %96 = arith.addf %94, %95 : vector<2x32xf32>
    %97 = arith.negf %96 : vector<2x32xf32>
    %98 = math.exp %97 : vector<2x32xf32>
    %cst_49 = arith.constant 1.000000e+00 : f32
    %99 = vector.broadcast %cst_49 : f32 to vector<2x32xf32>
    %100 = arith.addf %99, %98 : vector<2x32xf32>
    %101 = arith.divf %99, %100 : vector<2x32xf32>
    %102 = vector.extract_strided_slice %90 {offsets = [0, 32], sizes = [2, 32], strides = [1, 1]} : vector<2x96xf32> to vector<2x32xf32>
    %103 = vector.extract_strided_slice %93 {offsets = [0, 32], sizes = [2, 32], strides = [1, 1]} : vector<2x96xf32> to vector<2x32xf32>
    %104 = arith.addf %102, %103 : vector<2x32xf32>
    %105 = arith.negf %104 : vector<2x32xf32>
    %106 = math.exp %105 : vector<2x32xf32>
    %cst_50 = arith.constant 1.000000e+00 : f32
    %107 = vector.broadcast %cst_50 : f32 to vector<2x32xf32>
    %108 = arith.addf %107, %106 : vector<2x32xf32>
    %109 = arith.divf %107, %108 : vector<2x32xf32>
    %110 = vector.extract_strided_slice %90 {offsets = [0, 64], sizes = [2, 32], strides = [1, 1]} : vector<2x96xf32> to vector<2x32xf32>
    %111 = vector.extract_strided_slice %93 {offsets = [0, 64], sizes = [2, 32], strides = [1, 1]} : vector<2x96xf32> to vector<2x32xf32>
    %112 = arith.mulf %101, %111 : vector<2x32xf32>
    %113 = arith.addf %110, %112 : vector<2x32xf32>
    %114 = math.tanh %113 : vector<2x32xf32>
    %cst_51 = arith.constant 1.000000e+00 : f32
    %115 = vector.broadcast %cst_51 : f32 to vector<2x32xf32>
    %116 = arith.subf %115, %109 : vector<2x32xf32>
    %117 = arith.mulf %116, %114 : vector<2x32xf32>
    %118 = arith.mulf %109, %89 : vector<2x32xf32>
    %119 = arith.addf %117, %118 : vector<2x32xf32>
    %120 = vector.broadcast %91 : vector<2x1xf32> to vector<2x32xf32>
    %121 = arith.mulf %120, %119 : vector<2x32xf32>
    %cst_52 = arith.constant 1.000000e+00 : f32
    %122 = vector.broadcast %cst_52 : f32 to vector<2x1xf32>
    %123 = arith.subf %122, %91 : vector<2x1xf32>
    %124 = vector.broadcast %123 : vector<2x1xf32> to vector<2x32xf32>
    %125 = arith.mulf %124, %89 : vector<2x32xf32>
    %126 = arith.addf %121, %125 : vector<2x32xf32>
    %127 = vector.extract_strided_slice %26 {offsets = [4, 0], sizes = [2, 96], strides = [1, 1]} : vector<16x96xf32> to vector<2x96xf32>
    %128 = vector.extract_strided_slice %52 {offsets = [4, 0], sizes = [2, 1], strides = [1, 1]} : vector<16x1xf32> to vector<2x1xf32>
    %cst_53 = arith.constant dense<0.000000e+00> : vector<2x96xf32>
    %129 = tpu.matmul %126, %11, %cst_53 {dimension_numbers = #tpu.dot_dimension_numbers<[1], [0], [0], [1], [0, 0, 1, 1], [], []>} : vector<2x32xf32>, vector<32x96xf32>, vector<2x96xf32> -> vector<2x96xf32>
    %130 = arith.addf %129, %31 : vector<2x96xf32>
    %131 = vector.extract_strided_slice %127 {offsets = [0, 0], sizes = [2, 32], strides = [1, 1]} : vector<2x96xf32> to vector<2x32xf32>
    %132 = vector.extract_strided_slice %130 {offsets = [0, 0], sizes = [2, 32], strides = [1, 1]} : vector<2x96xf32> to vector<2x32xf32>
    %133 = arith.addf %131, %132 : vector<2x32xf32>
    %134 = arith.negf %133 : vector<2x32xf32>
    %135 = math.exp %134 : vector<2x32xf32>
    %cst_54 = arith.constant 1.000000e+00 : f32
    %136 = vector.broadcast %cst_54 : f32 to vector<2x32xf32>
    %137 = arith.addf %136, %135 : vector<2x32xf32>
    %138 = arith.divf %136, %137 : vector<2x32xf32>
    %139 = vector.extract_strided_slice %127 {offsets = [0, 32], sizes = [2, 32], strides = [1, 1]} : vector<2x96xf32> to vector<2x32xf32>
    %140 = vector.extract_strided_slice %130 {offsets = [0, 32], sizes = [2, 32], strides = [1, 1]} : vector<2x96xf32> to vector<2x32xf32>
    %141 = arith.addf %139, %140 : vector<2x32xf32>
    %142 = arith.negf %141 : vector<2x32xf32>
    %143 = math.exp %142 : vector<2x32xf32>
    %cst_55 = arith.constant 1.000000e+00 : f32
    %144 = vector.broadcast %cst_55 : f32 to vector<2x32xf32>
    %145 = arith.addf %144, %143 : vector<2x32xf32>
    %146 = arith.divf %144, %145 : vector<2x32xf32>
    %147 = vector.extract_strided_slice %127 {offsets = [0, 64], sizes = [2, 32], strides = [1, 1]} : vector<2x96xf32> to vector<2x32xf32>
    %148 = vector.extract_strided_slice %130 {offsets = [0, 64], sizes = [2, 32], strides = [1, 1]} : vector<2x96xf32> to vector<2x32xf32>
    %149 = arith.mulf %138, %148 : vector<2x32xf32>
    %150 = arith.addf %147, %149 : vector<2x32xf32>
    %151 = math.tanh %150 : vector<2x32xf32>
    %cst_56 = arith.constant 1.000000e+00 : f32
    %152 = vector.broadcast %cst_56 : f32 to vector<2x32xf32>
    %153 = arith.subf %152, %146 : vector<2x32xf32>
    %154 = arith.mulf %153, %151 : vector<2x32xf32>
    %155 = arith.mulf %146, %126 : vector<2x32xf32>
    %156 = arith.addf %154, %155 : vector<2x32xf32>
    %157 = vector.broadcast %128 : vector<2x1xf32> to vector<2x32xf32>
    %158 = arith.mulf %157, %156 : vector<2x32xf32>
    %cst_57 = arith.constant 1.000000e+00 : f32
    %159 = vector.broadcast %cst_57 : f32 to vector<2x1xf32>
    %160 = arith.subf %159, %128 : vector<2x1xf32>
    %161 = vector.broadcast %160 : vector<2x1xf32> to vector<2x32xf32>
    %162 = arith.mulf %161, %126 : vector<2x32xf32>
    %163 = arith.addf %158, %162 : vector<2x32xf32>
    %164 = vector.extract_strided_slice %26 {offsets = [6, 0], sizes = [2, 96], strides = [1, 1]} : vector<16x96xf32> to vector<2x96xf32>
    %165 = vector.extract_strided_slice %52 {offsets = [6, 0], sizes = [2, 1], strides = [1, 1]} : vector<16x1xf32> to vector<2x1xf32>
    %cst_58 = arith.constant dense<0.000000e+00> : vector<2x96xf32>
    %166 = tpu.matmul %163, %11, %cst_58 {dimension_numbers = #tpu.dot_dimension_numbers<[1], [0], [0], [1], [0, 0, 1, 1], [], []>} : vector<2x32xf32>, vector<32x96xf32>, vector<2x96xf32> -> vector<2x96xf32>
    %167 = arith.addf %166, %31 : vector<2x96xf32>
    %168 = vector.extract_strided_slice %164 {offsets = [0, 0], sizes = [2, 32], strides = [1, 1]} : vector<2x96xf32> to vector<2x32xf32>
    %169 = vector.extract_strided_slice %167 {offsets = [0, 0], sizes = [2, 32], strides = [1, 1]} : vector<2x96xf32> to vector<2x32xf32>
    %170 = arith.addf %168, %169 : vector<2x32xf32>
    %171 = arith.negf %170 : vector<2x32xf32>
    %172 = math.exp %171 : vector<2x32xf32>
    %cst_59 = arith.constant 1.000000e+00 : f32
    %173 = vector.broadcast %cst_59 : f32 to vector<2x32xf32>
    %174 = arith.addf %173, %172 : vector<2x32xf32>
    %175 = arith.divf %173, %174 : vector<2x32xf32>
    %176 = vector.extract_strided_slice %164 {offsets = [0, 32], sizes = [2, 32], strides = [1, 1]} : vector<2x96xf32> to vector<2x32xf32>
    %177 = vector.extract_strided_slice %167 {offsets = [0, 32], sizes = [2, 32], strides = [1, 1]} : vector<2x96xf32> to vector<2x32xf32>
    %178 = arith.addf %176, %177 : vector<2x32xf32>
    %179 = arith.negf %178 : vector<2x32xf32>
    %180 = math.exp %179 : vector<2x32xf32>
    %cst_60 = arith.constant 1.000000e+00 : f32
    %181 = vector.broadcast %cst_60 : f32 to vector<2x32xf32>
    %182 = arith.addf %181, %180 : vector<2x32xf32>
    %183 = arith.divf %181, %182 : vector<2x32xf32>
    %184 = vector.extract_strided_slice %164 {offsets = [0, 64], sizes = [2, 32], strides = [1, 1]} : vector<2x96xf32> to vector<2x32xf32>
    %185 = vector.extract_strided_slice %167 {offsets = [0, 64], sizes = [2, 32], strides = [1, 1]} : vector<2x96xf32> to vector<2x32xf32>
    %186 = arith.mulf %175, %185 : vector<2x32xf32>
    %187 = arith.addf %184, %186 : vector<2x32xf32>
    %188 = math.tanh %187 : vector<2x32xf32>
    %cst_61 = arith.constant 1.000000e+00 : f32
    %189 = vector.broadcast %cst_61 : f32 to vector<2x32xf32>
    %190 = arith.subf %189, %183 : vector<2x32xf32>
    %191 = arith.mulf %190, %188 : vector<2x32xf32>
    %192 = arith.mulf %183, %163 : vector<2x32xf32>
    %193 = arith.addf %191, %192 : vector<2x32xf32>
    %194 = vector.broadcast %165 : vector<2x1xf32> to vector<2x32xf32>
    %195 = arith.mulf %194, %193 : vector<2x32xf32>
    %cst_62 = arith.constant 1.000000e+00 : f32
    %196 = vector.broadcast %cst_62 : f32 to vector<2x1xf32>
    %197 = arith.subf %196, %165 : vector<2x1xf32>
    %198 = vector.broadcast %197 : vector<2x1xf32> to vector<2x32xf32>
    %199 = arith.mulf %198, %163 : vector<2x32xf32>
    %200 = arith.addf %195, %199 : vector<2x32xf32>
    %201 = vector.extract_strided_slice %26 {offsets = [8, 0], sizes = [2, 96], strides = [1, 1]} : vector<16x96xf32> to vector<2x96xf32>
    %202 = vector.extract_strided_slice %52 {offsets = [8, 0], sizes = [2, 1], strides = [1, 1]} : vector<16x1xf32> to vector<2x1xf32>
    %cst_63 = arith.constant dense<0.000000e+00> : vector<2x96xf32>
    %203 = tpu.matmul %200, %11, %cst_63 {dimension_numbers = #tpu.dot_dimension_numbers<[1], [0], [0], [1], [0, 0, 1, 1], [], []>} : vector<2x32xf32>, vector<32x96xf32>, vector<2x96xf32> -> vector<2x96xf32>
    %204 = arith.addf %203, %31 : vector<2x96xf32>
    %205 = vector.extract_strided_slice %201 {offsets = [0, 0], sizes = [2, 32], strides = [1, 1]} : vector<2x96xf32> to vector<2x32xf32>
    %206 = vector.extract_strided_slice %204 {offsets = [0, 0], sizes = [2, 32], strides = [1, 1]} : vector<2x96xf32> to vector<2x32xf32>
    %207 = arith.addf %205, %206 : vector<2x32xf32>
    %208 = arith.negf %207 : vector<2x32xf32>
    %209 = math.exp %208 : vector<2x32xf32>
    %cst_64 = arith.constant 1.000000e+00 : f32
    %210 = vector.broadcast %cst_64 : f32 to vector<2x32xf32>
    %211 = arith.addf %210, %209 : vector<2x32xf32>
    %212 = arith.divf %210, %211 : vector<2x32xf32>
    %213 = vector.extract_strided_slice %201 {offsets = [0, 32], sizes = [2, 32], strides = [1, 1]} : vector<2x96xf32> to vector<2x32xf32>
    %214 = vector.extract_strided_slice %204 {offsets = [0, 32], sizes = [2, 32], strides = [1, 1]} : vector<2x96xf32> to vector<2x32xf32>
    %215 = arith.addf %213, %214 : vector<2x32xf32>
    %216 = arith.negf %215 : vector<2x32xf32>
    %217 = math.exp %216 : vector<2x32xf32>
    %cst_65 = arith.constant 1.000000e+00 : f32
    %218 = vector.broadcast %cst_65 : f32 to vector<2x32xf32>
    %219 = arith.addf %218, %217 : vector<2x32xf32>
    %220 = arith.divf %218, %219 : vector<2x32xf32>
    %221 = vector.extract_strided_slice %201 {offsets = [0, 64], sizes = [2, 32], strides = [1, 1]} : vector<2x96xf32> to vector<2x32xf32>
    %222 = vector.extract_strided_slice %204 {offsets = [0, 64], sizes = [2, 32], strides = [1, 1]} : vector<2x96xf32> to vector<2x32xf32>
    %223 = arith.mulf %212, %222 : vector<2x32xf32>
    %224 = arith.addf %221, %223 : vector<2x32xf32>
    %225 = math.tanh %224 : vector<2x32xf32>
    %cst_66 = arith.constant 1.000000e+00 : f32
    %226 = vector.broadcast %cst_66 : f32 to vector<2x32xf32>
    %227 = arith.subf %226, %220 : vector<2x32xf32>
    %228 = arith.mulf %227, %225 : vector<2x32xf32>
    %229 = arith.mulf %220, %200 : vector<2x32xf32>
    %230 = arith.addf %228, %229 : vector<2x32xf32>
    %231 = vector.broadcast %202 : vector<2x1xf32> to vector<2x32xf32>
    %232 = arith.mulf %231, %230 : vector<2x32xf32>
    %cst_67 = arith.constant 1.000000e+00 : f32
    %233 = vector.broadcast %cst_67 : f32 to vector<2x1xf32>
    %234 = arith.subf %233, %202 : vector<2x1xf32>
    %235 = vector.broadcast %234 : vector<2x1xf32> to vector<2x32xf32>
    %236 = arith.mulf %235, %200 : vector<2x32xf32>
    %237 = arith.addf %232, %236 : vector<2x32xf32>
    %238 = vector.extract_strided_slice %26 {offsets = [10, 0], sizes = [2, 96], strides = [1, 1]} : vector<16x96xf32> to vector<2x96xf32>
    %239 = vector.extract_strided_slice %52 {offsets = [10, 0], sizes = [2, 1], strides = [1, 1]} : vector<16x1xf32> to vector<2x1xf32>
    %cst_68 = arith.constant dense<0.000000e+00> : vector<2x96xf32>
    %240 = tpu.matmul %237, %11, %cst_68 {dimension_numbers = #tpu.dot_dimension_numbers<[1], [0], [0], [1], [0, 0, 1, 1], [], []>} : vector<2x32xf32>, vector<32x96xf32>, vector<2x96xf32> -> vector<2x96xf32>
    %241 = arith.addf %240, %31 : vector<2x96xf32>
    %242 = vector.extract_strided_slice %238 {offsets = [0, 0], sizes = [2, 32], strides = [1, 1]} : vector<2x96xf32> to vector<2x32xf32>
    %243 = vector.extract_strided_slice %241 {offsets = [0, 0], sizes = [2, 32], strides = [1, 1]} : vector<2x96xf32> to vector<2x32xf32>
    %244 = arith.addf %242, %243 : vector<2x32xf32>
    %245 = arith.negf %244 : vector<2x32xf32>
    %246 = math.exp %245 : vector<2x32xf32>
    %cst_69 = arith.constant 1.000000e+00 : f32
    %247 = vector.broadcast %cst_69 : f32 to vector<2x32xf32>
    %248 = arith.addf %247, %246 : vector<2x32xf32>
    %249 = arith.divf %247, %248 : vector<2x32xf32>
    %250 = vector.extract_strided_slice %238 {offsets = [0, 32], sizes = [2, 32], strides = [1, 1]} : vector<2x96xf32> to vector<2x32xf32>
    %251 = vector.extract_strided_slice %241 {offsets = [0, 32], sizes = [2, 32], strides = [1, 1]} : vector<2x96xf32> to vector<2x32xf32>
    %252 = arith.addf %250, %251 : vector<2x32xf32>
    %253 = arith.negf %252 : vector<2x32xf32>
    %254 = math.exp %253 : vector<2x32xf32>
    %cst_70 = arith.constant 1.000000e+00 : f32
    %255 = vector.broadcast %cst_70 : f32 to vector<2x32xf32>
    %256 = arith.addf %255, %254 : vector<2x32xf32>
    %257 = arith.divf %255, %256 : vector<2x32xf32>
    %258 = vector.extract_strided_slice %238 {offsets = [0, 64], sizes = [2, 32], strides = [1, 1]} : vector<2x96xf32> to vector<2x32xf32>
    %259 = vector.extract_strided_slice %241 {offsets = [0, 64], sizes = [2, 32], strides = [1, 1]} : vector<2x96xf32> to vector<2x32xf32>
    %260 = arith.mulf %249, %259 : vector<2x32xf32>
    %261 = arith.addf %258, %260 : vector<2x32xf32>
    %262 = math.tanh %261 : vector<2x32xf32>
    %cst_71 = arith.constant 1.000000e+00 : f32
    %263 = vector.broadcast %cst_71 : f32 to vector<2x32xf32>
    %264 = arith.subf %263, %257 : vector<2x32xf32>
    %265 = arith.mulf %264, %262 : vector<2x32xf32>
    %266 = arith.mulf %257, %237 : vector<2x32xf32>
    %267 = arith.addf %265, %266 : vector<2x32xf32>
    %268 = vector.broadcast %239 : vector<2x1xf32> to vector<2x32xf32>
    %269 = arith.mulf %268, %267 : vector<2x32xf32>
    %cst_72 = arith.constant 1.000000e+00 : f32
    %270 = vector.broadcast %cst_72 : f32 to vector<2x1xf32>
    %271 = arith.subf %270, %239 : vector<2x1xf32>
    %272 = vector.broadcast %271 : vector<2x1xf32> to vector<2x32xf32>
    %273 = arith.mulf %272, %237 : vector<2x32xf32>
    %274 = arith.addf %269, %273 : vector<2x32xf32>
    %275 = vector.extract_strided_slice %26 {offsets = [12, 0], sizes = [2, 96], strides = [1, 1]} : vector<16x96xf32> to vector<2x96xf32>
    %276 = vector.extract_strided_slice %52 {offsets = [12, 0], sizes = [2, 1], strides = [1, 1]} : vector<16x1xf32> to vector<2x1xf32>
    %cst_73 = arith.constant dense<0.000000e+00> : vector<2x96xf32>
    %277 = tpu.matmul %274, %11, %cst_73 {dimension_numbers = #tpu.dot_dimension_numbers<[1], [0], [0], [1], [0, 0, 1, 1], [], []>} : vector<2x32xf32>, vector<32x96xf32>, vector<2x96xf32> -> vector<2x96xf32>
    %278 = arith.addf %277, %31 : vector<2x96xf32>
    %279 = vector.extract_strided_slice %275 {offsets = [0, 0], sizes = [2, 32], strides = [1, 1]} : vector<2x96xf32> to vector<2x32xf32>
    %280 = vector.extract_strided_slice %278 {offsets = [0, 0], sizes = [2, 32], strides = [1, 1]} : vector<2x96xf32> to vector<2x32xf32>
    %281 = arith.addf %279, %280 : vector<2x32xf32>
    %282 = arith.negf %281 : vector<2x32xf32>
    %283 = math.exp %282 : vector<2x32xf32>
    %cst_74 = arith.constant 1.000000e+00 : f32
    %284 = vector.broadcast %cst_74 : f32 to vector<2x32xf32>
    %285 = arith.addf %284, %283 : vector<2x32xf32>
    %286 = arith.divf %284, %285 : vector<2x32xf32>
    %287 = vector.extract_strided_slice %275 {offsets = [0, 32], sizes = [2, 32], strides = [1, 1]} : vector<2x96xf32> to vector<2x32xf32>
    %288 = vector.extract_strided_slice %278 {offsets = [0, 32], sizes = [2, 32], strides = [1, 1]} : vector<2x96xf32> to vector<2x32xf32>
    %289 = arith.addf %287, %288 : vector<2x32xf32>
    %290 = arith.negf %289 : vector<2x32xf32>
    %291 = math.exp %290 : vector<2x32xf32>
    %cst_75 = arith.constant 1.000000e+00 : f32
    %292 = vector.broadcast %cst_75 : f32 to vector<2x32xf32>
    %293 = arith.addf %292, %291 : vector<2x32xf32>
    %294 = arith.divf %292, %293 : vector<2x32xf32>
    %295 = vector.extract_strided_slice %275 {offsets = [0, 64], sizes = [2, 32], strides = [1, 1]} : vector<2x96xf32> to vector<2x32xf32>
    %296 = vector.extract_strided_slice %278 {offsets = [0, 64], sizes = [2, 32], strides = [1, 1]} : vector<2x96xf32> to vector<2x32xf32>
    %297 = arith.mulf %286, %296 : vector<2x32xf32>
    %298 = arith.addf %295, %297 : vector<2x32xf32>
    %299 = math.tanh %298 : vector<2x32xf32>
    %cst_76 = arith.constant 1.000000e+00 : f32
    %300 = vector.broadcast %cst_76 : f32 to vector<2x32xf32>
    %301 = arith.subf %300, %294 : vector<2x32xf32>
    %302 = arith.mulf %301, %299 : vector<2x32xf32>
    %303 = arith.mulf %294, %274 : vector<2x32xf32>
    %304 = arith.addf %302, %303 : vector<2x32xf32>
    %305 = vector.broadcast %276 : vector<2x1xf32> to vector<2x32xf32>
    %306 = arith.mulf %305, %304 : vector<2x32xf32>
    %cst_77 = arith.constant 1.000000e+00 : f32
    %307 = vector.broadcast %cst_77 : f32 to vector<2x1xf32>
    %308 = arith.subf %307, %276 : vector<2x1xf32>
    %309 = vector.broadcast %308 : vector<2x1xf32> to vector<2x32xf32>
    %310 = arith.mulf %309, %274 : vector<2x32xf32>
    %311 = arith.addf %306, %310 : vector<2x32xf32>
    %312 = vector.extract_strided_slice %26 {offsets = [14, 0], sizes = [2, 96], strides = [1, 1]} : vector<16x96xf32> to vector<2x96xf32>
    %313 = vector.extract_strided_slice %52 {offsets = [14, 0], sizes = [2, 1], strides = [1, 1]} : vector<16x1xf32> to vector<2x1xf32>
    %cst_78 = arith.constant dense<0.000000e+00> : vector<2x96xf32>
    %314 = tpu.matmul %311, %11, %cst_78 {dimension_numbers = #tpu.dot_dimension_numbers<[1], [0], [0], [1], [0, 0, 1, 1], [], []>} : vector<2x32xf32>, vector<32x96xf32>, vector<2x96xf32> -> vector<2x96xf32>
    %315 = arith.addf %314, %31 : vector<2x96xf32>
    %316 = vector.extract_strided_slice %312 {offsets = [0, 0], sizes = [2, 32], strides = [1, 1]} : vector<2x96xf32> to vector<2x32xf32>
    %317 = vector.extract_strided_slice %315 {offsets = [0, 0], sizes = [2, 32], strides = [1, 1]} : vector<2x96xf32> to vector<2x32xf32>
    %318 = arith.addf %316, %317 : vector<2x32xf32>
    %319 = arith.negf %318 : vector<2x32xf32>
    %320 = math.exp %319 : vector<2x32xf32>
    %cst_79 = arith.constant 1.000000e+00 : f32
    %321 = vector.broadcast %cst_79 : f32 to vector<2x32xf32>
    %322 = arith.addf %321, %320 : vector<2x32xf32>
    %323 = arith.divf %321, %322 : vector<2x32xf32>
    %324 = vector.extract_strided_slice %312 {offsets = [0, 32], sizes = [2, 32], strides = [1, 1]} : vector<2x96xf32> to vector<2x32xf32>
    %325 = vector.extract_strided_slice %315 {offsets = [0, 32], sizes = [2, 32], strides = [1, 1]} : vector<2x96xf32> to vector<2x32xf32>
    %326 = arith.addf %324, %325 : vector<2x32xf32>
    %327 = arith.negf %326 : vector<2x32xf32>
    %328 = math.exp %327 : vector<2x32xf32>
    %cst_80 = arith.constant 1.000000e+00 : f32
    %329 = vector.broadcast %cst_80 : f32 to vector<2x32xf32>
    %330 = arith.addf %329, %328 : vector<2x32xf32>
    %331 = arith.divf %329, %330 : vector<2x32xf32>
    %332 = vector.extract_strided_slice %312 {offsets = [0, 64], sizes = [2, 32], strides = [1, 1]} : vector<2x96xf32> to vector<2x32xf32>
    %333 = vector.extract_strided_slice %315 {offsets = [0, 64], sizes = [2, 32], strides = [1, 1]} : vector<2x96xf32> to vector<2x32xf32>
    %334 = arith.mulf %323, %333 : vector<2x32xf32>
    %335 = arith.addf %332, %334 : vector<2x32xf32>
    %336 = math.tanh %335 : vector<2x32xf32>
    %cst_81 = arith.constant 1.000000e+00 : f32
    %337 = vector.broadcast %cst_81 : f32 to vector<2x32xf32>
    %338 = arith.subf %337, %331 : vector<2x32xf32>
    %339 = arith.mulf %338, %336 : vector<2x32xf32>
    %340 = arith.mulf %331, %311 : vector<2x32xf32>
    %341 = arith.addf %339, %340 : vector<2x32xf32>
    %342 = vector.broadcast %313 : vector<2x1xf32> to vector<2x32xf32>
    %343 = arith.mulf %342, %341 : vector<2x32xf32>
    %cst_82 = arith.constant 1.000000e+00 : f32
    %344 = vector.broadcast %cst_82 : f32 to vector<2x1xf32>
    %345 = arith.subf %344, %313 : vector<2x1xf32>
    %346 = vector.broadcast %345 : vector<2x1xf32> to vector<2x32xf32>
    %347 = arith.mulf %346, %311 : vector<2x32xf32>
    %348 = arith.addf %343, %347 : vector<2x32xf32>
    %cst_83 = arith.constant dense<0.000000e+00> : vector<2x32xf32>
    %349 = tpu.matmul %33, %13, %cst_83 {dimension_numbers = #tpu.dot_dimension_numbers<[1], [0], [0], [1], [0, 0, 1, 1], [], []>} : vector<2x32xf32>, vector<32x32xf32>, vector<2x32xf32> -> vector<2x32xf32>
    %cst_84 = arith.constant dense<0.000000e+00> : vector<2x32xf32>
    %350 = tpu.matmul %348, %14, %cst_84 {dimension_numbers = #tpu.dot_dimension_numbers<[1], [0], [0], [1], [0, 0, 1, 1], [], []>} : vector<2x32xf32>, vector<32x32xf32>, vector<2x32xf32> -> vector<2x32xf32>
    %351 = arith.addf %349, %350 : vector<2x32xf32>
    %352 = arith.addf %351, %29 : vector<2x32xf32>
    %cst_85 = arith.constant 0.000000e+00 : f32
    %353 = vector.broadcast %cst_85 : f32 to vector<2x32xf32>
    %354 = arith.maximumf %352, %353 : vector<2x32xf32>
    %cst_86 = arith.constant dense<0.000000e+00> : vector<16x32xf32>
    %355 = tpu.matmul %2, %354, %cst_86 {dimension_numbers = #tpu.dot_dimension_numbers<[1], [0], [0], [1], [0, 0, 1, 1], [], []>} : vector<16x2xf32>, vector<2x32xf32>, vector<16x32xf32> -> vector<16x32xf32>
    %356 = arith.mulf %0, %355 : vector<16x32xf32>
    %357 = arith.subf %0, %355 : vector<16x32xf32>
    %358 = math.absf %357 : vector<16x32xf32>
    %359 = tpu.concatenate %356, %358 in 1 : vector<16x32xf32>, vector<16x32xf32> -> vector<16x64xf32>
    %cst_87 = arith.constant dense<0.000000e+00> : vector<16x16xf32>
    %360 = tpu.matmul %359, %5, %cst_87 {dimension_numbers = #tpu.dot_dimension_numbers<[1], [0], [0], [1], [0, 0, 1, 1], [], []>} : vector<16x64xf32>, vector<64x16xf32>, vector<16x16xf32> -> vector<16x16xf32>
    %361 = arith.addf %23, %360 : vector<16x16xf32>
    %362 = math.tanh %361 : vector<16x16xf32>
    %363 = vector.broadcast %7 : vector<1x16xf32> to vector<16x16xf32>
    %364 = arith.mulf %362, %363 : vector<16x16xf32>
    %cst_88 = arith.constant dense<0.000000e+00> : vector<16xf32>
    %365 = vector.multi_reduction <add>, %364, %cst_88 [1] : vector<16x16xf32> to vector<16xf32>
    %366 = vector.shape_cast %365 : vector<16xf32> to vector<16x1xf32>
    %367 = vector.broadcast %8 : vector<1x1xf32> to vector<16x1xf32>
    %368 = arith.addf %366, %367 : vector<16x1xf32>
    %369 = arith.negf %368 : vector<16x1xf32>
    %370 = math.exp %369 : vector<16x1xf32>
    %cst_89 = arith.constant 1.000000e+00 : f32
    %371 = vector.broadcast %cst_89 : f32 to vector<16x1xf32>
    %372 = arith.addf %371, %370 : vector<16x1xf32>
    %373 = arith.divf %371, %372 : vector<16x1xf32>
    %374 = vector.extract_strided_slice %26 {offsets = [0, 0], sizes = [2, 96], strides = [1, 1]} : vector<16x96xf32> to vector<2x96xf32>
    %375 = vector.extract_strided_slice %373 {offsets = [0, 0], sizes = [2, 1], strides = [1, 1]} : vector<16x1xf32> to vector<2x1xf32>
    %cst_90 = arith.constant dense<0.000000e+00> : vector<2x96xf32>
    %376 = tpu.matmul %32, %11, %cst_90 {dimension_numbers = #tpu.dot_dimension_numbers<[1], [0], [0], [1], [0, 0, 1, 1], [], []>} : vector<2x32xf32>, vector<32x96xf32>, vector<2x96xf32> -> vector<2x96xf32>
    %377 = arith.addf %376, %31 : vector<2x96xf32>
    %378 = vector.extract_strided_slice %374 {offsets = [0, 0], sizes = [2, 32], strides = [1, 1]} : vector<2x96xf32> to vector<2x32xf32>
    %379 = vector.extract_strided_slice %377 {offsets = [0, 0], sizes = [2, 32], strides = [1, 1]} : vector<2x96xf32> to vector<2x32xf32>
    %380 = arith.addf %378, %379 : vector<2x32xf32>
    %381 = arith.negf %380 : vector<2x32xf32>
    %382 = math.exp %381 : vector<2x32xf32>
    %cst_91 = arith.constant 1.000000e+00 : f32
    %383 = vector.broadcast %cst_91 : f32 to vector<2x32xf32>
    %384 = arith.addf %383, %382 : vector<2x32xf32>
    %385 = arith.divf %383, %384 : vector<2x32xf32>
    %386 = vector.extract_strided_slice %374 {offsets = [0, 32], sizes = [2, 32], strides = [1, 1]} : vector<2x96xf32> to vector<2x32xf32>
    %387 = vector.extract_strided_slice %377 {offsets = [0, 32], sizes = [2, 32], strides = [1, 1]} : vector<2x96xf32> to vector<2x32xf32>
    %388 = arith.addf %386, %387 : vector<2x32xf32>
    %389 = arith.negf %388 : vector<2x32xf32>
    %390 = math.exp %389 : vector<2x32xf32>
    %cst_92 = arith.constant 1.000000e+00 : f32
    %391 = vector.broadcast %cst_92 : f32 to vector<2x32xf32>
    %392 = arith.addf %391, %390 : vector<2x32xf32>
    %393 = arith.divf %391, %392 : vector<2x32xf32>
    %394 = vector.extract_strided_slice %374 {offsets = [0, 64], sizes = [2, 32], strides = [1, 1]} : vector<2x96xf32> to vector<2x32xf32>
    %395 = vector.extract_strided_slice %377 {offsets = [0, 64], sizes = [2, 32], strides = [1, 1]} : vector<2x96xf32> to vector<2x32xf32>
    %396 = arith.mulf %385, %395 : vector<2x32xf32>
    %397 = arith.addf %394, %396 : vector<2x32xf32>
    %398 = math.tanh %397 : vector<2x32xf32>
    %cst_93 = arith.constant 1.000000e+00 : f32
    %399 = vector.broadcast %cst_93 : f32 to vector<2x32xf32>
    %400 = arith.subf %399, %393 : vector<2x32xf32>
    %401 = arith.mulf %400, %398 : vector<2x32xf32>
    %402 = arith.mulf %393, %32 : vector<2x32xf32>
    %403 = arith.addf %401, %402 : vector<2x32xf32>
    %404 = vector.broadcast %375 : vector<2x1xf32> to vector<2x32xf32>
    %405 = arith.mulf %404, %403 : vector<2x32xf32>
    %cst_94 = arith.constant 1.000000e+00 : f32
    %406 = vector.broadcast %cst_94 : f32 to vector<2x1xf32>
    %407 = arith.subf %406, %375 : vector<2x1xf32>
    %408 = vector.broadcast %407 : vector<2x1xf32> to vector<2x32xf32>
    %409 = arith.mulf %408, %32 : vector<2x32xf32>
    %410 = arith.addf %405, %409 : vector<2x32xf32>
    %411 = vector.extract_strided_slice %26 {offsets = [2, 0], sizes = [2, 96], strides = [1, 1]} : vector<16x96xf32> to vector<2x96xf32>
    %412 = vector.extract_strided_slice %373 {offsets = [2, 0], sizes = [2, 1], strides = [1, 1]} : vector<16x1xf32> to vector<2x1xf32>
    %cst_95 = arith.constant dense<0.000000e+00> : vector<2x96xf32>
    %413 = tpu.matmul %410, %11, %cst_95 {dimension_numbers = #tpu.dot_dimension_numbers<[1], [0], [0], [1], [0, 0, 1, 1], [], []>} : vector<2x32xf32>, vector<32x96xf32>, vector<2x96xf32> -> vector<2x96xf32>
    %414 = arith.addf %413, %31 : vector<2x96xf32>
    %415 = vector.extract_strided_slice %411 {offsets = [0, 0], sizes = [2, 32], strides = [1, 1]} : vector<2x96xf32> to vector<2x32xf32>
    %416 = vector.extract_strided_slice %414 {offsets = [0, 0], sizes = [2, 32], strides = [1, 1]} : vector<2x96xf32> to vector<2x32xf32>
    %417 = arith.addf %415, %416 : vector<2x32xf32>
    %418 = arith.negf %417 : vector<2x32xf32>
    %419 = math.exp %418 : vector<2x32xf32>
    %cst_96 = arith.constant 1.000000e+00 : f32
    %420 = vector.broadcast %cst_96 : f32 to vector<2x32xf32>
    %421 = arith.addf %420, %419 : vector<2x32xf32>
    %422 = arith.divf %420, %421 : vector<2x32xf32>
    %423 = vector.extract_strided_slice %411 {offsets = [0, 32], sizes = [2, 32], strides = [1, 1]} : vector<2x96xf32> to vector<2x32xf32>
    %424 = vector.extract_strided_slice %414 {offsets = [0, 32], sizes = [2, 32], strides = [1, 1]} : vector<2x96xf32> to vector<2x32xf32>
    %425 = arith.addf %423, %424 : vector<2x32xf32>
    %426 = arith.negf %425 : vector<2x32xf32>
    %427 = math.exp %426 : vector<2x32xf32>
    %cst_97 = arith.constant 1.000000e+00 : f32
    %428 = vector.broadcast %cst_97 : f32 to vector<2x32xf32>
    %429 = arith.addf %428, %427 : vector<2x32xf32>
    %430 = arith.divf %428, %429 : vector<2x32xf32>
    %431 = vector.extract_strided_slice %411 {offsets = [0, 64], sizes = [2, 32], strides = [1, 1]} : vector<2x96xf32> to vector<2x32xf32>
    %432 = vector.extract_strided_slice %414 {offsets = [0, 64], sizes = [2, 32], strides = [1, 1]} : vector<2x96xf32> to vector<2x32xf32>
    %433 = arith.mulf %422, %432 : vector<2x32xf32>
    %434 = arith.addf %431, %433 : vector<2x32xf32>
    %435 = math.tanh %434 : vector<2x32xf32>
    %cst_98 = arith.constant 1.000000e+00 : f32
    %436 = vector.broadcast %cst_98 : f32 to vector<2x32xf32>
    %437 = arith.subf %436, %430 : vector<2x32xf32>
    %438 = arith.mulf %437, %435 : vector<2x32xf32>
    %439 = arith.mulf %430, %410 : vector<2x32xf32>
    %440 = arith.addf %438, %439 : vector<2x32xf32>
    %441 = vector.broadcast %412 : vector<2x1xf32> to vector<2x32xf32>
    %442 = arith.mulf %441, %440 : vector<2x32xf32>
    %cst_99 = arith.constant 1.000000e+00 : f32
    %443 = vector.broadcast %cst_99 : f32 to vector<2x1xf32>
    %444 = arith.subf %443, %412 : vector<2x1xf32>
    %445 = vector.broadcast %444 : vector<2x1xf32> to vector<2x32xf32>
    %446 = arith.mulf %445, %410 : vector<2x32xf32>
    %447 = arith.addf %442, %446 : vector<2x32xf32>
    %448 = vector.extract_strided_slice %26 {offsets = [4, 0], sizes = [2, 96], strides = [1, 1]} : vector<16x96xf32> to vector<2x96xf32>
    %449 = vector.extract_strided_slice %373 {offsets = [4, 0], sizes = [2, 1], strides = [1, 1]} : vector<16x1xf32> to vector<2x1xf32>
    %cst_100 = arith.constant dense<0.000000e+00> : vector<2x96xf32>
    %450 = tpu.matmul %447, %11, %cst_100 {dimension_numbers = #tpu.dot_dimension_numbers<[1], [0], [0], [1], [0, 0, 1, 1], [], []>} : vector<2x32xf32>, vector<32x96xf32>, vector<2x96xf32> -> vector<2x96xf32>
    %451 = arith.addf %450, %31 : vector<2x96xf32>
    %452 = vector.extract_strided_slice %448 {offsets = [0, 0], sizes = [2, 32], strides = [1, 1]} : vector<2x96xf32> to vector<2x32xf32>
    %453 = vector.extract_strided_slice %451 {offsets = [0, 0], sizes = [2, 32], strides = [1, 1]} : vector<2x96xf32> to vector<2x32xf32>
    %454 = arith.addf %452, %453 : vector<2x32xf32>
    %455 = arith.negf %454 : vector<2x32xf32>
    %456 = math.exp %455 : vector<2x32xf32>
    %cst_101 = arith.constant 1.000000e+00 : f32
    %457 = vector.broadcast %cst_101 : f32 to vector<2x32xf32>
    %458 = arith.addf %457, %456 : vector<2x32xf32>
    %459 = arith.divf %457, %458 : vector<2x32xf32>
    %460 = vector.extract_strided_slice %448 {offsets = [0, 32], sizes = [2, 32], strides = [1, 1]} : vector<2x96xf32> to vector<2x32xf32>
    %461 = vector.extract_strided_slice %451 {offsets = [0, 32], sizes = [2, 32], strides = [1, 1]} : vector<2x96xf32> to vector<2x32xf32>
    %462 = arith.addf %460, %461 : vector<2x32xf32>
    %463 = arith.negf %462 : vector<2x32xf32>
    %464 = math.exp %463 : vector<2x32xf32>
    %cst_102 = arith.constant 1.000000e+00 : f32
    %465 = vector.broadcast %cst_102 : f32 to vector<2x32xf32>
    %466 = arith.addf %465, %464 : vector<2x32xf32>
    %467 = arith.divf %465, %466 : vector<2x32xf32>
    %468 = vector.extract_strided_slice %448 {offsets = [0, 64], sizes = [2, 32], strides = [1, 1]} : vector<2x96xf32> to vector<2x32xf32>
    %469 = vector.extract_strided_slice %451 {offsets = [0, 64], sizes = [2, 32], strides = [1, 1]} : vector<2x96xf32> to vector<2x32xf32>
    %470 = arith.mulf %459, %469 : vector<2x32xf32>
    %471 = arith.addf %468, %470 : vector<2x32xf32>
    %472 = math.tanh %471 : vector<2x32xf32>
    %cst_103 = arith.constant 1.000000e+00 : f32
    %473 = vector.broadcast %cst_103 : f32 to vector<2x32xf32>
    %474 = arith.subf %473, %467 : vector<2x32xf32>
    %475 = arith.mulf %474, %472 : vector<2x32xf32>
    %476 = arith.mulf %467, %447 : vector<2x32xf32>
    %477 = arith.addf %475, %476 : vector<2x32xf32>
    %478 = vector.broadcast %449 : vector<2x1xf32> to vector<2x32xf32>
    %479 = arith.mulf %478, %477 : vector<2x32xf32>
    %cst_104 = arith.constant 1.000000e+00 : f32
    %480 = vector.broadcast %cst_104 : f32 to vector<2x1xf32>
    %481 = arith.subf %480, %449 : vector<2x1xf32>
    %482 = vector.broadcast %481 : vector<2x1xf32> to vector<2x32xf32>
    %483 = arith.mulf %482, %447 : vector<2x32xf32>
    %484 = arith.addf %479, %483 : vector<2x32xf32>
    %485 = vector.extract_strided_slice %26 {offsets = [6, 0], sizes = [2, 96], strides = [1, 1]} : vector<16x96xf32> to vector<2x96xf32>
    %486 = vector.extract_strided_slice %373 {offsets = [6, 0], sizes = [2, 1], strides = [1, 1]} : vector<16x1xf32> to vector<2x1xf32>
    %cst_105 = arith.constant dense<0.000000e+00> : vector<2x96xf32>
    %487 = tpu.matmul %484, %11, %cst_105 {dimension_numbers = #tpu.dot_dimension_numbers<[1], [0], [0], [1], [0, 0, 1, 1], [], []>} : vector<2x32xf32>, vector<32x96xf32>, vector<2x96xf32> -> vector<2x96xf32>
    %488 = arith.addf %487, %31 : vector<2x96xf32>
    %489 = vector.extract_strided_slice %485 {offsets = [0, 0], sizes = [2, 32], strides = [1, 1]} : vector<2x96xf32> to vector<2x32xf32>
    %490 = vector.extract_strided_slice %488 {offsets = [0, 0], sizes = [2, 32], strides = [1, 1]} : vector<2x96xf32> to vector<2x32xf32>
    %491 = arith.addf %489, %490 : vector<2x32xf32>
    %492 = arith.negf %491 : vector<2x32xf32>
    %493 = math.exp %492 : vector<2x32xf32>
    %cst_106 = arith.constant 1.000000e+00 : f32
    %494 = vector.broadcast %cst_106 : f32 to vector<2x32xf32>
    %495 = arith.addf %494, %493 : vector<2x32xf32>
    %496 = arith.divf %494, %495 : vector<2x32xf32>
    %497 = vector.extract_strided_slice %485 {offsets = [0, 32], sizes = [2, 32], strides = [1, 1]} : vector<2x96xf32> to vector<2x32xf32>
    %498 = vector.extract_strided_slice %488 {offsets = [0, 32], sizes = [2, 32], strides = [1, 1]} : vector<2x96xf32> to vector<2x32xf32>
    %499 = arith.addf %497, %498 : vector<2x32xf32>
    %500 = arith.negf %499 : vector<2x32xf32>
    %501 = math.exp %500 : vector<2x32xf32>
    %cst_107 = arith.constant 1.000000e+00 : f32
    %502 = vector.broadcast %cst_107 : f32 to vector<2x32xf32>
    %503 = arith.addf %502, %501 : vector<2x32xf32>
    %504 = arith.divf %502, %503 : vector<2x32xf32>
    %505 = vector.extract_strided_slice %485 {offsets = [0, 64], sizes = [2, 32], strides = [1, 1]} : vector<2x96xf32> to vector<2x32xf32>
    %506 = vector.extract_strided_slice %488 {offsets = [0, 64], sizes = [2, 32], strides = [1, 1]} : vector<2x96xf32> to vector<2x32xf32>
    %507 = arith.mulf %496, %506 : vector<2x32xf32>
    %508 = arith.addf %505, %507 : vector<2x32xf32>
    %509 = math.tanh %508 : vector<2x32xf32>
    %cst_108 = arith.constant 1.000000e+00 : f32
    %510 = vector.broadcast %cst_108 : f32 to vector<2x32xf32>
    %511 = arith.subf %510, %504 : vector<2x32xf32>
    %512 = arith.mulf %511, %509 : vector<2x32xf32>
    %513 = arith.mulf %504, %484 : vector<2x32xf32>
    %514 = arith.addf %512, %513 : vector<2x32xf32>
    %515 = vector.broadcast %486 : vector<2x1xf32> to vector<2x32xf32>
    %516 = arith.mulf %515, %514 : vector<2x32xf32>
    %cst_109 = arith.constant 1.000000e+00 : f32
    %517 = vector.broadcast %cst_109 : f32 to vector<2x1xf32>
    %518 = arith.subf %517, %486 : vector<2x1xf32>
    %519 = vector.broadcast %518 : vector<2x1xf32> to vector<2x32xf32>
    %520 = arith.mulf %519, %484 : vector<2x32xf32>
    %521 = arith.addf %516, %520 : vector<2x32xf32>
    %522 = vector.extract_strided_slice %26 {offsets = [8, 0], sizes = [2, 96], strides = [1, 1]} : vector<16x96xf32> to vector<2x96xf32>
    %523 = vector.extract_strided_slice %373 {offsets = [8, 0], sizes = [2, 1], strides = [1, 1]} : vector<16x1xf32> to vector<2x1xf32>
    %cst_110 = arith.constant dense<0.000000e+00> : vector<2x96xf32>
    %524 = tpu.matmul %521, %11, %cst_110 {dimension_numbers = #tpu.dot_dimension_numbers<[1], [0], [0], [1], [0, 0, 1, 1], [], []>} : vector<2x32xf32>, vector<32x96xf32>, vector<2x96xf32> -> vector<2x96xf32>
    %525 = arith.addf %524, %31 : vector<2x96xf32>
    %526 = vector.extract_strided_slice %522 {offsets = [0, 0], sizes = [2, 32], strides = [1, 1]} : vector<2x96xf32> to vector<2x32xf32>
    %527 = vector.extract_strided_slice %525 {offsets = [0, 0], sizes = [2, 32], strides = [1, 1]} : vector<2x96xf32> to vector<2x32xf32>
    %528 = arith.addf %526, %527 : vector<2x32xf32>
    %529 = arith.negf %528 : vector<2x32xf32>
    %530 = math.exp %529 : vector<2x32xf32>
    %cst_111 = arith.constant 1.000000e+00 : f32
    %531 = vector.broadcast %cst_111 : f32 to vector<2x32xf32>
    %532 = arith.addf %531, %530 : vector<2x32xf32>
    %533 = arith.divf %531, %532 : vector<2x32xf32>
    %534 = vector.extract_strided_slice %522 {offsets = [0, 32], sizes = [2, 32], strides = [1, 1]} : vector<2x96xf32> to vector<2x32xf32>
    %535 = vector.extract_strided_slice %525 {offsets = [0, 32], sizes = [2, 32], strides = [1, 1]} : vector<2x96xf32> to vector<2x32xf32>
    %536 = arith.addf %534, %535 : vector<2x32xf32>
    %537 = arith.negf %536 : vector<2x32xf32>
    %538 = math.exp %537 : vector<2x32xf32>
    %cst_112 = arith.constant 1.000000e+00 : f32
    %539 = vector.broadcast %cst_112 : f32 to vector<2x32xf32>
    %540 = arith.addf %539, %538 : vector<2x32xf32>
    %541 = arith.divf %539, %540 : vector<2x32xf32>
    %542 = vector.extract_strided_slice %522 {offsets = [0, 64], sizes = [2, 32], strides = [1, 1]} : vector<2x96xf32> to vector<2x32xf32>
    %543 = vector.extract_strided_slice %525 {offsets = [0, 64], sizes = [2, 32], strides = [1, 1]} : vector<2x96xf32> to vector<2x32xf32>
    %544 = arith.mulf %533, %543 : vector<2x32xf32>
    %545 = arith.addf %542, %544 : vector<2x32xf32>
    %546 = math.tanh %545 : vector<2x32xf32>
    %cst_113 = arith.constant 1.000000e+00 : f32
    %547 = vector.broadcast %cst_113 : f32 to vector<2x32xf32>
    %548 = arith.subf %547, %541 : vector<2x32xf32>
    %549 = arith.mulf %548, %546 : vector<2x32xf32>
    %550 = arith.mulf %541, %521 : vector<2x32xf32>
    %551 = arith.addf %549, %550 : vector<2x32xf32>
    %552 = vector.broadcast %523 : vector<2x1xf32> to vector<2x32xf32>
    %553 = arith.mulf %552, %551 : vector<2x32xf32>
    %cst_114 = arith.constant 1.000000e+00 : f32
    %554 = vector.broadcast %cst_114 : f32 to vector<2x1xf32>
    %555 = arith.subf %554, %523 : vector<2x1xf32>
    %556 = vector.broadcast %555 : vector<2x1xf32> to vector<2x32xf32>
    %557 = arith.mulf %556, %521 : vector<2x32xf32>
    %558 = arith.addf %553, %557 : vector<2x32xf32>
    %559 = vector.extract_strided_slice %26 {offsets = [10, 0], sizes = [2, 96], strides = [1, 1]} : vector<16x96xf32> to vector<2x96xf32>
    %560 = vector.extract_strided_slice %373 {offsets = [10, 0], sizes = [2, 1], strides = [1, 1]} : vector<16x1xf32> to vector<2x1xf32>
    %cst_115 = arith.constant dense<0.000000e+00> : vector<2x96xf32>
    %561 = tpu.matmul %558, %11, %cst_115 {dimension_numbers = #tpu.dot_dimension_numbers<[1], [0], [0], [1], [0, 0, 1, 1], [], []>} : vector<2x32xf32>, vector<32x96xf32>, vector<2x96xf32> -> vector<2x96xf32>
    %562 = arith.addf %561, %31 : vector<2x96xf32>
    %563 = vector.extract_strided_slice %559 {offsets = [0, 0], sizes = [2, 32], strides = [1, 1]} : vector<2x96xf32> to vector<2x32xf32>
    %564 = vector.extract_strided_slice %562 {offsets = [0, 0], sizes = [2, 32], strides = [1, 1]} : vector<2x96xf32> to vector<2x32xf32>
    %565 = arith.addf %563, %564 : vector<2x32xf32>
    %566 = arith.negf %565 : vector<2x32xf32>
    %567 = math.exp %566 : vector<2x32xf32>
    %cst_116 = arith.constant 1.000000e+00 : f32
    %568 = vector.broadcast %cst_116 : f32 to vector<2x32xf32>
    %569 = arith.addf %568, %567 : vector<2x32xf32>
    %570 = arith.divf %568, %569 : vector<2x32xf32>
    %571 = vector.extract_strided_slice %559 {offsets = [0, 32], sizes = [2, 32], strides = [1, 1]} : vector<2x96xf32> to vector<2x32xf32>
    %572 = vector.extract_strided_slice %562 {offsets = [0, 32], sizes = [2, 32], strides = [1, 1]} : vector<2x96xf32> to vector<2x32xf32>
    %573 = arith.addf %571, %572 : vector<2x32xf32>
    %574 = arith.negf %573 : vector<2x32xf32>
    %575 = math.exp %574 : vector<2x32xf32>
    %cst_117 = arith.constant 1.000000e+00 : f32
    %576 = vector.broadcast %cst_117 : f32 to vector<2x32xf32>
    %577 = arith.addf %576, %575 : vector<2x32xf32>
    %578 = arith.divf %576, %577 : vector<2x32xf32>
    %579 = vector.extract_strided_slice %559 {offsets = [0, 64], sizes = [2, 32], strides = [1, 1]} : vector<2x96xf32> to vector<2x32xf32>
    %580 = vector.extract_strided_slice %562 {offsets = [0, 64], sizes = [2, 32], strides = [1, 1]} : vector<2x96xf32> to vector<2x32xf32>
    %581 = arith.mulf %570, %580 : vector<2x32xf32>
    %582 = arith.addf %579, %581 : vector<2x32xf32>
    %583 = math.tanh %582 : vector<2x32xf32>
    %cst_118 = arith.constant 1.000000e+00 : f32
    %584 = vector.broadcast %cst_118 : f32 to vector<2x32xf32>
    %585 = arith.subf %584, %578 : vector<2x32xf32>
    %586 = arith.mulf %585, %583 : vector<2x32xf32>
    %587 = arith.mulf %578, %558 : vector<2x32xf32>
    %588 = arith.addf %586, %587 : vector<2x32xf32>
    %589 = vector.broadcast %560 : vector<2x1xf32> to vector<2x32xf32>
    %590 = arith.mulf %589, %588 : vector<2x32xf32>
    %cst_119 = arith.constant 1.000000e+00 : f32
    %591 = vector.broadcast %cst_119 : f32 to vector<2x1xf32>
    %592 = arith.subf %591, %560 : vector<2x1xf32>
    %593 = vector.broadcast %592 : vector<2x1xf32> to vector<2x32xf32>
    %594 = arith.mulf %593, %558 : vector<2x32xf32>
    %595 = arith.addf %590, %594 : vector<2x32xf32>
    %596 = vector.extract_strided_slice %26 {offsets = [12, 0], sizes = [2, 96], strides = [1, 1]} : vector<16x96xf32> to vector<2x96xf32>
    %597 = vector.extract_strided_slice %373 {offsets = [12, 0], sizes = [2, 1], strides = [1, 1]} : vector<16x1xf32> to vector<2x1xf32>
    %cst_120 = arith.constant dense<0.000000e+00> : vector<2x96xf32>
    %598 = tpu.matmul %595, %11, %cst_120 {dimension_numbers = #tpu.dot_dimension_numbers<[1], [0], [0], [1], [0, 0, 1, 1], [], []>} : vector<2x32xf32>, vector<32x96xf32>, vector<2x96xf32> -> vector<2x96xf32>
    %599 = arith.addf %598, %31 : vector<2x96xf32>
    %600 = vector.extract_strided_slice %596 {offsets = [0, 0], sizes = [2, 32], strides = [1, 1]} : vector<2x96xf32> to vector<2x32xf32>
    %601 = vector.extract_strided_slice %599 {offsets = [0, 0], sizes = [2, 32], strides = [1, 1]} : vector<2x96xf32> to vector<2x32xf32>
    %602 = arith.addf %600, %601 : vector<2x32xf32>
    %603 = arith.negf %602 : vector<2x32xf32>
    %604 = math.exp %603 : vector<2x32xf32>
    %cst_121 = arith.constant 1.000000e+00 : f32
    %605 = vector.broadcast %cst_121 : f32 to vector<2x32xf32>
    %606 = arith.addf %605, %604 : vector<2x32xf32>
    %607 = arith.divf %605, %606 : vector<2x32xf32>
    %608 = vector.extract_strided_slice %596 {offsets = [0, 32], sizes = [2, 32], strides = [1, 1]} : vector<2x96xf32> to vector<2x32xf32>
    %609 = vector.extract_strided_slice %599 {offsets = [0, 32], sizes = [2, 32], strides = [1, 1]} : vector<2x96xf32> to vector<2x32xf32>
    %610 = arith.addf %608, %609 : vector<2x32xf32>
    %611 = arith.negf %610 : vector<2x32xf32>
    %612 = math.exp %611 : vector<2x32xf32>
    %cst_122 = arith.constant 1.000000e+00 : f32
    %613 = vector.broadcast %cst_122 : f32 to vector<2x32xf32>
    %614 = arith.addf %613, %612 : vector<2x32xf32>
    %615 = arith.divf %613, %614 : vector<2x32xf32>
    %616 = vector.extract_strided_slice %596 {offsets = [0, 64], sizes = [2, 32], strides = [1, 1]} : vector<2x96xf32> to vector<2x32xf32>
    %617 = vector.extract_strided_slice %599 {offsets = [0, 64], sizes = [2, 32], strides = [1, 1]} : vector<2x96xf32> to vector<2x32xf32>
    %618 = arith.mulf %607, %617 : vector<2x32xf32>
    %619 = arith.addf %616, %618 : vector<2x32xf32>
    %620 = math.tanh %619 : vector<2x32xf32>
    %cst_123 = arith.constant 1.000000e+00 : f32
    %621 = vector.broadcast %cst_123 : f32 to vector<2x32xf32>
    %622 = arith.subf %621, %615 : vector<2x32xf32>
    %623 = arith.mulf %622, %620 : vector<2x32xf32>
    %624 = arith.mulf %615, %595 : vector<2x32xf32>
    %625 = arith.addf %623, %624 : vector<2x32xf32>
    %626 = vector.broadcast %597 : vector<2x1xf32> to vector<2x32xf32>
    %627 = arith.mulf %626, %625 : vector<2x32xf32>
    %cst_124 = arith.constant 1.000000e+00 : f32
    %628 = vector.broadcast %cst_124 : f32 to vector<2x1xf32>
    %629 = arith.subf %628, %597 : vector<2x1xf32>
    %630 = vector.broadcast %629 : vector<2x1xf32> to vector<2x32xf32>
    %631 = arith.mulf %630, %595 : vector<2x32xf32>
    %632 = arith.addf %627, %631 : vector<2x32xf32>
    %633 = vector.extract_strided_slice %26 {offsets = [14, 0], sizes = [2, 96], strides = [1, 1]} : vector<16x96xf32> to vector<2x96xf32>
    %634 = vector.extract_strided_slice %373 {offsets = [14, 0], sizes = [2, 1], strides = [1, 1]} : vector<16x1xf32> to vector<2x1xf32>
    %cst_125 = arith.constant dense<0.000000e+00> : vector<2x96xf32>
    %635 = tpu.matmul %632, %11, %cst_125 {dimension_numbers = #tpu.dot_dimension_numbers<[1], [0], [0], [1], [0, 0, 1, 1], [], []>} : vector<2x32xf32>, vector<32x96xf32>, vector<2x96xf32> -> vector<2x96xf32>
    %636 = arith.addf %635, %31 : vector<2x96xf32>
    %637 = vector.extract_strided_slice %633 {offsets = [0, 0], sizes = [2, 32], strides = [1, 1]} : vector<2x96xf32> to vector<2x32xf32>
    %638 = vector.extract_strided_slice %636 {offsets = [0, 0], sizes = [2, 32], strides = [1, 1]} : vector<2x96xf32> to vector<2x32xf32>
    %639 = arith.addf %637, %638 : vector<2x32xf32>
    %640 = arith.negf %639 : vector<2x32xf32>
    %641 = math.exp %640 : vector<2x32xf32>
    %cst_126 = arith.constant 1.000000e+00 : f32
    %642 = vector.broadcast %cst_126 : f32 to vector<2x32xf32>
    %643 = arith.addf %642, %641 : vector<2x32xf32>
    %644 = arith.divf %642, %643 : vector<2x32xf32>
    %645 = vector.extract_strided_slice %633 {offsets = [0, 32], sizes = [2, 32], strides = [1, 1]} : vector<2x96xf32> to vector<2x32xf32>
    %646 = vector.extract_strided_slice %636 {offsets = [0, 32], sizes = [2, 32], strides = [1, 1]} : vector<2x96xf32> to vector<2x32xf32>
    %647 = arith.addf %645, %646 : vector<2x32xf32>
    %648 = arith.negf %647 : vector<2x32xf32>
    %649 = math.exp %648 : vector<2x32xf32>
    %cst_127 = arith.constant 1.000000e+00 : f32
    %650 = vector.broadcast %cst_127 : f32 to vector<2x32xf32>
    %651 = arith.addf %650, %649 : vector<2x32xf32>
    %652 = arith.divf %650, %651 : vector<2x32xf32>
    %653 = vector.extract_strided_slice %633 {offsets = [0, 64], sizes = [2, 32], strides = [1, 1]} : vector<2x96xf32> to vector<2x32xf32>
    %654 = vector.extract_strided_slice %636 {offsets = [0, 64], sizes = [2, 32], strides = [1, 1]} : vector<2x96xf32> to vector<2x32xf32>
    %655 = arith.mulf %644, %654 : vector<2x32xf32>
    %656 = arith.addf %653, %655 : vector<2x32xf32>
    %657 = math.tanh %656 : vector<2x32xf32>
    %cst_128 = arith.constant 1.000000e+00 : f32
    %658 = vector.broadcast %cst_128 : f32 to vector<2x32xf32>
    %659 = arith.subf %658, %652 : vector<2x32xf32>
    %660 = arith.mulf %659, %657 : vector<2x32xf32>
    %661 = arith.mulf %652, %632 : vector<2x32xf32>
    %662 = arith.addf %660, %661 : vector<2x32xf32>
    %663 = vector.broadcast %634 : vector<2x1xf32> to vector<2x32xf32>
    %664 = arith.mulf %663, %662 : vector<2x32xf32>
    %cst_129 = arith.constant 1.000000e+00 : f32
    %665 = vector.broadcast %cst_129 : f32 to vector<2x1xf32>
    %666 = arith.subf %665, %634 : vector<2x1xf32>
    %667 = vector.broadcast %666 : vector<2x1xf32> to vector<2x32xf32>
    %668 = arith.mulf %667, %632 : vector<2x32xf32>
    %669 = arith.addf %664, %668 : vector<2x32xf32>
    %cst_130 = arith.constant dense<0.000000e+00> : vector<2x32xf32>
    %670 = tpu.matmul %354, %13, %cst_130 {dimension_numbers = #tpu.dot_dimension_numbers<[1], [0], [0], [1], [0, 0, 1, 1], [], []>} : vector<2x32xf32>, vector<32x32xf32>, vector<2x32xf32> -> vector<2x32xf32>
    %cst_131 = arith.constant dense<0.000000e+00> : vector<2x32xf32>
    %671 = tpu.matmul %669, %14, %cst_131 {dimension_numbers = #tpu.dot_dimension_numbers<[1], [0], [0], [1], [0, 0, 1, 1], [], []>} : vector<2x32xf32>, vector<32x32xf32>, vector<2x32xf32> -> vector<2x32xf32>
    %672 = arith.addf %670, %671 : vector<2x32xf32>
    %673 = arith.addf %672, %29 : vector<2x32xf32>
    %cst_132 = arith.constant 0.000000e+00 : f32
    %674 = vector.broadcast %cst_132 : f32 to vector<2x32xf32>
    %675 = arith.maximumf %673, %674 : vector<2x32xf32>
    %cst_133 = arith.constant dense<0.000000e+00> : vector<16x32xf32>
    %676 = tpu.matmul %2, %675, %cst_133 {dimension_numbers = #tpu.dot_dimension_numbers<[1], [0], [0], [1], [0, 0, 1, 1], [], []>} : vector<16x2xf32>, vector<2x32xf32>, vector<16x32xf32> -> vector<16x32xf32>
    %677 = arith.mulf %0, %676 : vector<16x32xf32>
    %678 = arith.subf %0, %676 : vector<16x32xf32>
    %679 = math.absf %678 : vector<16x32xf32>
    %680 = tpu.concatenate %677, %679 in 1 : vector<16x32xf32>, vector<16x32xf32> -> vector<16x64xf32>
    %cst_134 = arith.constant dense<0.000000e+00> : vector<16x16xf32>
    %681 = tpu.matmul %680, %5, %cst_134 {dimension_numbers = #tpu.dot_dimension_numbers<[1], [0], [0], [1], [0, 0, 1, 1], [], []>} : vector<16x64xf32>, vector<64x16xf32>, vector<16x16xf32> -> vector<16x16xf32>
    %682 = arith.addf %23, %681 : vector<16x16xf32>
    %683 = math.tanh %682 : vector<16x16xf32>
    %684 = vector.broadcast %7 : vector<1x16xf32> to vector<16x16xf32>
    %685 = arith.mulf %683, %684 : vector<16x16xf32>
    %cst_135 = arith.constant dense<0.000000e+00> : vector<16xf32>
    %686 = vector.multi_reduction <add>, %685, %cst_135 [1] : vector<16x16xf32> to vector<16xf32>
    %687 = vector.shape_cast %686 : vector<16xf32> to vector<16x1xf32>
    %688 = vector.broadcast %8 : vector<1x1xf32> to vector<16x1xf32>
    %689 = arith.addf %687, %688 : vector<16x1xf32>
    %690 = arith.negf %689 : vector<16x1xf32>
    %691 = math.exp %690 : vector<16x1xf32>
    %cst_136 = arith.constant 1.000000e+00 : f32
    %692 = vector.broadcast %cst_136 : f32 to vector<16x1xf32>
    %693 = arith.addf %692, %691 : vector<16x1xf32>
    %694 = arith.divf %692, %693 : vector<16x1xf32>
    %695 = vector.extract_strided_slice %26 {offsets = [0, 0], sizes = [2, 96], strides = [1, 1]} : vector<16x96xf32> to vector<2x96xf32>
    %696 = vector.extract_strided_slice %694 {offsets = [0, 0], sizes = [2, 1], strides = [1, 1]} : vector<16x1xf32> to vector<2x1xf32>
    %cst_137 = arith.constant dense<0.000000e+00> : vector<2x96xf32>
    %697 = tpu.matmul %32, %11, %cst_137 {dimension_numbers = #tpu.dot_dimension_numbers<[1], [0], [0], [1], [0, 0, 1, 1], [], []>} : vector<2x32xf32>, vector<32x96xf32>, vector<2x96xf32> -> vector<2x96xf32>
    %698 = arith.addf %697, %31 : vector<2x96xf32>
    %699 = vector.extract_strided_slice %695 {offsets = [0, 0], sizes = [2, 32], strides = [1, 1]} : vector<2x96xf32> to vector<2x32xf32>
    %700 = vector.extract_strided_slice %698 {offsets = [0, 0], sizes = [2, 32], strides = [1, 1]} : vector<2x96xf32> to vector<2x32xf32>
    %701 = arith.addf %699, %700 : vector<2x32xf32>
    %702 = arith.negf %701 : vector<2x32xf32>
    %703 = math.exp %702 : vector<2x32xf32>
    %cst_138 = arith.constant 1.000000e+00 : f32
    %704 = vector.broadcast %cst_138 : f32 to vector<2x32xf32>
    %705 = arith.addf %704, %703 : vector<2x32xf32>
    %706 = arith.divf %704, %705 : vector<2x32xf32>
    %707 = vector.extract_strided_slice %695 {offsets = [0, 32], sizes = [2, 32], strides = [1, 1]} : vector<2x96xf32> to vector<2x32xf32>
    %708 = vector.extract_strided_slice %698 {offsets = [0, 32], sizes = [2, 32], strides = [1, 1]} : vector<2x96xf32> to vector<2x32xf32>
    %709 = arith.addf %707, %708 : vector<2x32xf32>
    %710 = arith.negf %709 : vector<2x32xf32>
    %711 = math.exp %710 : vector<2x32xf32>
    %cst_139 = arith.constant 1.000000e+00 : f32
    %712 = vector.broadcast %cst_139 : f32 to vector<2x32xf32>
    %713 = arith.addf %712, %711 : vector<2x32xf32>
    %714 = arith.divf %712, %713 : vector<2x32xf32>
    %715 = vector.extract_strided_slice %695 {offsets = [0, 64], sizes = [2, 32], strides = [1, 1]} : vector<2x96xf32> to vector<2x32xf32>
    %716 = vector.extract_strided_slice %698 {offsets = [0, 64], sizes = [2, 32], strides = [1, 1]} : vector<2x96xf32> to vector<2x32xf32>
    %717 = arith.mulf %706, %716 : vector<2x32xf32>
    %718 = arith.addf %715, %717 : vector<2x32xf32>
    %719 = math.tanh %718 : vector<2x32xf32>
    %cst_140 = arith.constant 1.000000e+00 : f32
    %720 = vector.broadcast %cst_140 : f32 to vector<2x32xf32>
    %721 = arith.subf %720, %714 : vector<2x32xf32>
    %722 = arith.mulf %721, %719 : vector<2x32xf32>
    %723 = arith.mulf %714, %32 : vector<2x32xf32>
    %724 = arith.addf %722, %723 : vector<2x32xf32>
    %725 = vector.broadcast %696 : vector<2x1xf32> to vector<2x32xf32>
    %726 = arith.mulf %725, %724 : vector<2x32xf32>
    %cst_141 = arith.constant 1.000000e+00 : f32
    %727 = vector.broadcast %cst_141 : f32 to vector<2x1xf32>
    %728 = arith.subf %727, %696 : vector<2x1xf32>
    %729 = vector.broadcast %728 : vector<2x1xf32> to vector<2x32xf32>
    %730 = arith.mulf %729, %32 : vector<2x32xf32>
    %731 = arith.addf %726, %730 : vector<2x32xf32>
    %732 = vector.extract_strided_slice %26 {offsets = [2, 0], sizes = [2, 96], strides = [1, 1]} : vector<16x96xf32> to vector<2x96xf32>
    %733 = vector.extract_strided_slice %694 {offsets = [2, 0], sizes = [2, 1], strides = [1, 1]} : vector<16x1xf32> to vector<2x1xf32>
    %cst_142 = arith.constant dense<0.000000e+00> : vector<2x96xf32>
    %734 = tpu.matmul %731, %11, %cst_142 {dimension_numbers = #tpu.dot_dimension_numbers<[1], [0], [0], [1], [0, 0, 1, 1], [], []>} : vector<2x32xf32>, vector<32x96xf32>, vector<2x96xf32> -> vector<2x96xf32>
    %735 = arith.addf %734, %31 : vector<2x96xf32>
    %736 = vector.extract_strided_slice %732 {offsets = [0, 0], sizes = [2, 32], strides = [1, 1]} : vector<2x96xf32> to vector<2x32xf32>
    %737 = vector.extract_strided_slice %735 {offsets = [0, 0], sizes = [2, 32], strides = [1, 1]} : vector<2x96xf32> to vector<2x32xf32>
    %738 = arith.addf %736, %737 : vector<2x32xf32>
    %739 = arith.negf %738 : vector<2x32xf32>
    %740 = math.exp %739 : vector<2x32xf32>
    %cst_143 = arith.constant 1.000000e+00 : f32
    %741 = vector.broadcast %cst_143 : f32 to vector<2x32xf32>
    %742 = arith.addf %741, %740 : vector<2x32xf32>
    %743 = arith.divf %741, %742 : vector<2x32xf32>
    %744 = vector.extract_strided_slice %732 {offsets = [0, 32], sizes = [2, 32], strides = [1, 1]} : vector<2x96xf32> to vector<2x32xf32>
    %745 = vector.extract_strided_slice %735 {offsets = [0, 32], sizes = [2, 32], strides = [1, 1]} : vector<2x96xf32> to vector<2x32xf32>
    %746 = arith.addf %744, %745 : vector<2x32xf32>
    %747 = arith.negf %746 : vector<2x32xf32>
    %748 = math.exp %747 : vector<2x32xf32>
    %cst_144 = arith.constant 1.000000e+00 : f32
    %749 = vector.broadcast %cst_144 : f32 to vector<2x32xf32>
    %750 = arith.addf %749, %748 : vector<2x32xf32>
    %751 = arith.divf %749, %750 : vector<2x32xf32>
    %752 = vector.extract_strided_slice %732 {offsets = [0, 64], sizes = [2, 32], strides = [1, 1]} : vector<2x96xf32> to vector<2x32xf32>
    %753 = vector.extract_strided_slice %735 {offsets = [0, 64], sizes = [2, 32], strides = [1, 1]} : vector<2x96xf32> to vector<2x32xf32>
    %754 = arith.mulf %743, %753 : vector<2x32xf32>
    %755 = arith.addf %752, %754 : vector<2x32xf32>
    %756 = math.tanh %755 : vector<2x32xf32>
    %cst_145 = arith.constant 1.000000e+00 : f32
    %757 = vector.broadcast %cst_145 : f32 to vector<2x32xf32>
    %758 = arith.subf %757, %751 : vector<2x32xf32>
    %759 = arith.mulf %758, %756 : vector<2x32xf32>
    %760 = arith.mulf %751, %731 : vector<2x32xf32>
    %761 = arith.addf %759, %760 : vector<2x32xf32>
    %762 = vector.broadcast %733 : vector<2x1xf32> to vector<2x32xf32>
    %763 = arith.mulf %762, %761 : vector<2x32xf32>
    %cst_146 = arith.constant 1.000000e+00 : f32
    %764 = vector.broadcast %cst_146 : f32 to vector<2x1xf32>
    %765 = arith.subf %764, %733 : vector<2x1xf32>
    %766 = vector.broadcast %765 : vector<2x1xf32> to vector<2x32xf32>
    %767 = arith.mulf %766, %731 : vector<2x32xf32>
    %768 = arith.addf %763, %767 : vector<2x32xf32>
    %769 = vector.extract_strided_slice %26 {offsets = [4, 0], sizes = [2, 96], strides = [1, 1]} : vector<16x96xf32> to vector<2x96xf32>
    %770 = vector.extract_strided_slice %694 {offsets = [4, 0], sizes = [2, 1], strides = [1, 1]} : vector<16x1xf32> to vector<2x1xf32>
    %cst_147 = arith.constant dense<0.000000e+00> : vector<2x96xf32>
    %771 = tpu.matmul %768, %11, %cst_147 {dimension_numbers = #tpu.dot_dimension_numbers<[1], [0], [0], [1], [0, 0, 1, 1], [], []>} : vector<2x32xf32>, vector<32x96xf32>, vector<2x96xf32> -> vector<2x96xf32>
    %772 = arith.addf %771, %31 : vector<2x96xf32>
    %773 = vector.extract_strided_slice %769 {offsets = [0, 0], sizes = [2, 32], strides = [1, 1]} : vector<2x96xf32> to vector<2x32xf32>
    %774 = vector.extract_strided_slice %772 {offsets = [0, 0], sizes = [2, 32], strides = [1, 1]} : vector<2x96xf32> to vector<2x32xf32>
    %775 = arith.addf %773, %774 : vector<2x32xf32>
    %776 = arith.negf %775 : vector<2x32xf32>
    %777 = math.exp %776 : vector<2x32xf32>
    %cst_148 = arith.constant 1.000000e+00 : f32
    %778 = vector.broadcast %cst_148 : f32 to vector<2x32xf32>
    %779 = arith.addf %778, %777 : vector<2x32xf32>
    %780 = arith.divf %778, %779 : vector<2x32xf32>
    %781 = vector.extract_strided_slice %769 {offsets = [0, 32], sizes = [2, 32], strides = [1, 1]} : vector<2x96xf32> to vector<2x32xf32>
    %782 = vector.extract_strided_slice %772 {offsets = [0, 32], sizes = [2, 32], strides = [1, 1]} : vector<2x96xf32> to vector<2x32xf32>
    %783 = arith.addf %781, %782 : vector<2x32xf32>
    %784 = arith.negf %783 : vector<2x32xf32>
    %785 = math.exp %784 : vector<2x32xf32>
    %cst_149 = arith.constant 1.000000e+00 : f32
    %786 = vector.broadcast %cst_149 : f32 to vector<2x32xf32>
    %787 = arith.addf %786, %785 : vector<2x32xf32>
    %788 = arith.divf %786, %787 : vector<2x32xf32>
    %789 = vector.extract_strided_slice %769 {offsets = [0, 64], sizes = [2, 32], strides = [1, 1]} : vector<2x96xf32> to vector<2x32xf32>
    %790 = vector.extract_strided_slice %772 {offsets = [0, 64], sizes = [2, 32], strides = [1, 1]} : vector<2x96xf32> to vector<2x32xf32>
    %791 = arith.mulf %780, %790 : vector<2x32xf32>
    %792 = arith.addf %789, %791 : vector<2x32xf32>
    %793 = math.tanh %792 : vector<2x32xf32>
    %cst_150 = arith.constant 1.000000e+00 : f32
    %794 = vector.broadcast %cst_150 : f32 to vector<2x32xf32>
    %795 = arith.subf %794, %788 : vector<2x32xf32>
    %796 = arith.mulf %795, %793 : vector<2x32xf32>
    %797 = arith.mulf %788, %768 : vector<2x32xf32>
    %798 = arith.addf %796, %797 : vector<2x32xf32>
    %799 = vector.broadcast %770 : vector<2x1xf32> to vector<2x32xf32>
    %800 = arith.mulf %799, %798 : vector<2x32xf32>
    %cst_151 = arith.constant 1.000000e+00 : f32
    %801 = vector.broadcast %cst_151 : f32 to vector<2x1xf32>
    %802 = arith.subf %801, %770 : vector<2x1xf32>
    %803 = vector.broadcast %802 : vector<2x1xf32> to vector<2x32xf32>
    %804 = arith.mulf %803, %768 : vector<2x32xf32>
    %805 = arith.addf %800, %804 : vector<2x32xf32>
    %806 = vector.extract_strided_slice %26 {offsets = [6, 0], sizes = [2, 96], strides = [1, 1]} : vector<16x96xf32> to vector<2x96xf32>
    %807 = vector.extract_strided_slice %694 {offsets = [6, 0], sizes = [2, 1], strides = [1, 1]} : vector<16x1xf32> to vector<2x1xf32>
    %cst_152 = arith.constant dense<0.000000e+00> : vector<2x96xf32>
    %808 = tpu.matmul %805, %11, %cst_152 {dimension_numbers = #tpu.dot_dimension_numbers<[1], [0], [0], [1], [0, 0, 1, 1], [], []>} : vector<2x32xf32>, vector<32x96xf32>, vector<2x96xf32> -> vector<2x96xf32>
    %809 = arith.addf %808, %31 : vector<2x96xf32>
    %810 = vector.extract_strided_slice %806 {offsets = [0, 0], sizes = [2, 32], strides = [1, 1]} : vector<2x96xf32> to vector<2x32xf32>
    %811 = vector.extract_strided_slice %809 {offsets = [0, 0], sizes = [2, 32], strides = [1, 1]} : vector<2x96xf32> to vector<2x32xf32>
    %812 = arith.addf %810, %811 : vector<2x32xf32>
    %813 = arith.negf %812 : vector<2x32xf32>
    %814 = math.exp %813 : vector<2x32xf32>
    %cst_153 = arith.constant 1.000000e+00 : f32
    %815 = vector.broadcast %cst_153 : f32 to vector<2x32xf32>
    %816 = arith.addf %815, %814 : vector<2x32xf32>
    %817 = arith.divf %815, %816 : vector<2x32xf32>
    %818 = vector.extract_strided_slice %806 {offsets = [0, 32], sizes = [2, 32], strides = [1, 1]} : vector<2x96xf32> to vector<2x32xf32>
    %819 = vector.extract_strided_slice %809 {offsets = [0, 32], sizes = [2, 32], strides = [1, 1]} : vector<2x96xf32> to vector<2x32xf32>
    %820 = arith.addf %818, %819 : vector<2x32xf32>
    %821 = arith.negf %820 : vector<2x32xf32>
    %822 = math.exp %821 : vector<2x32xf32>
    %cst_154 = arith.constant 1.000000e+00 : f32
    %823 = vector.broadcast %cst_154 : f32 to vector<2x32xf32>
    %824 = arith.addf %823, %822 : vector<2x32xf32>
    %825 = arith.divf %823, %824 : vector<2x32xf32>
    %826 = vector.extract_strided_slice %806 {offsets = [0, 64], sizes = [2, 32], strides = [1, 1]} : vector<2x96xf32> to vector<2x32xf32>
    %827 = vector.extract_strided_slice %809 {offsets = [0, 64], sizes = [2, 32], strides = [1, 1]} : vector<2x96xf32> to vector<2x32xf32>
    %828 = arith.mulf %817, %827 : vector<2x32xf32>
    %829 = arith.addf %826, %828 : vector<2x32xf32>
    %830 = math.tanh %829 : vector<2x32xf32>
    %cst_155 = arith.constant 1.000000e+00 : f32
    %831 = vector.broadcast %cst_155 : f32 to vector<2x32xf32>
    %832 = arith.subf %831, %825 : vector<2x32xf32>
    %833 = arith.mulf %832, %830 : vector<2x32xf32>
    %834 = arith.mulf %825, %805 : vector<2x32xf32>
    %835 = arith.addf %833, %834 : vector<2x32xf32>
    %836 = vector.broadcast %807 : vector<2x1xf32> to vector<2x32xf32>
    %837 = arith.mulf %836, %835 : vector<2x32xf32>
    %cst_156 = arith.constant 1.000000e+00 : f32
    %838 = vector.broadcast %cst_156 : f32 to vector<2x1xf32>
    %839 = arith.subf %838, %807 : vector<2x1xf32>
    %840 = vector.broadcast %839 : vector<2x1xf32> to vector<2x32xf32>
    %841 = arith.mulf %840, %805 : vector<2x32xf32>
    %842 = arith.addf %837, %841 : vector<2x32xf32>
    %843 = vector.extract_strided_slice %26 {offsets = [8, 0], sizes = [2, 96], strides = [1, 1]} : vector<16x96xf32> to vector<2x96xf32>
    %844 = vector.extract_strided_slice %694 {offsets = [8, 0], sizes = [2, 1], strides = [1, 1]} : vector<16x1xf32> to vector<2x1xf32>
    %cst_157 = arith.constant dense<0.000000e+00> : vector<2x96xf32>
    %845 = tpu.matmul %842, %11, %cst_157 {dimension_numbers = #tpu.dot_dimension_numbers<[1], [0], [0], [1], [0, 0, 1, 1], [], []>} : vector<2x32xf32>, vector<32x96xf32>, vector<2x96xf32> -> vector<2x96xf32>
    %846 = arith.addf %845, %31 : vector<2x96xf32>
    %847 = vector.extract_strided_slice %843 {offsets = [0, 0], sizes = [2, 32], strides = [1, 1]} : vector<2x96xf32> to vector<2x32xf32>
    %848 = vector.extract_strided_slice %846 {offsets = [0, 0], sizes = [2, 32], strides = [1, 1]} : vector<2x96xf32> to vector<2x32xf32>
    %849 = arith.addf %847, %848 : vector<2x32xf32>
    %850 = arith.negf %849 : vector<2x32xf32>
    %851 = math.exp %850 : vector<2x32xf32>
    %cst_158 = arith.constant 1.000000e+00 : f32
    %852 = vector.broadcast %cst_158 : f32 to vector<2x32xf32>
    %853 = arith.addf %852, %851 : vector<2x32xf32>
    %854 = arith.divf %852, %853 : vector<2x32xf32>
    %855 = vector.extract_strided_slice %843 {offsets = [0, 32], sizes = [2, 32], strides = [1, 1]} : vector<2x96xf32> to vector<2x32xf32>
    %856 = vector.extract_strided_slice %846 {offsets = [0, 32], sizes = [2, 32], strides = [1, 1]} : vector<2x96xf32> to vector<2x32xf32>
    %857 = arith.addf %855, %856 : vector<2x32xf32>
    %858 = arith.negf %857 : vector<2x32xf32>
    %859 = math.exp %858 : vector<2x32xf32>
    %cst_159 = arith.constant 1.000000e+00 : f32
    %860 = vector.broadcast %cst_159 : f32 to vector<2x32xf32>
    %861 = arith.addf %860, %859 : vector<2x32xf32>
    %862 = arith.divf %860, %861 : vector<2x32xf32>
    %863 = vector.extract_strided_slice %843 {offsets = [0, 64], sizes = [2, 32], strides = [1, 1]} : vector<2x96xf32> to vector<2x32xf32>
    %864 = vector.extract_strided_slice %846 {offsets = [0, 64], sizes = [2, 32], strides = [1, 1]} : vector<2x96xf32> to vector<2x32xf32>
    %865 = arith.mulf %854, %864 : vector<2x32xf32>
    %866 = arith.addf %863, %865 : vector<2x32xf32>
    %867 = math.tanh %866 : vector<2x32xf32>
    %cst_160 = arith.constant 1.000000e+00 : f32
    %868 = vector.broadcast %cst_160 : f32 to vector<2x32xf32>
    %869 = arith.subf %868, %862 : vector<2x32xf32>
    %870 = arith.mulf %869, %867 : vector<2x32xf32>
    %871 = arith.mulf %862, %842 : vector<2x32xf32>
    %872 = arith.addf %870, %871 : vector<2x32xf32>
    %873 = vector.broadcast %844 : vector<2x1xf32> to vector<2x32xf32>
    %874 = arith.mulf %873, %872 : vector<2x32xf32>
    %cst_161 = arith.constant 1.000000e+00 : f32
    %875 = vector.broadcast %cst_161 : f32 to vector<2x1xf32>
    %876 = arith.subf %875, %844 : vector<2x1xf32>
    %877 = vector.broadcast %876 : vector<2x1xf32> to vector<2x32xf32>
    %878 = arith.mulf %877, %842 : vector<2x32xf32>
    %879 = arith.addf %874, %878 : vector<2x32xf32>
    %880 = vector.extract_strided_slice %26 {offsets = [10, 0], sizes = [2, 96], strides = [1, 1]} : vector<16x96xf32> to vector<2x96xf32>
    %881 = vector.extract_strided_slice %694 {offsets = [10, 0], sizes = [2, 1], strides = [1, 1]} : vector<16x1xf32> to vector<2x1xf32>
    %cst_162 = arith.constant dense<0.000000e+00> : vector<2x96xf32>
    %882 = tpu.matmul %879, %11, %cst_162 {dimension_numbers = #tpu.dot_dimension_numbers<[1], [0], [0], [1], [0, 0, 1, 1], [], []>} : vector<2x32xf32>, vector<32x96xf32>, vector<2x96xf32> -> vector<2x96xf32>
    %883 = arith.addf %882, %31 : vector<2x96xf32>
    %884 = vector.extract_strided_slice %880 {offsets = [0, 0], sizes = [2, 32], strides = [1, 1]} : vector<2x96xf32> to vector<2x32xf32>
    %885 = vector.extract_strided_slice %883 {offsets = [0, 0], sizes = [2, 32], strides = [1, 1]} : vector<2x96xf32> to vector<2x32xf32>
    %886 = arith.addf %884, %885 : vector<2x32xf32>
    %887 = arith.negf %886 : vector<2x32xf32>
    %888 = math.exp %887 : vector<2x32xf32>
    %cst_163 = arith.constant 1.000000e+00 : f32
    %889 = vector.broadcast %cst_163 : f32 to vector<2x32xf32>
    %890 = arith.addf %889, %888 : vector<2x32xf32>
    %891 = arith.divf %889, %890 : vector<2x32xf32>
    %892 = vector.extract_strided_slice %880 {offsets = [0, 32], sizes = [2, 32], strides = [1, 1]} : vector<2x96xf32> to vector<2x32xf32>
    %893 = vector.extract_strided_slice %883 {offsets = [0, 32], sizes = [2, 32], strides = [1, 1]} : vector<2x96xf32> to vector<2x32xf32>
    %894 = arith.addf %892, %893 : vector<2x32xf32>
    %895 = arith.negf %894 : vector<2x32xf32>
    %896 = math.exp %895 : vector<2x32xf32>
    %cst_164 = arith.constant 1.000000e+00 : f32
    %897 = vector.broadcast %cst_164 : f32 to vector<2x32xf32>
    %898 = arith.addf %897, %896 : vector<2x32xf32>
    %899 = arith.divf %897, %898 : vector<2x32xf32>
    %900 = vector.extract_strided_slice %880 {offsets = [0, 64], sizes = [2, 32], strides = [1, 1]} : vector<2x96xf32> to vector<2x32xf32>
    %901 = vector.extract_strided_slice %883 {offsets = [0, 64], sizes = [2, 32], strides = [1, 1]} : vector<2x96xf32> to vector<2x32xf32>
    %902 = arith.mulf %891, %901 : vector<2x32xf32>
    %903 = arith.addf %900, %902 : vector<2x32xf32>
    %904 = math.tanh %903 : vector<2x32xf32>
    %cst_165 = arith.constant 1.000000e+00 : f32
    %905 = vector.broadcast %cst_165 : f32 to vector<2x32xf32>
    %906 = arith.subf %905, %899 : vector<2x32xf32>
    %907 = arith.mulf %906, %904 : vector<2x32xf32>
    %908 = arith.mulf %899, %879 : vector<2x32xf32>
    %909 = arith.addf %907, %908 : vector<2x32xf32>
    %910 = vector.broadcast %881 : vector<2x1xf32> to vector<2x32xf32>
    %911 = arith.mulf %910, %909 : vector<2x32xf32>
    %cst_166 = arith.constant 1.000000e+00 : f32
    %912 = vector.broadcast %cst_166 : f32 to vector<2x1xf32>
    %913 = arith.subf %912, %881 : vector<2x1xf32>
    %914 = vector.broadcast %913 : vector<2x1xf32> to vector<2x32xf32>
    %915 = arith.mulf %914, %879 : vector<2x32xf32>
    %916 = arith.addf %911, %915 : vector<2x32xf32>
    %917 = vector.extract_strided_slice %26 {offsets = [12, 0], sizes = [2, 96], strides = [1, 1]} : vector<16x96xf32> to vector<2x96xf32>
    %918 = vector.extract_strided_slice %694 {offsets = [12, 0], sizes = [2, 1], strides = [1, 1]} : vector<16x1xf32> to vector<2x1xf32>
    %cst_167 = arith.constant dense<0.000000e+00> : vector<2x96xf32>
    %919 = tpu.matmul %916, %11, %cst_167 {dimension_numbers = #tpu.dot_dimension_numbers<[1], [0], [0], [1], [0, 0, 1, 1], [], []>} : vector<2x32xf32>, vector<32x96xf32>, vector<2x96xf32> -> vector<2x96xf32>
    %920 = arith.addf %919, %31 : vector<2x96xf32>
    %921 = vector.extract_strided_slice %917 {offsets = [0, 0], sizes = [2, 32], strides = [1, 1]} : vector<2x96xf32> to vector<2x32xf32>
    %922 = vector.extract_strided_slice %920 {offsets = [0, 0], sizes = [2, 32], strides = [1, 1]} : vector<2x96xf32> to vector<2x32xf32>
    %923 = arith.addf %921, %922 : vector<2x32xf32>
    %924 = arith.negf %923 : vector<2x32xf32>
    %925 = math.exp %924 : vector<2x32xf32>
    %cst_168 = arith.constant 1.000000e+00 : f32
    %926 = vector.broadcast %cst_168 : f32 to vector<2x32xf32>
    %927 = arith.addf %926, %925 : vector<2x32xf32>
    %928 = arith.divf %926, %927 : vector<2x32xf32>
    %929 = vector.extract_strided_slice %917 {offsets = [0, 32], sizes = [2, 32], strides = [1, 1]} : vector<2x96xf32> to vector<2x32xf32>
    %930 = vector.extract_strided_slice %920 {offsets = [0, 32], sizes = [2, 32], strides = [1, 1]} : vector<2x96xf32> to vector<2x32xf32>
    %931 = arith.addf %929, %930 : vector<2x32xf32>
    %932 = arith.negf %931 : vector<2x32xf32>
    %933 = math.exp %932 : vector<2x32xf32>
    %cst_169 = arith.constant 1.000000e+00 : f32
    %934 = vector.broadcast %cst_169 : f32 to vector<2x32xf32>
    %935 = arith.addf %934, %933 : vector<2x32xf32>
    %936 = arith.divf %934, %935 : vector<2x32xf32>
    %937 = vector.extract_strided_slice %917 {offsets = [0, 64], sizes = [2, 32], strides = [1, 1]} : vector<2x96xf32> to vector<2x32xf32>
    %938 = vector.extract_strided_slice %920 {offsets = [0, 64], sizes = [2, 32], strides = [1, 1]} : vector<2x96xf32> to vector<2x32xf32>
    %939 = arith.mulf %928, %938 : vector<2x32xf32>
    %940 = arith.addf %937, %939 : vector<2x32xf32>
    %941 = math.tanh %940 : vector<2x32xf32>
    %cst_170 = arith.constant 1.000000e+00 : f32
    %942 = vector.broadcast %cst_170 : f32 to vector<2x32xf32>
    %943 = arith.subf %942, %936 : vector<2x32xf32>
    %944 = arith.mulf %943, %941 : vector<2x32xf32>
    %945 = arith.mulf %936, %916 : vector<2x32xf32>
    %946 = arith.addf %944, %945 : vector<2x32xf32>
    %947 = vector.broadcast %918 : vector<2x1xf32> to vector<2x32xf32>
    %948 = arith.mulf %947, %946 : vector<2x32xf32>
    %cst_171 = arith.constant 1.000000e+00 : f32
    %949 = vector.broadcast %cst_171 : f32 to vector<2x1xf32>
    %950 = arith.subf %949, %918 : vector<2x1xf32>
    %951 = vector.broadcast %950 : vector<2x1xf32> to vector<2x32xf32>
    %952 = arith.mulf %951, %916 : vector<2x32xf32>
    %953 = arith.addf %948, %952 : vector<2x32xf32>
    %954 = vector.extract_strided_slice %26 {offsets = [14, 0], sizes = [2, 96], strides = [1, 1]} : vector<16x96xf32> to vector<2x96xf32>
    %955 = vector.extract_strided_slice %694 {offsets = [14, 0], sizes = [2, 1], strides = [1, 1]} : vector<16x1xf32> to vector<2x1xf32>
    %cst_172 = arith.constant dense<0.000000e+00> : vector<2x96xf32>
    %956 = tpu.matmul %953, %11, %cst_172 {dimension_numbers = #tpu.dot_dimension_numbers<[1], [0], [0], [1], [0, 0, 1, 1], [], []>} : vector<2x32xf32>, vector<32x96xf32>, vector<2x96xf32> -> vector<2x96xf32>
    %957 = arith.addf %956, %31 : vector<2x96xf32>
    %958 = vector.extract_strided_slice %954 {offsets = [0, 0], sizes = [2, 32], strides = [1, 1]} : vector<2x96xf32> to vector<2x32xf32>
    %959 = vector.extract_strided_slice %957 {offsets = [0, 0], sizes = [2, 32], strides = [1, 1]} : vector<2x96xf32> to vector<2x32xf32>
    %960 = arith.addf %958, %959 : vector<2x32xf32>
    %961 = arith.negf %960 : vector<2x32xf32>
    %962 = math.exp %961 : vector<2x32xf32>
    %cst_173 = arith.constant 1.000000e+00 : f32
    %963 = vector.broadcast %cst_173 : f32 to vector<2x32xf32>
    %964 = arith.addf %963, %962 : vector<2x32xf32>
    %965 = arith.divf %963, %964 : vector<2x32xf32>
    %966 = vector.extract_strided_slice %954 {offsets = [0, 32], sizes = [2, 32], strides = [1, 1]} : vector<2x96xf32> to vector<2x32xf32>
    %967 = vector.extract_strided_slice %957 {offsets = [0, 32], sizes = [2, 32], strides = [1, 1]} : vector<2x96xf32> to vector<2x32xf32>
    %968 = arith.addf %966, %967 : vector<2x32xf32>
    %969 = arith.negf %968 : vector<2x32xf32>
    %970 = math.exp %969 : vector<2x32xf32>
    %cst_174 = arith.constant 1.000000e+00 : f32
    %971 = vector.broadcast %cst_174 : f32 to vector<2x32xf32>
    %972 = arith.addf %971, %970 : vector<2x32xf32>
    %973 = arith.divf %971, %972 : vector<2x32xf32>
    %974 = vector.extract_strided_slice %954 {offsets = [0, 64], sizes = [2, 32], strides = [1, 1]} : vector<2x96xf32> to vector<2x32xf32>
    %975 = vector.extract_strided_slice %957 {offsets = [0, 64], sizes = [2, 32], strides = [1, 1]} : vector<2x96xf32> to vector<2x32xf32>
    %976 = arith.mulf %965, %975 : vector<2x32xf32>
    %977 = arith.addf %974, %976 : vector<2x32xf32>
    %978 = math.tanh %977 : vector<2x32xf32>
    %cst_175 = arith.constant 1.000000e+00 : f32
    %979 = vector.broadcast %cst_175 : f32 to vector<2x32xf32>
    %980 = arith.subf %979, %973 : vector<2x32xf32>
    %981 = arith.mulf %980, %978 : vector<2x32xf32>
    %982 = arith.mulf %973, %953 : vector<2x32xf32>
    %983 = arith.addf %981, %982 : vector<2x32xf32>
    %984 = vector.broadcast %955 : vector<2x1xf32> to vector<2x32xf32>
    %985 = arith.mulf %984, %983 : vector<2x32xf32>
    %cst_176 = arith.constant 1.000000e+00 : f32
    %986 = vector.broadcast %cst_176 : f32 to vector<2x1xf32>
    %987 = arith.subf %986, %955 : vector<2x1xf32>
    %988 = vector.broadcast %987 : vector<2x1xf32> to vector<2x32xf32>
    %989 = arith.mulf %988, %953 : vector<2x32xf32>
    %990 = arith.addf %985, %989 : vector<2x32xf32>
    %cst_177 = arith.constant dense<0.000000e+00> : vector<2x32xf32>
    %991 = tpu.matmul %675, %13, %cst_177 {dimension_numbers = #tpu.dot_dimension_numbers<[1], [0], [0], [1], [0, 0, 1, 1], [], []>} : vector<2x32xf32>, vector<32x32xf32>, vector<2x32xf32> -> vector<2x32xf32>
    %cst_178 = arith.constant dense<0.000000e+00> : vector<2x32xf32>
    %992 = tpu.matmul %990, %14, %cst_178 {dimension_numbers = #tpu.dot_dimension_numbers<[1], [0], [0], [1], [0, 0, 1, 1], [], []>} : vector<2x32xf32>, vector<32x32xf32>, vector<2x32xf32> -> vector<2x32xf32>
    %993 = arith.addf %991, %992 : vector<2x32xf32>
    %994 = arith.addf %993, %29 : vector<2x32xf32>
    %cst_179 = arith.constant 0.000000e+00 : f32
    %995 = vector.broadcast %cst_179 : f32 to vector<2x32xf32>
    %996 = arith.maximumf %994, %995 : vector<2x32xf32>
    %c0_180 = arith.constant 0 : index
    %c0_181 = arith.constant 0 : index
    %997 = vector.load %arg19[%c0_180, %c0_181] : memref<2x32xf32, #tpu.memory_space<vmem>>, vector<2x32xf32>
    tpu.vector_store %arg19[%c0_180, %c0_181], %996 {strides = array<i32>} : memref<2x32xf32, #tpu.memory_space<vmem>>, vector<2x32xf32>,
    return
  }
}

</mosaic_0001>

<bundles_post_ra>
// kernel: memory_module_forward.1
= control target key start
LH: loop header
LB: loop body
LE: loop exit
PB: predicated region body
PF: predicated region fallthrough
CT: control target
= control target key end

     0   :  { %s3889_s0 = inlined_call_operand.vmem [shape: f32[16,32], index: 0, kind: input, shape index: {}]   ;;  %s3890_s1 = inlined_call_operand.vmem [shape: f32[16,32], index: 1, kind: input, shape index: {}]   ;;  %s3891_s2 = inlined_call_operand.vmem [shape: f32[16,2], index: 2, kind: input, shape index: {}]   ;;  %s3892_s3 = inlined_call_operand.vmem [shape: f32[2,32], index: 3, kind: input, shape index: {}]   ;;  %s3893_s4 = inlined_call_operand.vmem [shape: f32[2,32], index: 4, kind: input, shape index: {}]   ;;  %s3894_s5 = inlined_call_operand.vmem [shape: f32[2,32], index: 5, kind: input, shape index: {}]   ;;  %s3895_s6 = inlined_call_operand.vmem [shape: f32[64,16], index: 6, kind: input, shape index: {}]   ;;  %s3896_s7 = inlined_call_operand.vmem [shape: f32[64,16], index: 7, kind: input, shape index: {}]   ;;  %s3897_s8 = inlined_call_operand.vmem [shape: f32[1,16], index: 8, kind: input, shape index: {}]   ;;  %s3898_s9 = inlined_call_operand.vmem [shape: f32[1,16], index: 9, kind: input, shape index: {}]   ;;  %s3899_s10 = inlined_call_operand.<no memory space> [shape: f32[1,1], index: 10, kind: input, shape index: {}]   ;;  %s3900_s11 = inlined_call_operand.vmem [shape: f32[32,96], index: 11, kind: input, shape index: {}]   ;;  %s3901_s12 = inlined_call_operand.vmem [shape: f32[1,96], index: 12, kind: input, shape index: {}]   ;;  %s3902_s13 = inlined_call_operand.vmem [shape: f32[32,96], index: 13, kind: input, shape index: {}]   ;;  %s3903_s14 = inlined_call_operand.vmem [shape: f32[1,96], index: 14, kind: input, shape index: {}]   ;;  %s3904_s15 = inlined_call_operand.vmem [shape: f32[32,32], index: 15, kind: input, shape index: {}]   ;;  %s3905_s16 = inlined_call_operand.vmem [shape: f32[32,32], index: 16, kind: input, shape index: {}]   ;;  %s3906_s17 = inlined_call_operand.vmem [shape: f32[32,32], index: 17, kind: input, shape index: {}]   ;;  %s3907_s18 = inlined_call_operand.vmem [shape: f32[1,32], index: 18, kind: input, shape index: {}]   ;;  %s3908_s19 = inlined_call_operand.hbm [shape: f32[2,32], index: 19, kind: output, shape index: {}]  }
   0x1   :  { %3912 = sst [smem:[#allocation6_spill]] %s3889_s0  ;;  %v24_v0 = vstv %s3899_s10 }
   0x2   :  { %3913 = sst [smem:[#allocation7_spill]] %s3890_s1  ;;  %25 = vst [vmem:[#allocation2] sm:$0x1] %v24_v0 }
   0x3   :  { %3914 = sst [smem:[#allocation8_spill]] %s3891_s2 }
   0x4   :  { %3915 = sst [smem:[#allocation9_spill]] %s3892_s3 }
   0x5   :  { %v226_v1 = vld [vmem:[%s3893_s4] sm:$0x3]  ;;  %vm234_vm0 = vcmask 1041408   ;;  %s3916_s2 = sld [smem:[#allocation8_spill]]  ;;  %vm227_vm1 = vcmask 15360  }
   0x6   :  { %2574 = vmatpush.msk.msra.mxu3 %vm234_vm0, %v226_v1 }
   0xb   :  { %v69_v2 = vld [vmem:[%s3916_s2] sm:$0xff] }
   0xc   :  { %2575 = vmatmul.msk.f32.vlgmr.msra.gmra.mxu3 %vm227_vm1, %v69_v2 }
   0xd   :  { %26 = vsyncpa [#allocation4], 0  ;;  %v3004_v3 = vld [vmem:[%s3896_s7 + $0x38] sm:$0xff]  ;;  %v3009_v4 = vld [vmem:[%s3896_s7 + $0x30] sm:$0xff]  ;;  %s3917_s0 = sld [smem:[#allocation6_spill]]  ;;  %s2885_s1 = smov 32  }
   0xe   :  { %291 = vmatpush.msrb.mxu3 %v3004_v3  ;;  %v70_v5 = vld [vmem:[%s3916_s2 + $0x8] sm:$0xff]  ;;  %v79_v6 = vld [vmem:[%s3895_s6 + $0x38] sm:$0xff]  ;;  %v78_v8 = vld [vmem:[%s3895_s6 + $0x30] sm:$0xff]  ;;  %s3918_s21 = sld [smem:[#allocation7_spill]]  ;;  %vm128_vm2 = vcmask 261120   ;;  %vm134_vm3 = vcmask 523264  }
   0xf   :  { %v3021_v7 = vld [vmem:[%s3896_s7 + $0x28] sm:$0xff]  ;;  %149 = vmatpush.msra.mxu0 %v79_v6  ;;  %v3034_v10 = vld [vmem:[%s3896_s7 + $0x20] sm:$0xff]  ;;  %v3040_v11 = vld [vmem:[%s3896_s7 + $0x18] sm:$0xff]  ;;  %s3919_s27 = sld [smem:[#allocation9_spill]]  ;;  %vm315_vm4 = vcmask 130048   ;;  %s2886_s28 = smov 64  }
  0x10   :  { %292 = vmatpush.msrb.mxu3 %v3009_v4  ;;  %v77_v9 = vld [vmem:[%s3895_s6 + $0x28] sm:$0xff]  ;;  %v3046_v12 = vld [vmem:[%s3896_s7 + $0x10] sm:$0xff]  ;;  %v76_v21 = vld [vmem:[%s3895_s6 + $0x20] sm:$0xff] }
  0x11   :  { %150 = vmatpush.msra.mxu0 %v78_v8  ;;  %v3052_v13 = vld [vmem:[%s3896_s7 + $0x8] sm:$0xff]  ;;  %v3080_v22 = vld [vmem:[%s3896_s7] sm:$0xff]  ;;  %v75_v23 = vld [vmem:[%s3895_s6 + $0x18] sm:$0xff]  ;;  %v2887_v8 = vmov 0  }
  0x12   :  { %293 = vmatpush.msrb.mxu3 %v3021_v7  ;;  %v74_v24 = vld [vmem:[%s3895_s6 + $0x10] sm:$0xff]  ;;  %v73_v25 = vld [vmem:[%s3895_s6 + $0x8] sm:$0xff]  ;;  %v72_v26 = vld [vmem:[%s3895_s6] sm:$0xff]  ;;  %2650 = vset.pattern.permute.xlu2 %v2887_v8  ;;  %s2560_s6 = sshll.u32 %s3908_s19, 4  ;;  %s2561_s6 = int_to_ptr.hbm [resolvable:$true] %s2560_s6 }
  0x13   :  { %151 = vmatpush.msra.mxu0 %v77_v9  ;;  %v3059_v14 = vld [vmem:[%s3917_s0] sm:$0xff]  ;;  %v112_v27 = vld [vmem:[%s3906_s17 + $0x18] sm:$0xff]  ;;  %v111_v28 = vld [vmem:[%s3906_s17 + $0x10] sm:$0xff]  ;;  %2651 = vset.pattern.permute.xlu0 %v2887_v8 }
  0x14   :  { %2576 = vmatmul.msk.f32.gmra.mxu3 %vm227_vm1, %v70_v5  ;;  %v3068_v17 = vld [vmem:[%s3918_s21] sm:$0xff]  ;;  %214 = vmatpush.msra.mxu2 %v112_v27  ;;  %v99_v29 = vld [vmem:[%s3902_s13 + $0x18] sm:$0xff]  ;;  %v110_v30 = vld [vmem:[%s3906_s17 + $0x8] sm:$0xff] }
  0x15   :  { %294 = vmatpush.msrb.mxu3 %v3034_v10  ;;  %v116_v19 = vsub.f32 %v3059_v14, %v3068_v17  ;;  %152 = vmatpush.msra.mxu0 %v76_v21  ;;  %v94_v31 = vld [vmem:[%s3900_s11 + $0x18] sm:$0xff]  ;;  %v98_v32 = vld [vmem:[%s3902_s13 + $0x10] sm:$0xff]  ;;  %v109_v34 = vld [vmem:[%s3906_s17] sm:$0xff]  ;;  %v114_v45 = vmul.f32 %v3068_v17, %v3059_v14 }
  0x16   :  { %215 = vmatpush.msra.mxu2 %v111_v28  ;;  %185 = vmatpush.msra.mxu1 %v94_v31  ;;  %v93_v33 = vld [vmem:[%s3900_s11 + $0x10] sm:$0xff]  ;;  %v92_v35 = vld [vmem:[%s3900_s11 + $0x8] sm:$0xff]  ;;  %v71_v36 = vld [vmem:[%s3919_s27] sm:$0x3] }
  0x17   :  { %295 = vmatpush.msrb.mxu3 %v3040_v11  ;;  %v118_v20 = vand.u32 2147483647, %v116_v19  ;;  %153 = vmatpush.msra.mxu0 %v75_v23  ;;  %v97_v37 = vld [vmem:[%s3902_s13 + $0x8] sm:$0xff]  ;;  %v91_v38 = vld [vmem:[%s3900_s11] sm:$0xff] }
  0x18   :  { %216 = vmatpush.msra.mxu2 %v110_v30  ;;  %186 = vmatpush.msra.mxu1 %v93_v33  ;;  %v96_v39 = vld [vmem:[%s3902_s13] sm:$0xff]  ;;  %v3147_v41 = vld [vmem:[%s3917_s0 + $0x8] sm:$0xff] }
  0x19   :  { %296 = vmatpush.msrb.mxu3 %v3046_v12  ;;  %154 = vmatpush.msra.mxu0 %v74_v24  ;;  %v3140_v40 = vld [vmem:[%s3894_s5] sm:$0x3] }
  0x1a   :  { %217 = vmatpush.msra.mxu2 %v109_v34  ;;  %187 = vmatpush.msra.mxu1 %v92_v35  ;;  %v3164_v49 = vld [vmem:[%s3897_s8] ss:$0 sm:$0xff] }
  0x1b   :  { %297 = vmatpush.msrb.mxu3 %v3052_v13  ;;  %155 = vmatpush.msra.mxu0 %v73_v25  ;;  %v3173_v54 = vld [vmem:[%s3898_s9] ss:$0 sm:$0xff] }
  0x1c   :  { %2573 = vmatmul.msk.f32.vlgmr.msra.gmra.mxu2 %vm128_vm2, %v71_v36  ;;  %188 = vmatpush.msra.mxu1 %v91_v38  ;;  %v3182_v59 = vld [vmem:[%s3903_s14] ss:$0 sm:$0xff] }
  0x1d   :  { %298 = vmatpush.msrb.mxu3 %v3080_v22  ;;  %156 = vmatpush.msra.mxu0 %v72_v26  ;;  %v3189_v62 = vld [vmem:[%s3901_s12] ss:$0 sm:$0xff]  ;;  %s2888_s12 = smov 96  }
  0x1e   :  { %380 = vmatpush.msrb.mxu2 %v99_v29  ;;  %2571 = vmatmul.msk.f32.vlgmr.msra.gmra.mxu1 %vm128_vm2, %v3059_v14  ;;  %v3195_v9 = vld [vmem:[#allocation2] ss:$0 sm:$0xff] }
  0x1f   :  { %623 = vmatpush.msrb.mxu0 %v99_v29  ;;  %865 = vmatpush.msra.mxu3 %v99_v29 }
  0x20   :  { %381 = vmatpush.msrb.mxu2 %v98_v32  ;;  %465 = vmatpush.msrb.mxu1 %v99_v29 }
  0x21   :  { %624 = vmatpush.msrb.mxu0 %v98_v32  ;;  %866 = vmatpush.msra.mxu3 %v98_v32 }
  0x22   :  { %382 = vmatpush.msrb.mxu2 %v97_v37  ;;  %466 = vmatpush.msrb.mxu1 %v98_v32 }
  0x23   :  { %625 = vmatpush.msrb.mxu0 %v97_v37  ;;  %867 = vmatpush.msra.mxu3 %v97_v37 }
  0x24   :  { %383 = vmatpush.msrb.mxu2 %v96_v39  ;;  %467 = vmatpush.msrb.mxu1 %v97_v37 }
  0x25   :  { %626 = vmatpush.msrb.mxu0 %v96_v39  ;;  %868 = vmatpush.msra.mxu3 %v96_v39 }
  0x26   :  { %2581 = vmatmul.msk.f32.vlgmr.msrb.gmra.mxu2 %vm128_vm2, %v3140_v40  ;;  %468 = vmatpush.msrb.mxu1 %v96_v39 }
  0x27   :  { %544 = vmatpush.msra.mxu2 %v99_v29  ;;  %2572 = vmatmul.msk.f32.gmra.mxu1 %vm128_vm2, %v3147_v41 }
  0x28   :  { %702 = vmatpush.msra.mxu1 %v99_v29  ;;  %2652 = vset.pattern.permute.xlu1 %v2887_v8 }
  0x29   :  { %545 = vmatpush.msra.mxu2 %v98_v32 }
  0x2a   :  { %703 = vmatpush.msra.mxu1 %v98_v32 }
  0x2b   :  { %546 = vmatpush.msra.mxu2 %v97_v37 }
  0x2c   :  { %704 = vmatpush.msra.mxu1 %v97_v37 }
  0x2d   :  { %547 = vmatpush.msra.mxu2 %v96_v39 }
  0x2e   :  { %705 = vmatpush.msra.mxu1 %v96_v39 }
  0x2f   :  { %786 = vmatpush.msrb.mxu2 %v99_v29 }
  0x31   :  { %787 = vmatpush.msrb.mxu2 %v98_v32 }
  0x33   :  { %788 = vmatpush.msrb.mxu2 %v97_v37 }
  0x35   :  { %789 = vmatpush.msrb.mxu2 %v96_v39 }
  0x8f   :  { %v3061_v15 = vpop.f32.mrf.mxu3 }
  0x90   :  { %v263_v16 = vsub.f32 %v3059_v14, %v3061_v15  ;;  %v261_v42 = vmul.f32 %v3061_v15, %v3059_v14 }
  0x92   :  { %v265_v18 = vand.u32 2147483647, %v263_v16 }
  0x94   :  { %269 = vrot.lane.b32.xlu0 %v265_v18, %s2885_s1 }
  0x97   :  { %v3159_v48 = vpop.f32.mrf.mxu3 }
  0x9b   :  { %v190_v63 = vpop.f32.mrf.mxu1 }
  0x9c   :  { %122 = vrot.lane.b32.xlu0 %v118_v20, %s2885_s1  ;;  %v3192_v0 = vadd.f32 %v3189_v62, %v190_v63 }
  0x9f   :  { %v3177_v58 = vpop.f32.mrf.mxu2 }
  0xa4   :  { %v3217_v8 = vpop.f32.mrf.mxu1 }
  0xa9   :  { %v385_v60 = vpop.f32.mrf.mxu2 }
  0xaa   :  { %v386_v61 = vadd.f32 %v3182_v59, %v385_v60 }
  0xac   :  { %v388_v1 = vadd.f32 %v386_v61, %v3192_v0 }
  0xae   :  { %v2582_v2 = vmul.f32 -1.442695, %v388_v1 }
 0x106   :  { %v270_v43 = vpop.permute.xlu0 %269 }
 0x107   :  { %v275_v44 = vsel %vm128_vm2, %v261_v42, %v270_v43 }
 0x108   :  { %2577 = vmatmul.msk.f32.vlgmr.msrb.gmra.mxu3 %vm134_vm3, %v275_v44 }
 0x10e   :  { %v123_v46 = vpop.permute.xlu0 %122 }
 0x10f   :  { %v129_v47 = vsel %vm128_vm2, %v114_v45, %v123_v46 }
 0x110   :  { %2569 = vmatmul.msk.f32.vlgmr.msra.gmra.mxu0 %vm134_vm3, %v129_v47 }
 0x111   :  { %944 = vmatpush.msra.mxu0 %v99_v29 }
 0x113   :  { %945 = vmatpush.msra.mxu0 %v98_v32 }
 0x115   :  { %946 = vmatpush.msra.mxu0 %v97_v37 }
 0x117   :  { %947 = vmatpush.msra.mxu0 %v96_v39 }
 0x18b   :  { %v300_v52 = vpop.f32.mrf.mxu3 }
 0x18d   :  { %v158_v50 = vpop.f32.mrf.mxu0 }
 0x18e   :  { %v3167_v51 = vadd.f32 %v3164_v49, %v158_v50 }
 0x190   :  { %v306_v53 = vadd.f32 %v300_v52, %v3167_v51 }
 0x192   :  { %2659 = vtanh.f32 %v306_v53 }
 0x193   :  { %2661 = vpow2.f32 %v2582_v2 }
 0x198   :  { %v2660_v55 = vpop.eup %2659 }
 0x199   :  { %v313_v56 = vmul.f32 %v2660_v55, %v3173_v54  ;;  %v2662_v5 = vpop.eup %2661 }
 0x19a   :  { %v392_v6 = vadd.f32 1.0, %v2662_v5 }
 0x19b   :  { %v316_v57 = vsel %vm315_vm4, %v313_v56, 0.0 }
 0x19c   :  { %317 = vadd.xlane.f32.xlu1 %v316_v57  ;;  %2663 = vrcp.f32 %v392_v6  ;;  %vm398_vm5 = vweird.f32 %v392_v6  ;;  %v404_v24 = vand.u32 2147483648, %v392_v6  ;;  %v402_v26 = vand.u32 2147483647, %v392_v6 }
 0x19e   :  { %v405_v28 = vor.u32 1.1754944e-38, %v404_v24  ;;  %vm403_vm8 = vcmp.eq.f32.partialorder %v402_v26, 8.507059e+37 }
 0x1a2   :  { %v2664_v16 = vpop.eup %2663 }
 0x1a3   :  { %v394_v18 = vmul.f32 %v2664_v16, %v392_v6  ;;  %vm399_vm6 = vweird.f32 %v2664_v16 }
 0x1a4   :  { %vm400_vm7 = vmor %vm398_vm5, %vm399_vm6 }
 0x1a5   :  { %v395_v19 = vsub.f32 1.0, %v394_v18 }
 0x1a7   :  { %v396_v23 = vmul.f32 %v2664_v16, %v395_v19 }
 0x1a9   :  { %v397_v25 = vadd.f32 %v2664_v16, %v396_v23 }
 0x1ab   :  { %v401_v29 = vsel %vm400_vm7, %v2664_v16, %v397_v25 }
 0x1ac   :  { %v406_v33 = vsel %vm403_vm8, %v405_v28, %v401_v29 }
 0x1ad   :  { %v419_v55 = vsub.f32 1.0, %v406_v33 }
 0x1b5   :  { %409 = vrot.lane.b32.xlu1 %v386_v61, %s2886_s28 }
 0x20f   :  { %v318_v14 = vpop.xlane.xlu1 %317 }
 0x210   :  { %v325_v15 = vadd.f32 %v3195_v9, %v318_v14 }
 0x212   :  { %v2579_v17 = vmul.f32 -1.442695, %v325_v15 }
 0x214   :  { %2665 = vpow2.f32 %v2579_v17 }
 0x21a   :  { %v2666_v20 = vpop.eup %2665 }
 0x21b   :  { %v333_v21 = vadd.f32 1.0, %v2666_v20 }
 0x21d   :  { %2667 = vrcp.f32 %v333_v21  ;;  %v346_v34 = vand.u32 2147483648, %v333_v21  ;;  %v344_v37 = vand.u32 2147483647, %v333_v21  ;;  %vm340_vm10 = vweird.f32 %v333_v21 }
 0x21f   :  { %v347_v39 = vor.u32 1.1754944e-38, %v346_v34  ;;  %vm345_vm12 = vcmp.eq.f32.partialorder %v344_v37, 8.507059e+37 }
 0x223   :  { %v2668_v27 = vpop.eup %2667 }
 0x224   :  { %v336_v30 = vmul.f32 %v2668_v27, %v333_v21  ;;  %vm341_vm9 = vweird.f32 %v2668_v27 }
 0x225   :  { %vm342_vm11 = vmor %vm340_vm10, %vm341_vm9 }
 0x226   :  { %v337_v31 = vsub.f32 1.0, %v336_v30 }
 0x227   :  { %v410_v32 = vpop.permute.xlu1 %409 }
 0x228   :  { %v412_v35 = vmul.f32 %v410_v32, %v406_v33  ;;  %v338_v36 = vmul.f32 %v2668_v27, %v337_v31 }
 0x22a   :  { %414 = vrot.lane.b32.xlu2 %v412_v35, %s2886_s28  ;;  %v339_v38 = vadd.f32 %v2668_v27, %v338_v36 }
 0x22c   :  { %v343_v42 = vsel %vm342_vm11, %v2668_v27, %v339_v38 }
 0x22d   :  { %v348_v43 = vsel %vm345_vm12, %v347_v39, %v343_v42 }
 0x22e   :  { %v436_v44 = vsub.f32 1.0, %v348_v43 }
 0x232   :  { %439 = vperm.xlu2 %2650, %v436_v44  }
 0x23a   :  { %425 = vrot.lane.b32.xlu2 %v3140_v40, %s2885_s1 }
 0x284   :  { %v415_v45 = vpop.permute.xlu2 %414 }
 0x285   :  { %v417_v46 = vadd.f32 %v415_v45, %v3192_v0 }
 0x287   :  { %2669 = vtanh.f32 %v417_v46 }
 0x28c   :  { %v3202_v47 = vpop.permute.xlu2 %439 }
 0x28d   :  { %v2670_v50 = vpop.eup %2669  ;;  %v442_v52 = vmul.f32 %v3202_v47, %v3140_v40 }
 0x28e   :  { %421 = vrot.lane.b32.xlu0 %v2670_v50, %s2888_s12 }
 0x28f   :  { %444 = vrot.lane.b32.xlu2 %v442_v52, %s2885_s1 }
 0x294   :  { %v426_v56 = vpop.permute.xlu2 %425 }
 0x295   :  { %v428_v60 = vmul.f32 %v426_v56, %v406_v33 }
 0x296   :  { %432 = vperm.xlu0 %2651, %v348_v43  }
 0x2e9   :  { %v445_v2 = vpop.permute.xlu2 %444 }
 0x300   :  { %v422_v53 = vpop.permute.xlu0 %421 }
 0x301   :  { %v424_v57 = vmul.f32 %v422_v53, %v419_v55 }
 0x303   :  { %v3208_v61 = vadd.f32 %v428_v60, %v424_v57 }
 0x308   :  { %v3210_v63 = vpop.permute.xlu0 %432 }
 0x309   :  { %v435_v1 = vmul.f32 %v3210_v63, %v3208_v61 }
 0x30b   :  { %v447_v40 = vadd.f32 %v445_v2, %v435_v1 }
 0x30d   :  { %449 = vrot.lane.b32.xlu2 %v447_v40, %s2888_s12  ;;  %v512_v5 = vrot.slane %v447_v40, 6 }
 0x315   :  { %517 = vrot.lane.b32.xlu2 %v512_v5, %s2888_s12 }
 0x367   :  { %v450_v6 = vpop.permute.xlu2 %449 }
 0x368   :  { %2583 = vmatmul.msk.f32.vlgmr.msrb.gmra.mxu1 %vm128_vm2, %v450_v6 }
 0x36f   :  { %v518_v34 = vpop.permute.xlu2 %517 }
 0x370   :  { %v520_v35 = vmul.f32 %v518_v34, %v3202_v47 }
 0x3e5   :  { %v470_v14 = vpop.f32.mrf.mxu1 }
 0x3e6   :  { %v471_v15 = vadd.f32 %v3182_v59, %v470_v14 }
 0x3e8   :  { %v474_v16 = vrot.slane %v471_v15, 6 }
 0x3ea   :  { %496 = vrot.lane.b32.xlu1 %v474_v16, %s2886_s28  ;;  %v476_v17 = vadd.f32 %v474_v16, %v3192_v0 }
 0x3ec   :  { %v2584_v18 = vmul.f32 -1.442695, %v476_v17 }
 0x3ee   :  { %2671 = vpow2.f32 %v2584_v18 }
 0x3f4   :  { %v2672_v19 = vpop.eup %2671 }
 0x3f5   :  { %v480_v20 = vadd.f32 1.0, %v2672_v19 }
 0x3f7   :  { %2673 = vrcp.f32 %v480_v20  ;;  %v492_v27 = vand.u32 2147483648, %v480_v20  ;;  %vm486_vm14 = vweird.f32 %v480_v20  ;;  %v490_v28 = vand.u32 2147483647, %v480_v20 }
 0x3f9   :  { %v493_v30 = vor.u32 1.1754944e-38, %v492_v27  ;;  %vm491_vm5 = vcmp.eq.f32.partialorder %v490_v28, 8.507059e+37 }
 0x3fd   :  { %v2674_v21 = vpop.eup %2673 }
 0x3fe   :  { %v482_v23 = vmul.f32 %v2674_v21, %v480_v20  ;;  %vm487_vm13 = vweird.f32 %v2674_v21 }
 0x3ff   :  { %vm488_vm15 = vmor %vm486_vm14, %vm487_vm13 }
 0x400   :  { %v483_v24 = vsub.f32 1.0, %v482_v23 }
 0x402   :  { %v484_v25 = vmul.f32 %v2674_v21, %v483_v24 }
 0x404   :  { %v485_v26 = vadd.f32 %v2674_v21, %v484_v25 }
 0x406   :  { %v489_v29 = vsel %vm488_vm15, %v2674_v21, %v485_v26 }
 0x407   :  { %v494_v32 = vsel %vm491_vm5, %v493_v30, %v489_v29 }
 0x408   :  { %v506_v39 = vsub.f32 1.0, %v494_v32  ;;  %v514_v44 = vmul.f32 %v512_v5, %v494_v32 }
 0x45c   :  { %v497_v31 = vpop.permute.xlu1 %496 }
 0x45d   :  { %v499_v33 = vmul.f32 %v497_v31, %v494_v32  ;;  %v68_v32 = vld [vmem:[%s3918_s21 + $0x8] sm:$0xff] }
 0x45f   :  { %501 = vrot.lane.b32.xlu0 %v499_v33, %s2886_s28  ;;  %v117_v33 = vsub.f32 %v3147_v41, %v68_v32 }
 0x461   :  { %v119_v34 = vand.u32 2147483647, %v117_v33 }
 0x467   :  { %522 = vrot.lane.b32.xlu0 %v520_v35, %s2885_s1 }
 0x4d1   :  { %v502_v36 = vpop.permute.xlu0 %501 }
 0x4d2   :  { %v504_v37 = vadd.f32 %v502_v36, %v3192_v0 }
 0x4d4   :  { %2675 = vtanh.f32 %v504_v37 }
 0x4d9   :  { %v523_v50 = vpop.permute.xlu0 %522 }
 0x4da   :  { %v2676_v38 = vpop.eup %2675 }
 0x4db   :  { %508 = vrot.lane.b32.xlu1 %v2676_v38, %s2888_s12 }
 0x54d   :  { %v509_v42 = vpop.permute.xlu1 %508 }
 0x54e   :  { %v511_v43 = vmul.f32 %v509_v42, %v506_v39 }
 0x550   :  { %v515_v45 = vadd.f32 %v514_v44, %v511_v43 }
 0x552   :  { %v516_v46 = vmul.f32 %v515_v45, %v3210_v63 }
 0x554   :  { %v525_v52 = vadd.f32 %v523_v50, %v516_v46  ;;  %v264_v50 = vsub.f32 %v3147_v41, %v3159_v48 }
 0x556   :  { %v527_v53 = vrot.slane %v525_v52, 2  ;;  %v591_v55 = vrot.slane %v525_v52, 6  ;;  %v266_v52 = vand.u32 2147483647, %v264_v50 }
 0x558   :  { %528 = vrot.lane.b32.xlu2 %v527_v53, %s2888_s12  ;;  %v115_v53 = vmul.f32 %v68_v32, %v3147_v41 }
 0x560   :  { %596 = vrot.lane.b32.xlu2 %v591_v55, %s2888_s12 }
 0x568   :  { %124 = vrot.lane.b32.xlu2 %v119_v34, %s2885_s1 }
 0x5b2   :  { %v529_v56 = vpop.permute.xlu2 %528 }
 0x5b3   :  { %2585 = vmatmul.msk.f32.vlgmr.msra.gmra.mxu2 %vm128_vm2, %v529_v56 }
 0x5ba   :  { %v597_v27 = vpop.permute.xlu2 %596 }
 0x5bb   :  { %v599_v28 = vmul.f32 %v597_v27, %v3202_v47 }
 0x636   :  { %v549_v57 = vpop.f32.mrf.mxu2 }
 0x637   :  { %v550_v60 = vadd.f32 %v3182_v59, %v549_v57 }
 0x639   :  { %v553_v1 = vrot.slane %v550_v60, 4 }
 0x63b   :  { %575 = vrot.lane.b32.xlu1 %v553_v1, %s2886_s28  ;;  %v555_v2 = vadd.f32 %v553_v1, %v3192_v0  ;;  %v262_v1 = vmul.f32 %v3159_v48, %v3147_v41 }
 0x63d   :  { %v2586_v40 = vmul.f32 -1.442695, %v555_v2 }
 0x63f   :  { %2677 = vpow2.f32 %v2586_v40 }
 0x645   :  { %v2678_v5 = vpop.eup %2677 }
 0x646   :  { %v559_v6 = vadd.f32 1.0, %v2678_v5 }
 0x648   :  { %2679 = vrcp.f32 %v559_v6  ;;  %v571_v19 = vand.u32 2147483648, %v559_v6  ;;  %vm565_vm7 = vweird.f32 %v559_v6  ;;  %v569_v20 = vand.u32 2147483647, %v559_v6 }
 0x64a   :  { %v572_v23 = vor.u32 1.1754944e-38, %v571_v19  ;;  %vm570_vm9 = vcmp.eq.f32.partialorder %v569_v20, 8.507059e+37 }
 0x64e   :  { %v2680_v14 = vpop.eup %2679 }
 0x64f   :  { %v561_v15 = vmul.f32 %v2680_v14, %v559_v6  ;;  %vm566_vm6 = vweird.f32 %v2680_v14 }
 0x650   :  { %vm567_vm8 = vmor %vm565_vm7, %vm566_vm6 }
 0x651   :  { %v562_v16 = vsub.f32 1.0, %v561_v15 }
 0x653   :  { %v563_v17 = vmul.f32 %v2680_v14, %v562_v16 }
 0x655   :  { %v564_v18 = vadd.f32 %v2680_v14, %v563_v17 }
 0x657   :  { %v568_v21 = vsel %vm567_vm8, %v2680_v14, %v564_v18 }
 0x658   :  { %v573_v25 = vsel %vm570_vm9, %v572_v23, %v568_v21 }
 0x659   :  { %v585_v35 = vsub.f32 1.0, %v573_v25  ;;  %v593_v37 = vmul.f32 %v591_v55, %v573_v25  ;;  %v125_v55 = vpop.permute.xlu2 %124 }
 0x65a   :  { %v130_v56 = vsel %vm128_vm2, %v115_v53, %v125_v55 }
 0x65b   :  { %2570 = vmatmul.msk.f32.gmra.mxu0 %vm134_vm3, %v130_v56 }
 0x6ad   :  { %v576_v24 = vpop.permute.xlu1 %575 }
 0x6ae   :  { %v578_v26 = vmul.f32 %v576_v24, %v573_v25 }
 0x6b0   :  { %580 = vrot.lane.b32.xlu0 %v578_v26, %s2886_s28 }
 0x6b8   :  { %601 = vrot.lane.b32.xlu0 %v599_v28, %s2885_s1 }
 0x722   :  { %v581_v29 = vpop.permute.xlu0 %580 }
 0x723   :  { %v583_v30 = vadd.f32 %v581_v29, %v3192_v0 }
 0x725   :  { %2681 = vtanh.f32 %v583_v30 }
 0x72a   :  { %v602_v43 = vpop.permute.xlu0 %601 }
 0x72b   :  { %v2682_v31 = vpop.eup %2681 }
 0x72c   :  { %587 = vrot.lane.b32.xlu1 %v2682_v31, %s2888_s12 }
 0x79e   :  { %v588_v36 = vpop.permute.xlu1 %587 }
 0x79f   :  { %v590_v38 = vmul.f32 %v588_v36, %v585_v35 }
 0x7a1   :  { %v594_v39 = vadd.f32 %v593_v37, %v590_v38 }
 0x7a3   :  { %v595_v42 = vmul.f32 %v594_v39, %v3210_v63 }
 0x7a5   :  { %v3245_v44 = vadd.f32 %v602_v43, %v595_v42 }
 0x7a7   :  { %v606_v45 = vrot.slane %v3245_v44, 4  ;;  %v670_v46 = vrot.slane %v3245_v44, 6 }
 0x7a9   :  { %607 = vrot.lane.b32.xlu1 %v606_v45, %s2888_s12 }
 0x7b1   :  { %675 = vrot.lane.b32.xlu1 %v670_v46, %s2888_s12 }
 0x7b9   :  { %271 = vrot.lane.b32.xlu1 %v266_v52, %s2885_s1 }
 0x81b   :  { %v608_v57 = vpop.permute.xlu1 %607 }
 0x81c   :  { %2587 = vmatmul.msk.f32.vlgmr.msrb.gmra.mxu0 %vm128_vm2, %v608_v57 }
 0x81d   :  { %1111 = vmatpush.msrb.mxu0 %v3004_v3 }
 0x81f   :  { %1112 = vmatpush.msrb.mxu0 %v3009_v4  ;;  %v161_v4 = vpop.f32.mrf.mxu0 }
 0x820   :  { %v3279_v25 = vadd.f32 %v3164_v49, %v161_v4 }
 0x821   :  { %1113 = vmatpush.msrb.mxu0 %v3021_v7 }
 0x823   :  { %v676_v60 = vpop.permute.xlu1 %675  ;;  %1114 = vmatpush.msrb.mxu0 %v3034_v10 }
 0x824   :  { %v678_v23 = vmul.f32 %v676_v60, %v3202_v47 }
 0x825   :  { %1115 = vmatpush.msrb.mxu0 %v3040_v11 }
 0x827   :  { %1116 = vmatpush.msrb.mxu0 %v3046_v12 }
 0x829   :  { %1117 = vmatpush.msrb.mxu0 %v3052_v13 }
 0x82b   :  { %v272_v2 = vpop.permute.xlu1 %271  ;;  %1118 = vmatpush.msrb.mxu0 %v3080_v22 }
 0x82c   :  { %v276_v3 = vsel %vm128_vm2, %v262_v1, %v272_v2 }
 0x82d   :  { %2578 = vmatmul.msk.f32.gmra.mxu3 %vm134_vm3, %v276_v3 }
 0x899   :  { %v628_v7 = vpop.f32.mrf.mxu0 }
 0x89a   :  { %v629_v10 = vadd.f32 %v3182_v59, %v628_v7  ;;  %v3301_v7 = vadd.f32 %v3189_v62, %v3217_v8 }
 0x89c   :  { %v632_v40 = vrot.slane %v629_v10, 2 }
 0x89e   :  { %654 = vrot.lane.b32.xlu0 %v632_v40, %s2886_s28  ;;  %v634_v11 = vadd.f32 %v632_v40, %v3192_v0 }
 0x8a0   :  { %v2588_v12 = vmul.f32 -1.442695, %v634_v11 }
 0x8a2   :  { %2683 = vpow2.f32 %v2588_v12 }
 0x8a8   :  { %v2684_v13 = vpop.eup %2683 }
 0x8a9   :  { %v638_v41 = vadd.f32 1.0, %v2684_v13 }
 0x8ab   :  { %2685 = vrcp.f32 %v638_v41  ;;  %v650_v15 = vand.u32 2147483648, %v638_v41  ;;  %vm644_vm11 = vweird.f32 %v638_v41  ;;  %v648_v16 = vand.u32 2147483647, %v638_v41 }
 0x8ad   :  { %v651_v18 = vor.u32 1.1754944e-38, %v650_v15  ;;  %vm649_vm13 = vcmp.eq.f32.partialorder %v648_v16, 8.507059e+37 }
 0x8b0   :  { %v303_v24 = vpop.f32.mrf.mxu3 }
 0x8b1   :  { %v2686_v48 = vpop.eup %2685  ;;  %v307_v26 = vadd.f32 %v303_v24, %v3279_v25 }
 0x8b2   :  { %v640_v22 = vmul.f32 %v2686_v48, %v638_v41  ;;  %vm645_vm10 = vweird.f32 %v2686_v48 }
 0x8b3   :  { %vm646_vm12 = vmor %vm644_vm11, %vm645_vm10  ;;  %2687 = vtanh.f32 %v307_v26 }
 0x8b4   :  { %v641_v5 = vsub.f32 1.0, %v640_v22 }
 0x8b6   :  { %v642_v6 = vmul.f32 %v2686_v48, %v641_v5 }
 0x8b8   :  { %v643_v14 = vadd.f32 %v2686_v48, %v642_v6 }
 0x8b9   :  { %v2688_v27 = vpop.eup %2687 }
 0x8ba   :  { %v647_v17 = vsel %vm646_vm12, %v2686_v48, %v643_v14  ;;  %v314_v28 = vmul.f32 %v2688_v27, %v3173_v54 }
 0x8bb   :  { %v652_v20 = vsel %vm649_vm13, %v651_v18, %v647_v17 }
 0x8bc   :  { %v319_v29 = vsel %vm315_vm4, %v314_v28, 0.0  ;;  %v664_v32 = vsub.f32 1.0, %v652_v20  ;;  %v672_v49 = vmul.f32 %v670_v46, %v652_v20 }
 0x910   :  { %v655_v19 = vpop.permute.xlu0 %654 }
 0x911   :  { %v657_v21 = vmul.f32 %v655_v19, %v652_v20 }
 0x913   :  { %659 = vrot.lane.b32.xlu2 %v657_v21, %s2886_s28 }
 0x91b   :  { %680 = vrot.lane.b32.xlu2 %v678_v23, %s2885_s1 }
 0x944   :  { %320 = vadd.xlane.f32.xlu2 %v319_v29 }
 0x96d   :  { %v660_v30 = vpop.permute.xlu2 %659 }
 0x96e   :  { %v662_v31 = vadd.f32 %v660_v30, %v3192_v0 }
 0x970   :  { %2689 = vtanh.f32 %v662_v31 }
 0x975   :  { %v681_v54 = vpop.permute.xlu2 %680 }
 0x976   :  { %v2690_v47 = vpop.eup %2689 }
 0x977   :  { %666 = vrot.lane.b32.xlu0 %v2690_v47, %s2888_s12 }
 0x9b7   :  { %v321_v42 = vpop.xlane.xlu2 %320 }
 0x9b8   :  { %v326_v43 = vadd.f32 %v3195_v9, %v321_v42 }
 0x9ba   :  { %v2580_v44 = vmul.f32 -1.442695, %v326_v43 }
 0x9bc   :  { %2691 = vpow2.f32 %v2580_v44 }
 0x9c2   :  { %v2692_v45 = vpop.eup %2691 }
 0x9c3   :  { %v334_v46 = vadd.f32 1.0, %v2692_v45 }
 0x9c5   :  { %2693 = vrcp.f32 %v334_v46  ;;  %v361_v57 = vand.u32 2147483648, %v334_v46  ;;  %vm355_vm15 = vweird.f32 %v334_v46  ;;  %v359_v1 = vand.u32 2147483647, %v334_v46 }
 0x9c7   :  { %v362_v2 = vor.u32 1.1754944e-38, %v361_v57  ;;  %vm360_vm6 = vcmp.eq.f32.partialorder %v359_v1, 8.507059e+37 }
 0x9e9   :  { %v667_v33 = vpop.permute.xlu0 %666 }
 0x9ea   :  { %v669_v34 = vmul.f32 %v667_v33, %v664_v32 }
 0x9ec   :  { %v673_v35 = vadd.f32 %v672_v49, %v669_v34 }
 0x9ee   :  { %v674_v36 = vmul.f32 %v673_v35, %v3210_v63  ;;  %v2694_v63 = vpop.eup %2693 }
 0x9ef   :  { %v351_v50 = vmul.f32 %v2694_v63, %v334_v46  ;;  %vm356_vm14 = vweird.f32 %v2694_v63 }
 0x9f0   :  { %v3289_v37 = vadd.f32 %v681_v54, %v674_v36  ;;  %vm357_vm5 = vmor %vm355_vm15, %vm356_vm14 }
 0x9f1   :  { %v352_v52 = vsub.f32 1.0, %v351_v50 }
 0x9f2   :  { %v685_v38 = vrot.slane %v3289_v37, 6 }
 0x9f3   :  { %v353_v53 = vmul.f32 %v2694_v63, %v352_v52 }
 0x9f4   :  { %686 = vrot.lane.b32.xlu0 %v685_v38, %s2888_s12 }
 0x9f5   :  { %v354_v55 = vadd.f32 %v2694_v63, %v353_v53 }
 0x9f7   :  { %v358_v9 = vsel %vm357_vm5, %v2694_v63, %v354_v55 }
 0x9f8   :  { %v363_v3 = vsel %vm360_vm6, %v362_v2, %v358_v9 }
 0x9f9   :  { %v756_v4 = vsub.f32 1.0, %v363_v3 }
 0xa66   :  { %v687_v39 = vpop.permute.xlu0 %686 }
 0xa67   :  { %2589 = vmatmul.msk.f32.vlgmr.msra.gmra.mxu1 %vm128_vm2, %v687_v39 }
 0xae4   :  { %v707_v56 = vpop.f32.mrf.mxu1 }
 0xae5   :  { %v708_v60 = vadd.f32 %v3182_v59, %v707_v56 }
 0xae7   :  { %731 = vrot.lane.b32.xlu1 %v708_v60, %s2886_s28  ;;  %v710_v10 = vadd.f32 %v708_v60, %v3301_v7 }
 0xae9   :  { %v2590_v40 = vmul.f32 -1.442695, %v710_v10 }
 0xaeb   :  { %2695 = vpow2.f32 %v2590_v40 }
 0xaef   :  { %759 = vperm.xlu1 %2652, %v756_v4  }
 0xaf1   :  { %v2696_v11 = vpop.eup %2695 }
 0xaf2   :  { %v714_v12 = vadd.f32 1.0, %v2696_v11 }
 0xaf4   :  { %2697 = vrcp.f32 %v714_v12  ;;  %v726_v6 = vand.u32 2147483648, %v714_v12  ;;  %vm720_vm8 = vweird.f32 %v714_v12  ;;  %v724_v14 = vand.u32 2147483647, %v714_v12 }
 0xaf6   :  { %v727_v62 = vor.u32 1.1754944e-38, %v726_v6  ;;  %vm725_vm10 = vcmp.eq.f32.partialorder %v724_v14, 8.507059e+37 }
 0xaf7   :  { %752 = vperm.xlu1 %2652, %v363_v3  }
 0xafa   :  { %v2698_v13 = vpop.eup %2697 }
 0xafb   :  { %v716_v41 = vmul.f32 %v2698_v13, %v714_v12  ;;  %vm721_vm7 = vweird.f32 %v2698_v13 }
 0xafc   :  { %vm722_vm9 = vmor %vm720_vm8, %vm721_vm7 }
 0xafd   :  { %v717_v48 = vsub.f32 1.0, %v716_v41 }
 0xaff   :  { %v718_v22 = vmul.f32 %v2698_v13, %v717_v48 }
 0xb01   :  { %v719_v5 = vadd.f32 %v2698_v13, %v718_v22 }
 0xb03   :  { %v723_v15 = vsel %vm722_vm9, %v2698_v13, %v719_v5 }
 0xb04   :  { %v728_v16 = vsel %vm725_vm10, %v727_v62, %v723_v15 }
 0xb05   :  { %v741_v24 = vsub.f32 1.0, %v728_v16  ;;  %v748_v27 = vmul.f32 %v728_v16, %v685_v38 }
 0xb59   :  { %v732_v8 = vpop.permute.xlu1 %731 }
 0xb5a   :  { %v734_v17 = vmul.f32 %v732_v8, %v728_v16 }
 0xb5c   :  { %736 = vrot.lane.b32.xlu0 %v734_v17, %s2886_s28 }
 0xb61   :  { %v3307_v21 = vpop.permute.xlu1 %759 }
 0xb62   :  { %v763_v23 = vmul.f32 %v3307_v21, %v687_v39 }
 0xb69   :  { %v3313_v30 = vpop.permute.xlu1 %752 }
 0xbce   :  { %v737_v18 = vpop.permute.xlu0 %736 }
 0xbcf   :  { %v739_v19 = vadd.f32 %v737_v18, %v3301_v7 }
 0xbd1   :  { %2699 = vtanh.f32 %v739_v19 }
 0xbd7   :  { %v2700_v20 = vpop.eup %2699 }
 0xbd8   :  { %743 = vrot.lane.b32.xlu0 %v2700_v20, %s2888_s12 }
 0xbe0   :  { %765 = vrot.lane.b32.xlu0 %v763_v23, %s2885_s1 }
 0xc4a   :  { %v744_v26 = vpop.permute.xlu0 %743 }
 0xc4b   :  { %v746_v28 = vmul.f32 %v744_v26, %v741_v24 }
 0xc4d   :  { %v749_v29 = vadd.f32 %v748_v27, %v746_v28 }
 0xc4f   :  { %v755_v31 = vmul.f32 %v3313_v30, %v749_v29 }
 0xc52   :  { %v766_v47 = vpop.permute.xlu0 %765 }
 0xc53   :  { %v768_v32 = vadd.f32 %v766_v47, %v755_v31 }
 0xc55   :  { %770 = vrot.lane.b32.xlu1 %v768_v32, %s2888_s12  ;;  %v833_v36 = vrot.slane %v768_v32, 6 }
 0xcc7   :  { %v771_v33 = vpop.permute.xlu1 %770 }
 0xcc8   :  { %2591 = vmatmul.msk.f32.vlgmr.msrb.gmra.mxu2 %vm128_vm2, %v771_v33 }
 0xd4b   :  { %v791_v49 = vpop.f32.mrf.mxu2 }
 0xd4c   :  { %v792_v34 = vadd.f32 %v3182_v59, %v791_v49 }
 0xd4e   :  { %v795_v35 = vrot.slane %v792_v34, 6 }
 0xd50   :  { %817 = vrot.lane.b32.xlu0 %v795_v35, %s2886_s28  ;;  %v797_v54 = vadd.f32 %v795_v35, %v3301_v7 }
 0xd52   :  { %v2592_v37 = vmul.f32 -1.442695, %v797_v54 }
 0xd54   :  { %2701 = vpow2.f32 %v2592_v37 }
 0xd58   :  { %838 = vrot.lane.b32.xlu0 %v833_v36, %s2888_s12 }
 0xd5a   :  { %v2702_v38 = vpop.eup %2701 }
 0xd5b   :  { %v801_v39 = vadd.f32 1.0, %v2702_v38 }
 0xd5d   :  { %2703 = vrcp.f32 %v801_v39  ;;  %v813_v63 = vand.u32 2147483648, %v801_v39  ;;  %vm807_vm12 = vweird.f32 %v801_v39  ;;  %v811_v50 = vand.u32 2147483647, %v801_v39 }
 0xd5f   :  { %v814_v53 = vor.u32 1.1754944e-38, %v813_v63  ;;  %vm812_vm14 = vcmp.eq.f32.partialorder %v811_v50, 8.507059e+37 }
 0xd63   :  { %v2704_v42 = vpop.eup %2703 }
 0xd64   :  { %v803_v43 = vmul.f32 %v2704_v42, %v801_v39  ;;  %vm808_vm11 = vweird.f32 %v2704_v42 }
 0xd65   :  { %vm809_vm13 = vmor %vm807_vm12, %vm808_vm11 }
 0xd66   :  { %v804_v44 = vsub.f32 1.0, %v803_v43 }
 0xd68   :  { %v805_v45 = vmul.f32 %v2704_v42, %v804_v44 }
 0xd6a   :  { %v806_v46 = vadd.f32 %v2704_v42, %v805_v45 }
 0xd6c   :  { %v810_v52 = vsel %vm809_vm13, %v2704_v42, %v806_v46 }
 0xd6d   :  { %v815_v56 = vsel %vm812_vm14, %v814_v53, %v810_v52 }
 0xd6e   :  { %v827_v4 = vsub.f32 1.0, %v815_v56  ;;  %v835_v11 = vmul.f32 %v833_v36, %v815_v56 }
 0xdc2   :  { %v818_v55 = vpop.permute.xlu0 %817 }
 0xdc3   :  { %v820_v57 = vmul.f32 %v818_v55, %v815_v56 }
 0xdc5   :  { %822 = vrot.lane.b32.xlu1 %v820_v57, %s2886_s28 }
 0xdca   :  { %v839_v60 = vpop.permute.xlu0 %838 }
 0xdcb   :  { %v841_v1 = vmul.f32 %v839_v60, %v3307_v21 }
 0xdcd   :  { %843 = vrot.lane.b32.xlu2 %v841_v1, %s2885_s1 }
 0xe27   :  { %v844_v41 = vpop.permute.xlu2 %843 }
 0xe37   :  { %v823_v9 = vpop.permute.xlu1 %822 }
 0xe38   :  { %v825_v2 = vadd.f32 %v823_v9, %v3301_v7 }
 0xe3a   :  { %2705 = vtanh.f32 %v825_v2 }
 0xe40   :  { %v2706_v3 = vpop.eup %2705 }
 0xe41   :  { %829 = vrot.lane.b32.xlu1 %v2706_v3, %s2888_s12 }
 0xeb3   :  { %v830_v10 = vpop.permute.xlu1 %829 }
 0xeb4   :  { %v832_v40 = vmul.f32 %v830_v10, %v827_v4 }
 0xeb6   :  { %v836_v12 = vadd.f32 %v835_v11, %v832_v40 }
 0xeb8   :  { %v837_v13 = vmul.f32 %v836_v12, %v3313_v30 }
 0xeba   :  { %v846_v48 = vadd.f32 %v844_v41, %v837_v13 }
 0xebc   :  { %v848_v22 = vrot.slane %v846_v48, 2  ;;  %v912_v62 = vrot.slane %v846_v48, 6 }
 0xebe   :  { %849 = vrot.lane.b32.xlu0 %v848_v22, %s2888_s12 }
 0xf30   :  { %v850_v5 = vpop.permute.xlu0 %849 }
 0xf31   :  { %2593 = vmatmul.msk.f32.vlgmr.msra.gmra.mxu3 %vm128_vm2, %v850_v5 }
 0xfb4   :  { %v870_v6 = vpop.f32.mrf.mxu3 }
 0xfb5   :  { %v871_v14 = vadd.f32 %v3182_v59, %v870_v6 }
 0xfb7   :  { %v874_v15 = vrot.slane %v871_v14, 4 }
 0xfb9   :  { %896 = vrot.lane.b32.xlu1 %v874_v15, %s2886_s28  ;;  %v876_v8 = vadd.f32 %v874_v15, %v3301_v7 }
 0xfbb   :  { %v2594_v16 = vmul.f32 -1.442695, %v876_v8  ;;  %v3360_v8 = vld [vmem:[%s3904_s15 + $0x18] sm:$0xff] }
 0xfbc   :  { %1045 = vmatpush.msra.mxu2 %v3360_v8 }
 0xfbd   :  { %2707 = vpow2.f32 %v2594_v16  ;;  %v3365_v16 = vld [vmem:[%s3904_s15 + $0x10] sm:$0xff] }
 0xfbe   :  { %1046 = vmatpush.msra.mxu2 %v3365_v16 }
 0xfc1   :  { %917 = vrot.lane.b32.xlu1 %v912_v62, %s2888_s12 }
 0xfc3   :  { %v2708_v17 = vpop.eup %2707 }
 0xfc4   :  { %v880_v18 = vadd.f32 1.0, %v2708_v17  ;;  %v3376_v17 = vld [vmem:[%s3905_s16 + $0x10] sm:$0xff] }
 0xfc6   :  { %2709 = vrcp.f32 %v880_v18  ;;  %v892_v27 = vand.u32 2147483648, %v880_v18  ;;  %vm886_vm5 = vweird.f32 %v880_v18  ;;  %v890_v28 = vand.u32 2147483647, %v880_v18 }
 0xfc8   :  { %v893_v31 = vor.u32 1.1754944e-38, %v892_v27  ;;  %vm891_vm7 = vcmp.eq.f32.partialorder %v890_v28, 8.507059e+37  ;;  %v3417_v27 = vld [vmem:[%s3902_s13 + $0x10] sm:$0xff]  ;;  %v3424_v28 = vld [vmem:[%s3902_s13 + $0x8] sm:$0xff] }
 0xfcc   :  { %v2710_v19 = vpop.eup %2709 }
 0xfcd   :  { %v882_v20 = vmul.f32 %v2710_v19, %v880_v18  ;;  %vm887_vm15 = vweird.f32 %v2710_v19  ;;  %v3382_v18 = vld [vmem:[%s3904_s15 + $0x8] sm:$0xff] }
 0xfce   :  { %vm888_vm6 = vmor %vm886_vm5, %vm887_vm15  ;;  %1047 = vmatpush.msra.mxu2 %v3382_v18 }
 0xfcf   :  { %v883_v23 = vsub.f32 1.0, %v882_v20  ;;  %v3393_v20 = vld [vmem:[%s3904_s15] sm:$0xff] }
 0xfd0   :  { %1048 = vmatpush.msra.mxu2 %v3393_v20 }
 0xfd1   :  { %v884_v24 = vmul.f32 %v2710_v19, %v883_v23  ;;  %v105_v23 = vld [vmem:[%s3905_s16] sm:$0xff] }
 0xfd3   :  { %v885_v26 = vadd.f32 %v2710_v19, %v884_v24  ;;  %v2827_v24 = vld [vmem:[%s3893_s4] sm:$0x3] }
 0xfd4   :  { %2598 = vmatmul.msk.f32.vlgmr.msra.gmra.mxu2 %vm128_vm2, %v2827_v24  ;;  %v3511_v24 = vld [vmem:[%s3894_s5] sm:$0x3] }
 0xfd5   :  { %v889_v29 = vsel %vm888_vm6, %v2710_v19, %v885_v26  ;;  %v106_v19 = vld [vmem:[%s3905_s16 + $0x8] sm:$0xff]  ;;  %v3410_v26 = vld [vmem:[%s3902_s13 + $0x18] sm:$0xff] }
 0xfd6   :  { %v894_v32 = vsel %vm891_vm7, %v893_v31, %v889_v29  ;;  %1292 = vmatpush.msrb.mxu2 %v3410_v26  ;;  %v3431_v29 = vld [vmem:[%s3902_s13] sm:$0xff] }
 0xfd7   :  { %v906_v37 = vsub.f32 1.0, %v894_v32  ;;  %v914_v39 = vmul.f32 %v912_v62, %v894_v32 }
 0xfd8   :  { %1293 = vmatpush.msrb.mxu2 %v3417_v27 }
 0xfda   :  { %1294 = vmatpush.msrb.mxu2 %v3424_v28 }
 0xfdc   :  { %1295 = vmatpush.msrb.mxu2 %v3431_v29 }
 0xfde   :  { %1450 = vmatpush.msra.mxu2 %v3410_v26 }
 0xfe0   :  { %1451 = vmatpush.msra.mxu2 %v3417_v27 }
 0xfe2   :  { %1452 = vmatpush.msra.mxu2 %v3424_v28 }
 0xfe4   :  { %1453 = vmatpush.msra.mxu2 %v3431_v29 }
0x102b   :  { %v897_v47 = vpop.permute.xlu1 %896 }
0x102c   :  { %v899_v33 = vmul.f32 %v897_v47, %v894_v32 }
0x102e   :  { %901 = vrot.lane.b32.xlu0 %v899_v33, %s2886_s28 }
0x1033   :  { %v918_v49 = vpop.permute.xlu1 %917 }
0x1034   :  { %v920_v34 = vmul.f32 %v918_v49, %v3307_v21 }
0x1036   :  { %922 = vrot.lane.b32.xlu1 %v920_v34, %s2885_s1 }
0x10a0   :  { %v902_v35 = vpop.permute.xlu0 %901 }
0x10a1   :  { %v904_v36 = vadd.f32 %v902_v35, %v3301_v7 }
0x10a3   :  { %2711 = vtanh.f32 %v904_v36 }
0x10a8   :  { %v923_v45 = vpop.permute.xlu1 %922 }
0x10a9   :  { %v2712_v54 = vpop.eup %2711 }
0x10aa   :  { %908 = vrot.lane.b32.xlu0 %v2712_v54, %s2888_s12 }
0x111c   :  { %v909_v38 = vpop.permute.xlu0 %908 }
0x111d   :  { %v911_v42 = vmul.f32 %v909_v38, %v906_v37  ;;  %v1050_v38 = vpop.f32.mrf.mxu2 }
0x111f   :  { %v915_v43 = vadd.f32 %v914_v39, %v911_v42 }
0x1121   :  { %v916_v44 = vmul.f32 %v915_v43, %v3313_v30 }
0x1123   :  { %v3340_v46 = vadd.f32 %v923_v45, %v916_v44 }
0x1125   :  { %v927_v63 = vrot.slane %v3340_v46, 4  ;;  %v991_v50 = vrot.slane %v3340_v46, 6  ;;  %v3464_v46 = vld [vmem:[%s3916_s2] sm:$0xff] }
0x1127   :  { %928 = vrot.lane.b32.xlu2 %v927_v63, %s2888_s12 }
0x112f   :  { %996 = vrot.lane.b32.xlu2 %v991_v50, %s2888_s12 }
0x1181   :  { %v929_v52 = vpop.permute.xlu2 %928 }
0x1182   :  { %2595 = vmatmul.msk.f32.vlgmr.msra.gmra.mxu0 %vm128_vm2, %v929_v52 }
0x1183   :  { %1793 = vmatpush.msra.mxu0 %v3360_v8 }
0x1185   :  { %1794 = vmatpush.msra.mxu0 %v3365_v16 }
0x1187   :  { %1795 = vmatpush.msra.mxu0 %v3382_v18 }
0x1189   :  { %v997_v5 = vpop.permute.xlu2 %996  ;;  %1796 = vmatpush.msra.mxu0 %v3393_v20 }
0x118a   :  { %v999_v6 = vmul.f32 %v997_v5, %v3307_v21  ;;  %v3371_v21 = vld [vmem:[%s3905_s16 + $0x18] sm:$0xff] }
0x118b   :  { %1023 = vmatpush.msrb.mxu1 %v3371_v21 }
0x118d   :  { %1024 = vmatpush.msrb.mxu1 %v3376_v17 }
0x118f   :  { %1025 = vmatpush.msrb.mxu1 %v106_v19 }
0x1191   :  { %1026 = vmatpush.msrb.mxu1 %v105_v23 }
0x1193   :  { %1213 = vmatpush.msra.mxu1 %v3410_v26 }
0x1195   :  { %1214 = vmatpush.msra.mxu1 %v3417_v27 }
0x1197   :  { %1215 = vmatpush.msra.mxu1 %v3424_v28 }
0x1199   :  { %1216 = vmatpush.msra.mxu1 %v3431_v29 }
0x11ff   :  { %v949_v53 = vpop.f32.mrf.mxu0 }
0x1200   :  { %v950_v55 = vadd.f32 %v3182_v59, %v949_v53 }
0x1202   :  { %v953_v56 = vrot.slane %v950_v55, 2 }
0x1204   :  { %975 = vrot.lane.b32.xlu0 %v953_v56, %s2886_s28  ;;  %v955_v57 = vadd.f32 %v953_v56, %v3301_v7 }
0x1206   :  { %v2596_v60 = vmul.f32 -1.442695, %v955_v57 }
0x1208   :  { %2713 = vpow2.f32 %v2596_v60 }
0x120e   :  { %v2714_v1 = vpop.eup %2713 }
0x120f   :  { %v959_v9 = vadd.f32 1.0, %v2714_v1 }
0x1211   :  { %2715 = vrcp.f32 %v959_v9  ;;  %v971_v11 = vand.u32 2147483648, %v959_v9  ;;  %vm965_vm9 = vweird.f32 %v959_v9  ;;  %v969_v12 = vand.u32 2147483647, %v959_v9 }
0x1213   :  { %v972_v13 = vor.u32 1.1754944e-38, %v971_v11  ;;  %vm970_vm11 = vcmp.eq.f32.partialorder %v969_v12, 8.507059e+37 }
0x1217   :  { %v2716_v2 = vpop.eup %2715 }
0x1218   :  { %v961_v3 = vmul.f32 %v2716_v2, %v959_v9  ;;  %vm966_vm8 = vweird.f32 %v2716_v2 }
0x1219   :  { %vm967_vm10 = vmor %vm965_vm9, %vm966_vm8 }
0x121a   :  { %v962_v4 = vsub.f32 1.0, %v961_v3 }
0x121c   :  { %v963_v10 = vmul.f32 %v2716_v2, %v962_v4 }
0x121e   :  { %v964_v40 = vadd.f32 %v2716_v2, %v963_v10 }
0x1220   :  { %v968_v59 = vsel %vm967_vm10, %v2716_v2, %v964_v40  ;;  %v3499_v2 = vld [vmem:[%s3898_s9] ss:$0 sm:$0xff] }
0x1221   :  { %v973_v48 = vsel %vm970_vm11, %v972_v13, %v968_v59  ;;  %v3503_v40 = vld [vmem:[#allocation2] ss:$0 sm:$0xff] }
0x1222   :  { %v985_v31 = vsub.f32 1.0, %v973_v48  ;;  %v993_v32 = vmul.f32 %v991_v50, %v973_v48  ;;  %v3484_v50 = vld [vmem:[%s3917_s0] sm:$0xff] }
0x1276   :  { %v976_v41 = vpop.permute.xlu0 %975 }
0x1277   :  { %v978_v22 = vmul.f32 %v976_v41, %v973_v48 }
0x1279   :  { %980 = vrot.lane.b32.xlu1 %v978_v22, %s2886_s28 }
0x1281   :  { %1001 = vrot.lane.b32.xlu1 %v999_v6, %s2885_s1 }
0x12eb   :  { %v981_v14 = vpop.permute.xlu1 %980 }
0x12ec   :  { %v983_v15 = vadd.f32 %v981_v14, %v3301_v7 }
0x12ee   :  { %2717 = vtanh.f32 %v983_v15 }
0x12f3   :  { %v1002_v35 = vpop.permute.xlu1 %1001 }
0x12f4   :  { %v2718_v62 = vpop.eup %2717 }
0x12f5   :  { %987 = vrot.lane.b32.xlu0 %v2718_v62, %s2888_s12 }
0x1367   :  { %v988_v47 = vpop.permute.xlu0 %987 }
0x1368   :  { %v990_v33 = vmul.f32 %v988_v47, %v985_v31 }
0x136a   :  { %v994_v49 = vadd.f32 %v993_v32, %v990_v33 }
0x136c   :  { %v995_v34 = vmul.f32 %v994_v49, %v3313_v30  ;;  %v2655_v30 = vld [vmem:[%s3907_s18] ss:$0 sm:$0xff] }
0x136d   :  { %v3452_v42 = vadd.f32 %v2655_v30, %v3177_v58  ;;  %v3475_v58 = vld [vmem:[%s3916_s2 + $0x8] sm:$0xff] }
0x136e   :  { %v1004_v36 = vadd.f32 %v1002_v35, %v995_v34 }
0x1370   :  { %v1006_v54 = vrot.slane %v1004_v36, 6  ;;  %v3529_v36 = vld [vmem:[%s3903_s14] ss:$0 sm:$0xff] }
0x1372   :  { %1007 = vrot.lane.b32.xlu2 %v1006_v54, %s2888_s12 }
0x13cc   :  { %v1008_v37 = vpop.permute.xlu2 %1007 }
0x13cd   :  { %2597 = vmatmul.msk.f32.vlgmr.msrb.gmra.mxu1 %vm128_vm2, %v1008_v37 }
0x13ce   :  { %1371 = vmatpush.msrb.mxu1 %v3410_v26 }
0x13d0   :  { %1372 = vmatpush.msrb.mxu1 %v3417_v27 }
0x13d2   :  { %1373 = vmatpush.msrb.mxu1 %v3424_v28 }
0x13d4   :  { %1374 = vmatpush.msrb.mxu1 %v3431_v29 }
0x144a   :  { %v1028_v39 = vpop.f32.mrf.mxu1 }
0x144b   :  { %v1051_v43 = vadd.f32 %v1050_v38, %v1028_v39 }
0x144d   :  { %v3455_v44 = vadd.f32 %v1051_v43, %v3452_v42 }
0x144f   :  { %v1054_v45 = vmax.f32 %v3455_v44, 0.0 }
0x1451   :  { %2599 = vmatpush.msk.msrb.mxu3 %vm234_vm0, %v1054_v45 }
0x1452   :  { %2600 = vmatmul.msk.f32.vlgmr.msrb.gmra.mxu3 %vm227_vm1, %v3464_v46 }
0x1453   :  { %1534 = vmatpush.msra.mxu3 %v3410_v26 }
0x1455   :  { %1535 = vmatpush.msra.mxu3 %v3417_v27 }
0x1457   :  { %1536 = vmatpush.msra.mxu3 %v3424_v28 }
0x1459   :  { %1537 = vmatpush.msra.mxu3 %v3431_v29 }
0x145a   :  { %2601 = vmatmul.msk.f32.gmra.mxu3 %vm227_vm1, %v3475_v58 }
0x145b   :  { %1771 = vmatpush.msrb.mxu3 %v3371_v21 }
0x145d   :  { %1772 = vmatpush.msrb.mxu3 %v3376_v17 }
0x145f   :  { %1773 = vmatpush.msrb.mxu3 %v106_v19 }
0x1461   :  { %1774 = vmatpush.msrb.mxu3 %v105_v23 }
0x14d5   :  { %v1075_v63 = vpop.f32.mrf.mxu3 }
0x14d6   :  { %v1083_v52 = vsub.f32 %v3484_v50, %v1075_v63  ;;  %v1081_v55 = vmul.f32 %v3484_v50, %v1075_v63 }
0x14d8   :  { %v1085_v53 = vand.u32 2147483647, %v1083_v52 }
0x14da   :  { %1089 = vrot.lane.b32.xlu0 %v1085_v53, %s2885_s1 }
0x154c   :  { %v1090_v56 = vpop.permute.xlu0 %1089 }
0x154d   :  { %v1095_v57 = vsel %vm128_vm2, %v1081_v55, %v1090_v56 }
0x154e   :  { %2602 = vmatmul.msk.f32.vlgmr.msrb.gmra.mxu0 %vm134_vm3, %v1095_v57 }
0x154f   :  { %2040 = vmatpush.msrb.mxu0 %v3410_v26 }
0x1551   :  { %2041 = vmatpush.msrb.mxu0 %v3417_v27 }
0x1553   :  { %2042 = vmatpush.msrb.mxu0 %v3424_v28 }
0x1555   :  { %2043 = vmatpush.msrb.mxu0 %v3431_v29 }
0x15cb   :  { %v1120_v60 = vpop.f32.mrf.mxu0 }
0x15cc   :  { %v1126_v1 = vadd.f32 %v1120_v60, %v3167_v51 }
0x15ce   :  { %2719 = vtanh.f32 %v1126_v1 }
0x15d4   :  { %v2720_v9 = vpop.eup %2719 }
0x15d5   :  { %v1130_v3 = vmul.f32 %v3499_v2, %v2720_v9 }
0x15d7   :  { %v1132_v4 = vsel %vm315_vm4, %v1130_v3, 0.0 }
0x15d8   :  { %1133 = vadd.xlane.f32.xlu1 %v1132_v4 }
0x164b   :  { %v1134_v10 = vpop.xlane.xlu1 %1133 }
0x164c   :  { %v1138_v11 = vadd.f32 %v3503_v40, %v1134_v10 }
0x164e   :  { %v2604_v12 = vmul.f32 -1.442695, %v1138_v11 }
0x1650   :  { %2721 = vpow2.f32 %v2604_v12 }
0x1656   :  { %v2722_v59 = vpop.eup %2721 }
0x1657   :  { %v1146_v13 = vadd.f32 1.0, %v2722_v59 }
0x1659   :  { %2723 = vrcp.f32 %v1146_v13  ;;  %v1159_v5 = vand.u32 2147483648, %v1146_v13  ;;  %v1157_v14 = vand.u32 2147483647, %v1146_v13  ;;  %vm1153_vm13 = vweird.f32 %v1146_v13 }
0x165b   :  { %v1160_v62 = vor.u32 1.1754944e-38, %v1159_v5  ;;  %vm1158_vm15 = vcmp.eq.f32.partialorder %v1157_v14, 8.507059e+37 }
0x165f   :  { %v2724_v41 = vpop.eup %2723 }
0x1660   :  { %v1149_v48 = vmul.f32 %v2724_v41, %v1146_v13  ;;  %vm1154_vm12 = vweird.f32 %v2724_v41 }
0x1661   :  { %vm1155_vm14 = vmor %vm1153_vm13, %vm1154_vm12 }
0x1662   :  { %v1150_v22 = vsub.f32 1.0, %v1149_v48 }
0x1664   :  { %v1151_v6 = vmul.f32 %v2724_v41, %v1150_v22 }
0x1666   :  { %v1152_v15 = vadd.f32 %v2724_v41, %v1151_v6 }
0x1668   :  { %v1156_v21 = vsel %vm1155_vm14, %v2724_v41, %v1152_v15 }
0x1669   :  { %v1161_v17 = vsel %vm1158_vm15, %v1160_v62, %v1156_v21 }
0x166a   :  { %1180 = vperm.xlu0 %2651, %v1161_v17   ;;  %v1184_v19 = vsub.f32 1.0, %v1161_v17 }
0x166c   :  { %1187 = vperm.xlu2 %2650, %v1184_v19  }
0x16c6   :  { %v3506_v23 = vpop.permute.xlu2 %1187 }
0x16c7   :  { %v1190_v31 = vmul.f32 %v3511_v24, %v3506_v23 }
0x16c9   :  { %1192 = vrot.lane.b32.xlu2 %v1190_v31, %s2885_s1 }
0x16dc   :  { %v3516_v47 = vpop.permute.xlu0 %1180 }
0x16dd   :  { %v1183_v32 = vmul.f32 %v3516_v47, %v3208_v61 }
0x1723   :  { %v1193_v33 = vpop.permute.xlu2 %1192 }
0x1724   :  { %v1195_v49 = vadd.f32 %v1193_v33, %v1183_v32 }
0x1726   :  { %1197 = vrot.lane.b32.xlu0 %v1195_v49, %s2888_s12  ;;  %v1260_v39 = vrot.slane %v1195_v49, 6 }
0x1798   :  { %v1198_v34 = vpop.permute.xlu0 %1197 }
0x1799   :  { %2606 = vmatmul.msk.f32.vlgmr.msra.gmra.mxu1 %vm128_vm2, %v1198_v34 }
0x179a   :  { %1613 = vmatpush.msra.mxu1 %v3410_v26 }
0x179c   :  { %1614 = vmatpush.msra.mxu1 %v3417_v27 }
0x179e   :  { %1615 = vmatpush.msra.mxu1 %v3424_v28 }
0x17a0   :  { %1616 = vmatpush.msra.mxu1 %v3431_v29 }
0x1816   :  { %v1218_v35 = vpop.f32.mrf.mxu1 }
0x1817   :  { %v1219_v54 = vadd.f32 %v3529_v36, %v1218_v35 }
0x1819   :  { %v1222_v37 = vrot.slane %v1219_v54, 6 }
0x181b   :  { %v1224_v30 = vadd.f32 %v1222_v37, %v3192_v0  ;;  %1244 = vrot.lane.b32.xlu2 %v1222_v37, %s2886_s28 }
0x181d   :  { %v2607_v38 = vmul.f32 -1.442695, %v1224_v30 }
0x181f   :  { %2725 = vpow2.f32 %v2607_v38 }
0x1823   :  { %1265 = vrot.lane.b32.xlu2 %v1260_v39, %s2888_s12 }
0x1825   :  { %v2726_v43 = vpop.eup %2725 }
0x1826   :  { %v1228_v63 = vadd.f32 1.0, %v2726_v43 }
0x1828   :  { %2727 = vrcp.f32 %v1228_v63  ;;  %v1240_v56 = vand.u32 2147483648, %v1228_v63  ;;  %v1238_v60 = vand.u32 2147483647, %v1228_v63  ;;  %vm1234_vm6 = vweird.f32 %v1228_v63 }
0x182a   :  { %v1241_v9 = vor.u32 1.1754944e-38, %v1240_v56  ;;  %vm1239_vm8 = vcmp.eq.f32.partialorder %v1238_v60, 8.507059e+37 }
0x182e   :  { %v2728_v52 = vpop.eup %2727 }
0x182f   :  { %v1230_v53 = vmul.f32 %v2728_v52, %v1228_v63  ;;  %vm1235_vm5 = vweird.f32 %v2728_v52 }
0x1830   :  { %vm1236_vm7 = vmor %vm1234_vm6, %vm1235_vm5 }
0x1831   :  { %v1231_v55 = vsub.f32 1.0, %v1230_v53 }
0x1833   :  { %v1232_v57 = vmul.f32 %v2728_v52, %v1231_v55 }
0x1835   :  { %v1233_v1 = vadd.f32 %v2728_v52, %v1232_v57 }
0x1837   :  { %v1237_v3 = vsel %vm1236_vm7, %v2728_v52, %v1233_v1 }
0x1838   :  { %v1242_v4 = vsel %vm1239_vm8, %v1241_v9, %v1237_v3 }
0x1839   :  { %v1262_v10 = vmul.f32 %v1260_v39, %v1242_v4  ;;  %v1254_v5 = vsub.f32 1.0, %v1242_v4 }
0x1875   :  { %v1245_v11 = vpop.permute.xlu2 %1244 }
0x1876   :  { %v1247_v12 = vmul.f32 %v1245_v11, %v1242_v4 }
0x1878   :  { %1249 = vrot.lane.b32.xlu0 %v1247_v12, %s2886_s28 }
0x187d   :  { %v1266_v59 = vpop.permute.xlu2 %1265 }
0x187e   :  { %v1268_v13 = vmul.f32 %v1266_v59, %v3506_v23 }
0x1880   :  { %1270 = vrot.lane.b32.xlu2 %v1268_v13, %s2885_s1 }
0x18da   :  { %v1271_v21 = vpop.permute.xlu2 %1270 }
0x18ea   :  { %v1250_v41 = vpop.permute.xlu0 %1249 }
0x18eb   :  { %v1252_v48 = vadd.f32 %v1250_v41, %v3192_v0 }
0x18ed   :  { %2729 = vtanh.f32 %v1252_v48 }
0x18f3   :  { %v2730_v22 = vpop.eup %2729 }
0x18f4   :  { %1256 = vrot.lane.b32.xlu0 %v2730_v22, %s2888_s12 }
0x1966   :  { %v1257_v6 = vpop.permute.xlu0 %1256 }
0x1967   :  { %v1259_v14 = vmul.f32 %v1257_v6, %v1254_v5 }
0x1969   :  { %v1263_v15 = vadd.f32 %v1262_v10, %v1259_v14 }
0x196b   :  { %v1264_v62 = vmul.f32 %v1263_v15, %v3516_v47  ;;  %v1078_v15 = vpop.f32.mrf.mxu3 }
0x196d   :  { %v1273_v17 = vadd.f32 %v1271_v21, %v1264_v62 }
0x196f   :  { %v1275_v19 = vrot.slane %v1273_v17, 2  ;;  %v1339_v31 = vrot.slane %v1273_v17, 6  ;;  %v3568_v17 = vld [vmem:[%s3917_s0 + $0x8] sm:$0xff] }
0x1971   :  { %1276 = vrot.lane.b32.xlu0 %v1275_v19, %s2888_s12  ;;  %v1084_v19 = vsub.f32 %v3568_v17, %v1078_v15 }
0x1979   :  { %1344 = vrot.lane.b32.xlu0 %v1339_v31, %s2888_s12 }
0x19e3   :  { %v1277_v32 = vpop.permute.xlu0 %1276 }
0x19e4   :  { %2608 = vmatmul.msk.f32.vlgmr.msrb.gmra.mxu2 %vm128_vm2, %v1277_v32 }
0x19e5   :  { %1692 = vmatpush.msrb.mxu2 %v3410_v26 }
0x19e7   :  { %1693 = vmatpush.msrb.mxu2 %v3417_v27 }
0x19e9   :  { %1694 = vmatpush.msrb.mxu2 %v3424_v28 }
0x19eb   :  { %v1345_v33 = vpop.permute.xlu0 %1344  ;;  %1695 = vmatpush.msrb.mxu2 %v3431_v29 }
0x19ec   :  { %v1347_v49 = vmul.f32 %v1345_v33, %v3506_v23 }
0x19ee   :  { %1349 = vrot.lane.b32.xlu0 %v1347_v49, %s2885_s1  ;;  %v1082_v49 = vmul.f32 %v3568_v17, %v1078_v15 }
0x1a60   :  { %v1350_v6 = vpop.permute.xlu0 %1349 }
0x1a67   :  { %v1297_v34 = vpop.f32.mrf.mxu2 }
0x1a68   :  { %v1298_v35 = vadd.f32 %v3529_v36, %v1297_v34 }
0x1a6a   :  { %v1301_v54 = vrot.slane %v1298_v35, 4 }
0x1a6c   :  { %1323 = vrot.lane.b32.xlu2 %v1301_v54, %s2886_s28  ;;  %v1303_v37 = vadd.f32 %v1301_v54, %v3192_v0 }
0x1a6e   :  { %v2609_v30 = vmul.f32 -1.442695, %v1303_v37 }
0x1a70   :  { %2731 = vpow2.f32 %v2609_v30 }
0x1a76   :  { %v2732_v38 = vpop.eup %2731 }
0x1a77   :  { %v1307_v39 = vadd.f32 1.0, %v2732_v38 }
0x1a79   :  { %2733 = vrcp.f32 %v1307_v39  ;;  %v1319_v56 = vand.u32 2147483648, %v1307_v39  ;;  %vm1313_vm10 = vweird.f32 %v1307_v39  ;;  %v1317_v57 = vand.u32 2147483647, %v1307_v39 }
0x1a7b   :  { %v1320_v1 = vor.u32 1.1754944e-38, %v1319_v56  ;;  %vm1318_vm12 = vcmp.eq.f32.partialorder %v1317_v57, 8.507059e+37 }
0x1a7f   :  { %v2734_v43 = vpop.eup %2733 }
0x1a80   :  { %v1309_v63 = vmul.f32 %v2734_v43, %v1307_v39  ;;  %vm1314_vm9 = vweird.f32 %v2734_v43 }
0x1a81   :  { %vm1315_vm11 = vmor %vm1313_vm10, %vm1314_vm9 }
0x1a82   :  { %v1310_v52 = vsub.f32 1.0, %v1309_v63 }
0x1a84   :  { %v1311_v53 = vmul.f32 %v2734_v43, %v1310_v52 }
0x1a86   :  { %v1312_v55 = vadd.f32 %v2734_v43, %v1311_v53 }
0x1a88   :  { %v1316_v60 = vsel %vm1315_vm11, %v2734_v43, %v1312_v55 }
0x1a89   :  { %v1321_v3 = vsel %vm1318_vm12, %v1320_v1, %v1316_v60 }
0x1a8a   :  { %v1333_v59 = vsub.f32 1.0, %v1321_v3  ;;  %v1341_v41 = vmul.f32 %v1339_v31, %v1321_v3  ;;  %v1086_v31 = vand.u32 2147483647, %v1084_v19 }
0x1ac6   :  { %v1324_v9 = vpop.permute.xlu2 %1323 }
0x1ac7   :  { %v1326_v4 = vmul.f32 %v1324_v9, %v1321_v3 }
0x1ac9   :  { %1328 = vrot.lane.b32.xlu1 %v1326_v4, %s2886_s28 }
0x1b3b   :  { %v1329_v10 = vpop.permute.xlu1 %1328 }
0x1b3c   :  { %v1331_v11 = vadd.f32 %v1329_v10, %v3192_v0 }
0x1b3e   :  { %2735 = vtanh.f32 %v1331_v11 }
0x1b44   :  { %v2736_v12 = vpop.eup %2735 }
0x1b45   :  { %1335 = vrot.lane.b32.xlu2 %v2736_v12, %s2888_s12 }
0x1b9f   :  { %v1336_v13 = vpop.permute.xlu2 %1335 }
0x1ba0   :  { %v1338_v48 = vmul.f32 %v1336_v13, %v1333_v59 }
0x1ba2   :  { %v1342_v22 = vadd.f32 %v1341_v41, %v1338_v48 }
0x1ba4   :  { %v1343_v5 = vmul.f32 %v1342_v22, %v3516_v47 }
0x1ba6   :  { %v3557_v14 = vadd.f32 %v1350_v6, %v1343_v5 }
0x1ba8   :  { %v1418_v62 = vrot.slane %v3557_v14, 6  ;;  %v1354_v21 = vrot.slane %v3557_v14, 4  ;;  %v2840_v14 = vld [vmem:[%s3896_s7 + $0x38] sm:$0xff] }
0x1baa   :  { %1423 = vrot.lane.b32.xlu1 %v1418_v62, %s2888_s12  ;;  %1355 = vrot.lane.b32.xlu2 %v1354_v21, %s2888_s12 }
0x1bb2   :  { %1091 = vrot.lane.b32.xlu1 %v1086_v31, %s2885_s1 }
0x1c04   :  { %v1356_v32 = vpop.permute.xlu2 %1355 }
0x1c05   :  { %2610 = vmatmul.msk.f32.vlgmr.msrb.gmra.mxu1 %vm128_vm2, %v1356_v32 }
0x1c1c   :  { %v1424_v33 = vpop.permute.xlu1 %1423 }
0x1c1d   :  { %v1426_v10 = vmul.f32 %v1424_v33, %v3506_v23 }
0x1c24   :  { %v1092_v34 = vpop.permute.xlu1 %1091 }
0x1c25   :  { %v1096_v35 = vsel %vm128_vm2, %v1082_v49, %v1092_v34 }
0x1c26   :  { %2603 = vmatmul.msk.f32.gmra.mxu0 %vm134_vm3, %v1096_v35  ;;  %v2843_v35 = vld [vmem:[%s3896_s7 + $0x20] sm:$0xff] }
0x1c2e   :  { %2621 = vmatmul.msk.f32.vlgmr.msra.gmra.mxu0 %vm128_vm2, %v1054_v45 }
0x1c2f   :  { %2198 = vmatpush.msra.mxu0 %v3410_v26 }
0x1c31   :  { %2199 = vmatpush.msra.mxu0 %v3417_v27 }
0x1c33   :  { %2200 = vmatpush.msra.mxu0 %v3424_v28 }
0x1c35   :  { %2201 = vmatpush.msra.mxu0 %v3431_v29 }
0x1c82   :  { %v1376_v54 = vpop.f32.mrf.mxu1 }
0x1c83   :  { %v1377_v37 = vadd.f32 %v3529_v36, %v1376_v54  ;;  %v2844_v54 = vld [vmem:[%s3896_s7 + $0x18] sm:$0xff] }
0x1c85   :  { %v1380_v30 = vrot.slane %v1377_v37, 2  ;;  %v2845_v37 = vld [vmem:[%s3896_s7 + $0x10] sm:$0xff] }
0x1c87   :  { %1402 = vrot.lane.b32.xlu0 %v1380_v30, %s2886_s28  ;;  %v1382_v38 = vadd.f32 %v1380_v30, %v3192_v0  ;;  %v2846_v30 = vld [vmem:[%s3896_s7 + $0x8] sm:$0xff] }
0x1c89   :  { %v2611_v39 = vmul.f32 -1.442695, %v1382_v38  ;;  %v2847_v38 = vld [vmem:[%s3896_s7] sm:$0xff] }
0x1c8b   :  { %2737 = vpow2.f32 %v2611_v39 }
0x1c91   :  { %v2738_v44 = vpop.eup %2737 }
0x1c92   :  { %v1386_v45 = vadd.f32 1.0, %v2738_v44 }
0x1c94   :  { %2739 = vrcp.f32 %v1386_v45  ;;  %v1398_v56 = vand.u32 2147483648, %v1386_v45  ;;  %vm1392_vm14 = vweird.f32 %v1386_v45  ;;  %v1396_v57 = vand.u32 2147483647, %v1386_v45 }
0x1c96   :  { %v1399_v1 = vor.u32 1.1754944e-38, %v1398_v56  ;;  %vm1397_vm5 = vcmp.eq.f32.partialorder %v1396_v57, 8.507059e+37 }
0x1c9a   :  { %v2740_v43 = vpop.eup %2739 }
0x1c9b   :  { %v1388_v63 = vmul.f32 %v2740_v43, %v1386_v45  ;;  %vm1393_vm13 = vweird.f32 %v2740_v43 }
0x1c9c   :  { %vm1394_vm15 = vmor %vm1392_vm14, %vm1393_vm13 }
0x1c9d   :  { %v1389_v52 = vsub.f32 1.0, %v1388_v63 }
0x1c9f   :  { %v1390_v53 = vmul.f32 %v2740_v43, %v1389_v52 }
0x1ca1   :  { %v1391_v55 = vadd.f32 %v2740_v43, %v1390_v53 }
0x1ca3   :  { %v1395_v60 = vsel %vm1394_vm15, %v2740_v43, %v1391_v55  ;;  %v1123_v11 = vpop.f32.mrf.mxu0 }
0x1ca4   :  { %v1400_v3 = vsel %vm1397_vm5, %v1399_v1, %v1395_v60  ;;  %v1127_v12 = vadd.f32 %v1123_v11, %v3279_v25 }
0x1ca5   :  { %v1412_v23 = vsub.f32 1.0, %v1400_v3  ;;  %v1420_v15 = vmul.f32 %v1418_v62, %v1400_v3  ;;  %v2842_v62 = vld [vmem:[%s3896_s7 + $0x28] sm:$0xff] }
0x1ca6   :  { %2741 = vtanh.f32 %v1127_v12 }
0x1cac   :  { %v2742_v59 = vpop.eup %2741 }
0x1cad   :  { %v1131_v13 = vmul.f32 %v3499_v2, %v2742_v59 }
0x1caf   :  { %v1135_v41 = vsel %vm315_vm4, %v1131_v13, 0.0 }
0x1cf9   :  { %v1403_v9 = vpop.permute.xlu0 %1402 }
0x1cfa   :  { %v1405_v4 = vmul.f32 %v1403_v9, %v1400_v3 }
0x1cfc   :  { %1407 = vrot.lane.b32.xlu2 %v1405_v4, %s2886_s28 }
0x1d04   :  { %1428 = vrot.lane.b32.xlu2 %v1426_v10, %s2885_s1 }
0x1d2d   :  { %1136 = vadd.xlane.f32.xlu2 %v1135_v41 }
0x1d56   :  { %v1408_v48 = vpop.permute.xlu2 %1407 }
0x1d57   :  { %v1410_v22 = vadd.f32 %v1408_v48, %v3192_v0 }
0x1d59   :  { %2743 = vtanh.f32 %v1410_v22 }
0x1d5e   :  { %v1429_v32 = vpop.permute.xlu2 %1428 }
0x1d5f   :  { %v2744_v5 = vpop.eup %2743 }
0x1d60   :  { %1414 = vrot.lane.b32.xlu0 %v2744_v5, %s2888_s12 }
0x1da0   :  { %v1137_v39 = vpop.xlane.xlu2 %1136 }
0x1da1   :  { %v1139_v44 = vadd.f32 %v3503_v40, %v1137_v39 }
0x1da3   :  { %v2605_v45 = vmul.f32 -1.442695, %v1139_v44 }
0x1da5   :  { %2745 = vpow2.f32 %v2605_v45 }
0x1dab   :  { %v2746_v43 = vpop.eup %2745 }
0x1dac   :  { %v1147_v63 = vadd.f32 1.0, %v2746_v43 }
0x1dae   :  { %2747 = vrcp.f32 %v1147_v63  ;;  %v1174_v1 = vand.u32 2147483648, %v1147_v63  ;;  %vm1168_vm7 = vweird.f32 %v1147_v63  ;;  %v1172_v3 = vand.u32 2147483647, %v1147_v63 }
0x1db0   :  { %v1175_v10 = vor.u32 1.1754944e-38, %v1174_v1  ;;  %vm1173_vm9 = vcmp.eq.f32.partialorder %v1172_v3, 8.507059e+37 }
0x1db4   :  { %v2748_v52 = vpop.eup %2747 }
0x1db5   :  { %v1164_v53 = vmul.f32 %v2748_v52, %v1147_v63  ;;  %vm1169_vm6 = vweird.f32 %v2748_v52 }
0x1db6   :  { %vm1170_vm8 = vmor %vm1168_vm7, %vm1169_vm6 }
0x1db7   :  { %v1165_v55 = vsub.f32 1.0, %v1164_v53 }
0x1db9   :  { %v1166_v56 = vmul.f32 %v2748_v52, %v1165_v55 }
0x1dbb   :  { %v1167_v57 = vadd.f32 %v2748_v52, %v1166_v56 }
0x1dbd   :  { %v1171_v4 = vsel %vm1170_vm8, %v2748_v52, %v1167_v57 }
0x1dbe   :  { %v1176_v11 = vsel %vm1173_vm9, %v1175_v10, %v1171_v4 }
0x1dbf   :  { %v1504_v12 = vsub.f32 1.0, %v1176_v11 }
0x1dd2   :  { %v1415_v6 = vpop.permute.xlu0 %1414 }
0x1dd3   :  { %v1417_v21 = vmul.f32 %v1415_v6, %v1412_v23 }
0x1dd5   :  { %v1421_v19 = vadd.f32 %v1420_v15, %v1417_v21 }
0x1dd7   :  { %v1422_v31 = vmul.f32 %v1421_v19, %v3516_v47  ;;  %v2841_v47 = vld [vmem:[%s3896_s7 + $0x30] sm:$0xff] }
0x1dd9   :  { %v3597_v33 = vadd.f32 %v1429_v32, %v1422_v31 }
0x1ddb   :  { %v1433_v49 = vrot.slane %v3597_v33, 6 }
0x1ddd   :  { %1434 = vrot.lane.b32.xlu0 %v1433_v49, %s2888_s12 }
0x1e4f   :  { %v3603_v34 = vpop.permute.xlu0 %1434 }
0x1e50   :  { %2612 = vmatmul.msk.f32.vlgmr.msra.gmra.mxu2 %vm128_vm2, %v3603_v34 }
0x1e51   :  { %1859 = vmatpush.msra.mxu2 %v2840_v14 }
0x1e53   :  { %1860 = vmatpush.msra.mxu2 %v2841_v47 }
0x1e55   :  { %1861 = vmatpush.msra.mxu2 %v2842_v62 }
0x1e57   :  { %1862 = vmatpush.msra.mxu2 %v2843_v35 }
0x1e59   :  { %1863 = vmatpush.msra.mxu2 %v2844_v54 }
0x1e5b   :  { %1864 = vmatpush.msra.mxu2 %v2845_v37 }
0x1e5d   :  { %1865 = vmatpush.msra.mxu2 %v2846_v30 }
0x1e5f   :  { %1866 = vmatpush.msra.mxu2 %v2847_v38 }
0x1ed3   :  { %v1455_v60 = vpop.f32.mrf.mxu2 }
0x1ed4   :  { %v1456_v9 = vadd.f32 %v3529_v36, %v1455_v60 }
0x1ed6   :  { %1479 = vrot.lane.b32.xlu1 %v1456_v9, %s2886_s28  ;;  %v1458_v59 = vadd.f32 %v1456_v9, %v3301_v7 }
0x1ed8   :  { %v2613_v13 = vmul.f32 -1.442695, %v1458_v59 }
0x1eda   :  { %2749 = vpow2.f32 %v2613_v13 }
0x1ede   :  { %1507 = vperm.xlu1 %2652, %v1504_v12  }
0x1ee0   :  { %v2750_v41 = vpop.eup %2749 }
0x1ee1   :  { %v1462_v48 = vadd.f32 1.0, %v2750_v41 }
0x1ee3   :  { %2751 = vrcp.f32 %v1462_v48  ;;  %v1474_v21 = vand.u32 2147483648, %v1462_v48  ;;  %vm1468_vm11 = vweird.f32 %v1462_v48  ;;  %v1472_v19 = vand.u32 2147483647, %v1462_v48 }
0x1ee5   :  { %v1475_v32 = vor.u32 1.1754944e-38, %v1474_v21  ;;  %vm1473_vm13 = vcmp.eq.f32.partialorder %v1472_v19, 8.507059e+37 }
0x1ee6   :  { %1500 = vperm.xlu1 %2652, %v1176_v11  }
0x1ee9   :  { %v2752_v22 = vpop.eup %2751 }
0x1eea   :  { %v1464_v5 = vmul.f32 %v2752_v22, %v1462_v48  ;;  %vm1469_vm10 = vweird.f32 %v2752_v22 }
0x1eeb   :  { %vm1470_vm12 = vmor %vm1468_vm11, %vm1469_vm10 }
0x1eec   :  { %v1465_v23 = vsub.f32 1.0, %v1464_v5 }
0x1eee   :  { %v1466_v6 = vmul.f32 %v2752_v22, %v1465_v23 }
0x1ef0   :  { %v1467_v15 = vadd.f32 %v2752_v22, %v1466_v6 }
0x1ef2   :  { %v1471_v31 = vsel %vm1470_vm12, %v2752_v22, %v1467_v15 }
0x1ef3   :  { %v1476_v14 = vsel %vm1473_vm13, %v1475_v32, %v1471_v31 }
0x1ef4   :  { %v1489_v39 = vsub.f32 1.0, %v1476_v14  ;;  %v1496_v45 = vmul.f32 %v1476_v14, %v1433_v49 }
0x1f48   :  { %v1480_v47 = vpop.permute.xlu1 %1479 }
0x1f49   :  { %v1482_v62 = vmul.f32 %v1480_v47, %v1476_v14 }
0x1f4b   :  { %1484 = vrot.lane.b32.xlu0 %v1482_v62, %s2886_s28 }
0x1f50   :  { %v3638_v30 = vpop.permute.xlu1 %1507 }
0x1f51   :  { %v1511_v38 = vmul.f32 %v3638_v30, %v3603_v34 }
0x1f58   :  { %v3645_v52 = vpop.permute.xlu1 %1500 }
0x1fbd   :  { %v1485_v35 = vpop.permute.xlu0 %1484 }
0x1fbe   :  { %v1487_v54 = vadd.f32 %v1485_v35, %v3301_v7 }
0x1fc0   :  { %2753 = vtanh.f32 %v1487_v54 }
0x1fc6   :  { %v2754_v37 = vpop.eup %2753 }
0x1fc7   :  { %1491 = vrot.lane.b32.xlu0 %v2754_v37, %s2888_s12 }
0x1fcf   :  { %1513 = vrot.lane.b32.xlu0 %v1511_v38, %s2885_s1 }
0x2039   :  { %v1492_v44 = vpop.permute.xlu0 %1491 }
0x203a   :  { %v1494_v43 = vmul.f32 %v1492_v44, %v1489_v39 }
0x203c   :  { %v1497_v63 = vadd.f32 %v1496_v45, %v1494_v43 }
0x203e   :  { %v1503_v53 = vmul.f32 %v3645_v52, %v1497_v63 }
0x2041   :  { %v1514_v55 = vpop.permute.xlu0 %1513 }
0x2042   :  { %v1516_v56 = vadd.f32 %v1514_v55, %v1503_v53 }
0x2044   :  { %1518 = vrot.lane.b32.xlu1 %v1516_v56, %s2888_s12  ;;  %v1581_v60 = vrot.slane %v1516_v56, 6 }
0x20b6   :  { %v1519_v57 = vpop.permute.xlu1 %1518 }
0x20b7   :  { %2614 = vmatmul.msk.f32.vlgmr.msra.gmra.mxu3 %vm128_vm2, %v1519_v57 }
0x20b8   :  { %1961 = vmatpush.msra.mxu3 %v3410_v26 }
0x20ba   :  { %1962 = vmatpush.msra.mxu3 %v3417_v27 }
0x20bc   :  { %1963 = vmatpush.msra.mxu3 %v3424_v28 }
0x20be   :  { %1964 = vmatpush.msra.mxu3 %v3431_v29 }
0x213a   :  { %v1539_v33 = vpop.f32.mrf.mxu3 }
0x213b   :  { %v1540_v49 = vadd.f32 %v3529_v36, %v1539_v33 }
0x213d   :  { %v1543_v34 = vrot.slane %v1540_v49, 6 }
0x213f   :  { %1565 = vrot.lane.b32.xlu0 %v1543_v34, %s2886_s28  ;;  %v1545_v1 = vadd.f32 %v1543_v34, %v3301_v7 }
0x2141   :  { %v2615_v9 = vmul.f32 -1.442695, %v1545_v1 }
0x2143   :  { %2755 = vpow2.f32 %v2615_v9 }
0x2147   :  { %1586 = vrot.lane.b32.xlu0 %v1581_v60, %s2888_s12 }
0x2149   :  { %v2756_v3 = vpop.eup %2755 }
0x214a   :  { %v1549_v4 = vadd.f32 1.0, %v2756_v3 }
0x214c   :  { %2757 = vrcp.f32 %v1549_v4  ;;  %v1561_v41 = vand.u32 2147483648, %v1549_v4  ;;  %vm1555_vm15 = vweird.f32 %v1549_v4  ;;  %v1559_v48 = vand.u32 2147483647, %v1549_v4 }
0x214e   :  { %v1562_v5 = vor.u32 1.1754944e-38, %v1561_v41  ;;  %vm1560_vm6 = vcmp.eq.f32.partialorder %v1559_v48, 8.507059e+37 }
0x2152   :  { %v2758_v10 = vpop.eup %2757 }
0x2153   :  { %v1551_v11 = vmul.f32 %v2758_v10, %v1549_v4  ;;  %vm1556_vm14 = vweird.f32 %v2758_v10 }
0x2154   :  { %vm1557_vm5 = vmor %vm1555_vm15, %vm1556_vm14 }
0x2155   :  { %v1552_v12 = vsub.f32 1.0, %v1551_v11 }
0x2157   :  { %v1553_v59 = vmul.f32 %v2758_v10, %v1552_v12 }
0x2159   :  { %v1554_v13 = vadd.f32 %v2758_v10, %v1553_v59 }
0x215b   :  { %v1558_v22 = vsel %vm1557_vm5, %v2758_v10, %v1554_v13 }
0x215c   :  { %v1563_v6 = vsel %vm1560_vm6, %v1562_v5, %v1558_v22 }
0x215d   :  { %v1575_v47 = vsub.f32 1.0, %v1563_v6  ;;  %v1583_v54 = vmul.f32 %v1581_v60, %v1563_v6 }
0x21b1   :  { %v1566_v23 = vpop.permute.xlu0 %1565 }
0x21b2   :  { %v1568_v15 = vmul.f32 %v1566_v23, %v1563_v6 }
0x21b4   :  { %1570 = vrot.lane.b32.xlu1 %v1568_v15, %s2886_s28 }
0x21b9   :  { %v1587_v21 = vpop.permute.xlu0 %1586 }
0x21ba   :  { %v1589_v19 = vmul.f32 %v1587_v21, %v3638_v30 }
0x21bc   :  { %1591 = vrot.lane.b32.xlu1 %v1589_v19, %s2885_s1 }
0x2226   :  { %v1571_v31 = vpop.permute.xlu1 %1570 }
0x2227   :  { %v1573_v32 = vadd.f32 %v1571_v31, %v3301_v7 }
0x2229   :  { %2759 = vtanh.f32 %v1573_v32 }
0x222e   :  { %v1592_v39 = vpop.permute.xlu1 %1591 }
0x222f   :  { %v2760_v14 = vpop.eup %2759 }
0x2230   :  { %1577 = vrot.lane.b32.xlu2 %v2760_v14, %s2888_s12 }
0x228a   :  { %v1578_v62 = vpop.permute.xlu2 %1577 }
0x228b   :  { %v1580_v35 = vmul.f32 %v1578_v62, %v1575_v47 }
0x228d   :  { %v1584_v37 = vadd.f32 %v1583_v54, %v1580_v35 }
0x228f   :  { %v1585_v38 = vmul.f32 %v1584_v37, %v3645_v52 }
0x2291   :  { %v1594_v44 = vadd.f32 %v1592_v39, %v1585_v38 }
0x2293   :  { %v1596_v45 = vrot.slane %v1594_v44, 2  ;;  %v1660_v56 = vrot.slane %v1594_v44, 6 }
0x2295   :  { %1597 = vrot.lane.b32.xlu0 %v1596_v45, %s2888_s12 }
0x2307   :  { %v1598_v43 = vpop.permute.xlu0 %1597 }
0x2308   :  { %2616 = vmatmul.msk.f32.vlgmr.msra.gmra.mxu1 %vm128_vm2, %v1598_v43 }
0x2385   :  { %v1618_v63 = vpop.f32.mrf.mxu1 }
0x2386   :  { %v1619_v53 = vadd.f32 %v3529_v36, %v1618_v63 }
0x2388   :  { %v1622_v55 = vrot.slane %v1619_v53, 4 }
0x238a   :  { %1644 = vrot.lane.b32.xlu1 %v1622_v55, %s2886_s28  ;;  %v1624_v57 = vadd.f32 %v1622_v55, %v3301_v7 }
0x238c   :  { %v2617_v33 = vmul.f32 -1.442695, %v1624_v57 }
0x238e   :  { %2761 = vpow2.f32 %v2617_v33 }
0x2392   :  { %1665 = vrot.lane.b32.xlu1 %v1660_v56, %s2888_s12 }
0x2394   :  { %v2762_v49 = vpop.eup %2761 }
0x2395   :  { %v1628_v34 = vadd.f32 1.0, %v2762_v49 }
0x2397   :  { %2763 = vrcp.f32 %v1628_v34  ;;  %v1640_v10 = vand.u32 2147483648, %v1628_v34  ;;  %vm1634_vm8 = vweird.f32 %v1628_v34  ;;  %v1638_v11 = vand.u32 2147483647, %v1628_v34 }
0x2399   :  { %v1641_v59 = vor.u32 1.1754944e-38, %v1640_v10  ;;  %vm1639_vm10 = vcmp.eq.f32.partialorder %v1638_v11, 8.507059e+37 }
0x239d   :  { %v2764_v60 = vpop.eup %2763 }
0x239e   :  { %v1630_v1 = vmul.f32 %v2764_v60, %v1628_v34  ;;  %vm1635_vm7 = vweird.f32 %v2764_v60 }
0x239f   :  { %vm1636_vm9 = vmor %vm1634_vm8, %vm1635_vm7 }
0x23a0   :  { %v1631_v9 = vsub.f32 1.0, %v1630_v1 }
0x23a2   :  { %v1632_v3 = vmul.f32 %v2764_v60, %v1631_v9 }
0x23a4   :  { %v1633_v4 = vadd.f32 %v2764_v60, %v1632_v3 }
0x23a6   :  { %v1637_v12 = vsel %vm1636_vm9, %v2764_v60, %v1633_v4 }
0x23a7   :  { %v1642_v41 = vsel %vm1639_vm10, %v1641_v59, %v1637_v12 }
0x23a8   :  { %v1654_v21 = vsub.f32 1.0, %v1642_v41  ;;  %v1662_v31 = vmul.f32 %v1660_v56, %v1642_v41 }
0x23fc   :  { %v1645_v13 = vpop.permute.xlu1 %1644 }
0x23fd   :  { %v1647_v48 = vmul.f32 %v1645_v13, %v1642_v41 }
0x23ff   :  { %1649 = vrot.lane.b32.xlu0 %v1647_v48, %s2886_s28 }
0x2404   :  { %v1666_v22 = vpop.permute.xlu1 %1665 }
0x2405   :  { %v1668_v5 = vmul.f32 %v1666_v22, %v3638_v30 }
0x2407   :  { %1670 = vrot.lane.b32.xlu2 %v1668_v5, %s2885_s1 }
0x2461   :  { %v1671_v62 = vpop.permute.xlu2 %1670 }
0x2471   :  { %v1650_v23 = vpop.permute.xlu0 %1649 }
0x2472   :  { %v1652_v6 = vadd.f32 %v1650_v23, %v3301_v7 }
0x2474   :  { %2765 = vtanh.f32 %v1652_v6 }
0x247a   :  { %v2766_v15 = vpop.eup %2765 }
0x247b   :  { %1656 = vrot.lane.b32.xlu0 %v2766_v15, %s2888_s12 }
0x24ed   :  { %v1657_v19 = vpop.permute.xlu0 %1656 }
0x24ee   :  { %v1659_v32 = vmul.f32 %v1657_v19, %v1654_v21  ;;  %v1798_v21 = vpop.f32.mrf.mxu0 }
0x24f0   :  { %v1663_v14 = vadd.f32 %v1662_v31, %v1659_v32 }
0x24f2   :  { %v1664_v47 = vmul.f32 %v1663_v14, %v3645_v52  ;;  %v2853_v14 = vld [vmem:[%s3905_s16 + $0x10] sm:$0xff] }
0x24f4   :  { %v1673_v35 = vadd.f32 %v1671_v62, %v1664_v47  ;;  %v2854_v47 = vld [vmem:[%s3905_s16 + $0x8] sm:$0xff]  ;;  %v2855_v62 = vld [vmem:[%s3905_s16] sm:$0xff] }
0x24f6   :  { %v1675_v54 = vrot.slane %v1673_v35, 4  ;;  %v1739_v37 = vrot.slane %v1673_v35, 6 }
0x24f8   :  { %1676 = vrot.lane.b32.xlu1 %v1675_v54, %s2888_s12 }
0x2500   :  { %1744 = vrot.lane.b32.xlu1 %v1739_v37, %s2888_s12 }
0x256a   :  { %v1677_v38 = vpop.permute.xlu1 %1676 }
0x256b   :  { %2618 = vmatmul.msk.f32.vlgmr.msrb.gmra.mxu2 %vm128_vm2, %v1677_v38 }
0x256c   :  { %2541 = vmatpush.msrb.mxu2 %v3360_v8 }
0x256e   :  { %2542 = vmatpush.msrb.mxu2 %v3365_v16 }
0x2570   :  { %2543 = vmatpush.msrb.mxu2 %v3382_v18 }
0x2572   :  { %2544 = vmatpush.msrb.mxu2 %v3393_v20  ;;  %v1745_v3 = vpop.permute.xlu1 %1744 }
0x2573   :  { %v1747_v4 = vmul.f32 %v1745_v3, %v3638_v30 }
0x25ee   :  { %v1697_v39 = vpop.f32.mrf.mxu2 }
0x25ef   :  { %v1698_v44 = vadd.f32 %v3529_v36, %v1697_v39 }
0x25f1   :  { %v1701_v45 = vrot.slane %v1698_v44, 2 }
0x25f3   :  { %1723 = vrot.lane.b32.xlu0 %v1701_v45, %s2886_s28  ;;  %v1703_v43 = vadd.f32 %v1701_v45, %v3301_v7 }
0x25f5   :  { %v2619_v63 = vmul.f32 -1.442695, %v1703_v43 }
0x25f7   :  { %2767 = vpow2.f32 %v2619_v63 }
0x25fd   :  { %v2768_v53 = vpop.eup %2767 }
0x25fe   :  { %v1707_v55 = vadd.f32 1.0, %v2768_v53 }
0x2600   :  { %2769 = vrcp.f32 %v1707_v55  ;;  %v1719_v20 = vand.u32 2147483648, %v1707_v55  ;;  %vm1713_vm12 = vweird.f32 %v1707_v55  ;;  %v1717_v33 = vand.u32 2147483647, %v1707_v55 }
0x2602   :  { %v1720_v34 = vor.u32 1.1754944e-38, %v1719_v20  ;;  %vm1718_vm14 = vcmp.eq.f32.partialorder %v1717_v33, 8.507059e+37 }
0x2606   :  { %v2770_v8 = vpop.eup %2769 }
0x2607   :  { %v1709_v56 = vmul.f32 %v2770_v8, %v1707_v55  ;;  %vm1714_vm11 = vweird.f32 %v2770_v8 }
0x2608   :  { %vm1715_vm13 = vmor %vm1713_vm12, %vm1714_vm11 }
0x2609   :  { %v1710_v16 = vsub.f32 1.0, %v1709_v56 }
0x260b   :  { %v1711_v57 = vmul.f32 %v2770_v8, %v1710_v16 }
0x260d   :  { %v1712_v18 = vadd.f32 %v2770_v8, %v1711_v57 }
0x260f   :  { %v1716_v49 = vsel %vm1715_vm13, %v2770_v8, %v1712_v18 }
0x2610   :  { %v1721_v1 = vsel %vm1718_vm14, %v1720_v34, %v1716_v49 }
0x2611   :  { %v1733_v59 = vsub.f32 1.0, %v1721_v1  ;;  %v1741_v41 = vmul.f32 %v1739_v37, %v1721_v1 }
0x2665   :  { %v1724_v60 = vpop.permute.xlu0 %1723 }
0x2666   :  { %v1726_v9 = vmul.f32 %v1724_v60, %v1721_v1 }
0x2668   :  { %1728 = vrot.lane.b32.xlu2 %v1726_v9, %s2886_s28 }
0x2670   :  { %1749 = vrot.lane.b32.xlu2 %v1747_v4, %s2885_s1 }
0x26c2   :  { %v1729_v10 = vpop.permute.xlu2 %1728 }
0x26c3   :  { %v1731_v11 = vadd.f32 %v1729_v10, %v3301_v7 }
0x26c5   :  { %2771 = vtanh.f32 %v1731_v11 }
0x26ca   :  { %v1750_v23 = vpop.permute.xlu2 %1749 }
0x26cb   :  { %v2772_v12 = vpop.eup %2771 }
0x26cc   :  { %1735 = vrot.lane.b32.xlu0 %v2772_v12, %s2888_s12 }
0x273e   :  { %v1736_v13 = vpop.permute.xlu0 %1735 }
0x273f   :  { %v1738_v48 = vmul.f32 %v1736_v13, %v1733_v59 }
0x2741   :  { %v1742_v22 = vadd.f32 %v1741_v41, %v1738_v48 }
0x2743   :  { %v1743_v5 = vmul.f32 %v1742_v22, %v3645_v52 }
0x2745   :  { %v1752_v6 = vadd.f32 %v1750_v23, %v1743_v5 }
0x2747   :  { %v1754_v15 = vrot.slane %v1752_v6, 6 }
0x2749   :  { %1755 = vrot.lane.b32.xlu1 %v1754_v15, %s2888_s12 }
0x27bb   :  { %v1756_v30 = vpop.permute.xlu1 %1755 }
0x27bc   :  { %2620 = vmatmul.msk.f32.vlgmr.msrb.gmra.mxu3 %vm128_vm2, %v1756_v30 }
0x27bd   :  { %2119 = vmatpush.msrb.mxu3 %v3410_v26  ;;  %v3710_v26 = vld [vmem:[%s3902_s13 + $0x18] sm:$0xff] }
0x27bf   :  { %2120 = vmatpush.msrb.mxu3 %v3417_v27  ;;  %v3716_v27 = vld [vmem:[%s3902_s13 + $0x10] sm:$0xff] }
0x27c1   :  { %2121 = vmatpush.msrb.mxu3 %v3424_v28  ;;  %v3722_v28 = vld [vmem:[%s3902_s13 + $0x8] sm:$0xff] }
0x27c3   :  { %2122 = vmatpush.msrb.mxu3 %v3431_v29  ;;  %v3728_v29 = vld [vmem:[%s3902_s13] sm:$0xff] }
0x283f   :  { %v1776_v19 = vpop.f32.mrf.mxu3 }
0x2840   :  { %v1799_v31 = vadd.f32 %v1798_v21, %v1776_v19 }
0x2842   :  { %v3699_v52 = vadd.f32 %v1799_v31, %v3452_v42 }
0x2844   :  { %v1802_v32 = vmax.f32 %v3699_v52, 0.0 }
0x2846   :  { %2622 = vmatpush.msk.msrb.mxu1 %vm234_vm0, %v1802_v32 }
0x2847   :  { %2623 = vmatmul.msk.f32.vlgmr.msrb.gmra.mxu1 %vm227_vm1, %v3464_v46  ;;  %v2852_v46 = vld [vmem:[%s3905_s16 + $0x18] sm:$0xff] }
0x2848   :  { %2282 = vmatpush.msra.mxu1 %v3710_v26 }
0x284a   :  { %2283 = vmatpush.msra.mxu1 %v3716_v27 }
0x284c   :  { %2284 = vmatpush.msra.mxu1 %v3722_v28 }
0x284e   :  { %2285 = vmatpush.msra.mxu1 %v3728_v29 }
0x284f   :  { %2624 = vmatmul.msk.f32.gmra.mxu1 %vm227_vm1, %v3475_v58 }
0x2850   :  { %2519 = vmatpush.msrb.mxu1 %v2852_v46 }
0x2852   :  { %2520 = vmatpush.msrb.mxu1 %v2853_v14 }
0x2854   :  { %2521 = vmatpush.msrb.mxu1 %v2854_v47 }
0x2856   :  { %2522 = vmatpush.msrb.mxu1 %v2855_v62 }
0x28c4   :  { %v1823_v58 = vpop.f32.mrf.mxu1 }
0x28c5   :  { %v1831_v35 = vsub.f32 %v3484_v50, %v1823_v58  ;;  %v1829_v37 = vmul.f32 %v3484_v50, %v1823_v58 }
0x28c7   :  { %v1833_v54 = vand.u32 2147483647, %v1831_v35 }
0x28c9   :  { %1837 = vrot.lane.b32.xlu0 %v1833_v54, %s2885_s1 }
0x293b   :  { %v1838_v38 = vpop.permute.xlu0 %1837 }
0x293c   :  { %v1843_v39 = vsel %vm128_vm2, %v1829_v37, %v1838_v38 }
0x293d   :  { %2625 = vmatmul.msk.f32.vlgmr.msra.gmra.mxu2 %vm134_vm3, %v1843_v39 }
0x29c0   :  { %v1868_v44 = vpop.f32.mrf.mxu2 }
0x29c1   :  { %v1874_v45 = vadd.f32 %v1868_v44, %v3167_v51 }
0x29c3   :  { %2773 = vtanh.f32 %v1874_v45 }
0x29c9   :  { %v2774_v43 = vpop.eup %2773 }
0x29ca   :  { %v1878_v63 = vmul.f32 %v3499_v2, %v2774_v43 }
0x29cc   :  { %v1880_v53 = vsel %vm315_vm4, %v1878_v63, 0.0 }
0x29cd   :  { %1881 = vadd.xlane.f32.xlu2 %v1880_v53 }
0x2a40   :  { %v1882_v55 = vpop.xlane.xlu2 %1881 }
0x2a41   :  { %v1886_v8 = vadd.f32 %v3503_v40, %v1882_v55 }
0x2a43   :  { %v2627_v56 = vmul.f32 -1.442695, %v1886_v8 }
0x2a45   :  { %2775 = vpow2.f32 %v2627_v56 }
0x2a4b   :  { %v2776_v50 = vpop.eup %2775 }
0x2a4c   :  { %v1894_v16 = vadd.f32 1.0, %v2776_v50 }
0x2a4e   :  { %2777 = vrcp.f32 %v1894_v16  ;;  %v1907_v33 = vand.u32 2147483648, %v1894_v16  ;;  %v1905_v49 = vand.u32 2147483647, %v1894_v16  ;;  %vm1901_vm1 = vweird.f32 %v1894_v16 }
0x2a50   :  { %v1908_v2 = vor.u32 1.1754944e-38, %v1907_v33  ;;  %vm1906_vm5 = vcmp.eq.f32.partialorder %v1905_v49, 8.507059e+37 }
0x2a54   :  { %v2778_v57 = vpop.eup %2777 }
0x2a55   :  { %v1897_v18 = vmul.f32 %v2778_v57, %v1894_v16  ;;  %vm1902_vm0 = vweird.f32 %v2778_v57 }
0x2a56   :  { %vm1903_vm15 = vmor %vm1901_vm1, %vm1902_vm0 }
0x2a57   :  { %v1898_v20 = vsub.f32 1.0, %v1897_v18 }
0x2a59   :  { %v1899_v51 = vmul.f32 %v2778_v57, %v1898_v20 }
0x2a5b   :  { %v1900_v34 = vadd.f32 %v2778_v57, %v1899_v51  ;;  %v3791_v51 = vld [vmem:[%s3903_s14] ss:$0 sm:$0xff] }
0x2a5d   :  { %v1904_v60 = vsel %vm1903_vm15, %v2778_v57, %v1900_v34 }
0x2a5e   :  { %v1909_v1 = vsel %vm1906_vm5, %v1908_v2, %v1904_v60 }
0x2a5f   :  { %1928 = vperm.xlu0 %2651, %v1909_v1   ;;  %v1932_v40 = vsub.f32 1.0, %v1909_v1 }
0x2a61   :  { %1935 = vperm.xlu1 %2652, %v1932_v40  }
0x2ad1   :  { %v3759_v4 = vpop.permute.xlu0 %1928 }
0x2ad2   :  { %v1931_v10 = vmul.f32 %v3759_v4, %v3208_v61 }
0x2ad3   :  { %v3754_v9 = vpop.permute.xlu1 %1935 }
0x2ad4   :  { %v1938_v3 = vmul.f32 %v3511_v24, %v3754_v9 }
0x2ad6   :  { %1940 = vrot.lane.b32.xlu1 %v1938_v3, %s2885_s1 }
0x2b48   :  { %v1941_v11 = vpop.permute.xlu1 %1940 }
0x2b49   :  { %v1943_v12 = vadd.f32 %v1941_v11, %v1931_v10 }
0x2b4b   :  { %1945 = vrot.lane.b32.xlu0 %v1943_v12, %s2888_s12  ;;  %v2008_v61 = vrot.slane %v1943_v12, 6 }
0x2bbd   :  { %v1946_v59 = vpop.permute.xlu0 %1945 }
0x2bbe   :  { %2629 = vmatmul.msk.f32.vlgmr.msra.gmra.mxu3 %vm128_vm2, %v1946_v59 }
0x2bbf   :  { %2361 = vmatpush.msra.mxu3 %v3710_v26 }
0x2bc1   :  { %2362 = vmatpush.msra.mxu3 %v3716_v27 }
0x2bc3   :  { %2363 = vmatpush.msra.mxu3 %v3722_v28 }
0x2bc5   :  { %2364 = vmatpush.msra.mxu3 %v3728_v29 }
0x2c41   :  { %v1966_v24 = vpop.f32.mrf.mxu3 }
0x2c42   :  { %v1967_v13 = vadd.f32 %v3529_v36, %v1966_v24 }
0x2c44   :  { %v1970_v41 = vrot.slane %v1967_v13, 6 }
0x2c46   :  { %1992 = vrot.lane.b32.xlu1 %v1970_v41, %s2886_s28  ;;  %v1972_v48 = vadd.f32 %v1970_v41, %v3192_v0 }
0x2c48   :  { %v2630_v22 = vmul.f32 -1.442695, %v1972_v48 }
0x2c4a   :  { %2779 = vpow2.f32 %v2630_v22 }
0x2c4e   :  { %2013 = vrot.lane.b32.xlu1 %v2008_v61, %s2888_s12 }
0x2c50   :  { %v2780_v5 = vpop.eup %2779 }
0x2c51   :  { %v1976_v23 = vadd.f32 1.0, %v2780_v5 }
0x2c53   :  { %2781 = vrcp.f32 %v1976_v23  ;;  %v1988_v36 = vand.u32 2147483648, %v1976_v23  ;;  %vm1982_vm7 = vweird.f32 %v1976_v23  ;;  %v1986_v31 = vand.u32 2147483647, %v1976_v23 }
0x2c55   :  { %v1989_v14 = vor.u32 1.1754944e-38, %v1988_v36  ;;  %vm1987_vm9 = vcmp.eq.f32.partialorder %v1986_v31, 8.507059e+37 }
0x2c59   :  { %v2782_v6 = vpop.eup %2781 }
0x2c5a   :  { %v1978_v15 = vmul.f32 %v2782_v6, %v1976_v23  ;;  %vm1983_vm6 = vweird.f32 %v2782_v6 }
0x2c5b   :  { %vm1984_vm8 = vmor %vm1982_vm7, %vm1983_vm6 }
0x2c5c   :  { %v1979_v30 = vsub.f32 1.0, %v1978_v15 }
0x2c5e   :  { %v1980_v21 = vmul.f32 %v2782_v6, %v1979_v30 }
0x2c60   :  { %v1981_v19 = vadd.f32 %v2782_v6, %v1980_v21 }
0x2c62   :  { %v1985_v46 = vsel %vm1984_vm8, %v2782_v6, %v1981_v19 }
0x2c63   :  { %v1990_v62 = vsel %vm1987_vm9, %v1989_v14, %v1985_v46  ;;  %v1826_v46 = vpop.f32.mrf.mxu1 }
0x2c64   :  { %v2002_v44 = vsub.f32 1.0, %v1990_v62  ;;  %v2010_v63 = vmul.f32 %v2008_v61, %v1990_v62 }
0x2cb8   :  { %v1993_v47 = vpop.permute.xlu1 %1992 }
0x2cb9   :  { %v1995_v58 = vmul.f32 %v1993_v47, %v1990_v62  ;;  %v1832_v47 = vsub.f32 %v3568_v17, %v1826_v46 }
0x2cbb   :  { %1997 = vrot.lane.b32.xlu0 %v1995_v58, %s2886_s28  ;;  %v1834_v62 = vand.u32 2147483647, %v1832_v47 }
0x2cc0   :  { %v2014_v35 = vpop.permute.xlu1 %2013 }
0x2cc1   :  { %v2016_v54 = vmul.f32 %v2014_v35, %v3754_v9 }
0x2cc3   :  { %2018 = vrot.lane.b32.xlu1 %v2016_v54, %s2885_s1  ;;  %v1830_v54 = vmul.f32 %v3568_v17, %v1826_v46 }
0x2d2d   :  { %v1998_v37 = vpop.permute.xlu0 %1997 }
0x2d2e   :  { %v2000_v38 = vadd.f32 %v1998_v37, %v3192_v0 }
0x2d30   :  { %2783 = vtanh.f32 %v2000_v38 }
0x2d35   :  { %v2019_v8 = vpop.permute.xlu1 %2018 }
0x2d36   :  { %v2784_v39 = vpop.eup %2783 }
0x2d37   :  { %2004 = vrot.lane.b32.xlu0 %v2784_v39, %s2888_s12 }
0x2da9   :  { %v2005_v45 = vpop.permute.xlu0 %2004 }
0x2daa   :  { %v2007_v43 = vmul.f32 %v2005_v45, %v2002_v44 }
0x2dac   :  { %v2011_v53 = vadd.f32 %v2010_v63, %v2007_v43 }
0x2dae   :  { %v2012_v55 = vmul.f32 %v2011_v53, %v3759_v4 }
0x2db0   :  { %v2021_v56 = vadd.f32 %v2019_v8, %v2012_v55 }
0x2db2   :  { %v2023_v50 = vrot.slane %v2021_v56, 2  ;;  %v2087_v16 = vrot.slane %v2021_v56, 6 }
0x2db4   :  { %2024 = vrot.lane.b32.xlu0 %v2023_v50, %s2888_s12 }
0x2dbc   :  { %2092 = vrot.lane.b32.xlu0 %v2087_v16, %s2888_s12 }
0x2e26   :  { %v2025_v57 = vpop.permute.xlu0 %2024 }
0x2e27   :  { %2631 = vmatmul.msk.f32.vlgmr.msrb.gmra.mxu0 %vm128_vm2, %v2025_v57 }
0x2e28   :  { %2440 = vmatpush.msrb.mxu0 %v3710_v26 }
0x2e2a   :  { %2441 = vmatpush.msrb.mxu0 %v3716_v27 }
0x2e2c   :  { %2442 = vmatpush.msrb.mxu0 %v3722_v28 }
0x2e2e   :  { %v2093_v18 = vpop.permute.xlu0 %2092  ;;  %2443 = vmatpush.msrb.mxu0 %v3728_v29 }
0x2e2f   :  { %v2095_v20 = vmul.f32 %v2093_v18, %v3754_v9 }
0x2e31   :  { %2097 = vrot.lane.b32.xlu0 %v2095_v20, %s2885_s1 }
0x2ea3   :  { %v2098_v19 = vpop.permute.xlu0 %2097 }
0x2ea4   :  { %v2045_v33 = vpop.f32.mrf.mxu0 }
0x2ea5   :  { %v2046_v49 = vadd.f32 %v3791_v51, %v2045_v33 }
0x2ea7   :  { %v2049_v26 = vrot.slane %v2046_v49, 4 }
0x2ea9   :  { %2071 = vrot.lane.b32.xlu2 %v2049_v26, %s2886_s28  ;;  %v2051_v27 = vadd.f32 %v2049_v26, %v3192_v0 }
0x2eab   :  { %v2632_v28 = vmul.f32 -1.442695, %v2051_v27 }
0x2ead   :  { %2785 = vpow2.f32 %v2632_v28 }
0x2eb3   :  { %v2786_v29 = vpop.eup %2785 }
0x2eb4   :  { %v2055_v34 = vadd.f32 1.0, %v2786_v29 }
0x2eb6   :  { %2787 = vrcp.f32 %v2055_v34  ;;  %v2067_v10 = vand.u32 2147483648, %v2055_v34  ;;  %vm2061_vm11 = vweird.f32 %v2055_v34  ;;  %v2065_v11 = vand.u32 2147483647, %v2055_v34 }
0x2eb8   :  { %v2068_v59 = vor.u32 1.1754944e-38, %v2067_v10  ;;  %vm2066_vm13 = vcmp.eq.f32.partialorder %v2065_v11, 8.507059e+37 }
0x2ebc   :  { %v2788_v2 = vpop.eup %2787 }
0x2ebd   :  { %v2057_v60 = vmul.f32 %v2788_v2, %v2055_v34  ;;  %vm2062_vm10 = vweird.f32 %v2788_v2  ;;  %v2857_v34 = vld [vmem:[%s3898_s9] ss:$0 sm:$0xff]  ;;  %s2889_s9 = smov [#allocation3]  }
0x2ebe   :  { %vm2063_vm12 = vmor %vm2061_vm11, %vm2062_vm10 }
0x2ebf   :  { %v2058_v1 = vsub.f32 1.0, %v2057_v60 }
0x2ec1   :  { %v2059_v40 = vmul.f32 %v2788_v2, %v2058_v1 }
0x2ec3   :  { %v2060_v3 = vadd.f32 %v2788_v2, %v2059_v40 }
0x2ec5   :  { %v2064_v12 = vsel %vm2063_vm12, %v2788_v2, %v2060_v3 }
0x2ec6   :  { %v2069_v13 = vsel %vm2066_vm13, %v2068_v59, %v2064_v12 }
0x2ec7   :  { %v2081_v5 = vsub.f32 1.0, %v2069_v13  ;;  %v2089_v6 = vmul.f32 %v2087_v16, %v2069_v13 }
0x2f03   :  { %v2072_v24 = vpop.permute.xlu2 %2071 }
0x2f04   :  { %v2074_v41 = vmul.f32 %v2072_v24, %v2069_v13 }
0x2f06   :  { %2076 = vrot.lane.b32.xlu1 %v2074_v41, %s2886_s28 }
0x2f78   :  { %v2077_v61 = vpop.permute.xlu1 %2076 }
0x2f79   :  { %v2079_v48 = vadd.f32 %v2077_v61, %v3192_v0 }
0x2f7b   :  { %2789 = vtanh.f32 %v2079_v48  ;;  %v2858_v48 = vld [vmem:[#allocation2] ss:$0 sm:$0xff] }
0x2f81   :  { %v2790_v22 = vpop.eup %2789 }
0x2f82   :  { %2083 = vrot.lane.b32.xlu1 %v2790_v22, %s2888_s12 }
0x2ff4   :  { %v2084_v23 = vpop.permute.xlu1 %2083 }
0x2ff5   :  { %v2086_v15 = vmul.f32 %v2084_v23, %v2081_v5 }
0x2ff7   :  { %v2090_v30 = vadd.f32 %v2089_v6, %v2086_v15 }
0x2ff9   :  { %v2091_v21 = vmul.f32 %v2090_v30, %v3759_v4 }
0x2ffb   :  { %v2100_v36 = vadd.f32 %v2098_v19, %v2091_v21 }
0x2ffd   :  { %v2102_v31 = vrot.slane %v2100_v36, 4  ;;  %v2166_v14 = vrot.slane %v2100_v36, 6 }
0x2fff   :  { %2103 = vrot.lane.b32.xlu1 %v2102_v31, %s2888_s12 }
0x3007   :  { %2171 = vrot.lane.b32.xlu1 %v2166_v14, %s2888_s12 }
0x300f   :  { %1839 = vrot.lane.b32.xlu1 %v1834_v62, %s2885_s1 }
0x3071   :  { %v2104_v58 = vpop.permute.xlu1 %2103 }
0x3072   :  { %2633 = vmatmul.msk.f32.vlgmr.msrb.gmra.mxu3 %vm128_vm2, %v2104_v58 }
0x3079   :  { %v2172_v35 = vpop.permute.xlu1 %2171 }
0x307a   :  { %v2174_v26 = vmul.f32 %v2172_v35, %v3754_v9 }
0x3081   :  { %v1840_v37 = vpop.permute.xlu1 %1839 }
0x3082   :  { %v1844_v38 = vsel %vm128_vm2, %v1830_v54, %v1840_v37 }
0x3083   :  { %2626 = vmatmul.msk.f32.gmra.mxu2 %vm134_vm3, %v1844_v38 }
0x308b   :  { %2644 = vmatmul.msk.f32.vlgmr.msrb.gmra.mxu2 %vm128_vm2, %v1802_v32 }
0x30f5   :  { %v2124_v39 = vpop.f32.mrf.mxu3 }
0x30f6   :  { %v2125_v44 = vadd.f32 %v3791_v51, %v2124_v39 }
0x30f8   :  { %v2128_v45 = vrot.slane %v2125_v44, 2 }
0x30fa   :  { %2150 = vrot.lane.b32.xlu0 %v2128_v45, %s2886_s28  ;;  %v2130_v43 = vadd.f32 %v2128_v45, %v3192_v0 }
0x30fc   :  { %v2634_v63 = vmul.f32 -1.442695, %v2130_v43 }
0x30fe   :  { %2791 = vpow2.f32 %v2634_v63 }
0x3104   :  { %v2792_v17 = vpop.eup %2791 }
0x3105   :  { %v2134_v53 = vadd.f32 1.0, %v2792_v17 }
0x3106   :  { %v1871_v27 = vpop.f32.mrf.mxu2 }
0x3107   :  { %2793 = vrcp.f32 %v2134_v53  ;;  %v2146_v32 = vand.u32 2147483648, %v2134_v53  ;;  %vm2140_vm14 = vweird.f32 %v2134_v53  ;;  %v2144_v16 = vand.u32 2147483647, %v2134_v53 }
0x3108   :  { %v1875_v28 = vadd.f32 %v1871_v27, %v3279_v25 }
0x3109   :  { %v2147_v18 = vor.u32 1.1754944e-38, %v2146_v32  ;;  %vm2145_vm1 = vcmp.eq.f32.partialorder %v2144_v16, 8.507059e+37 }
0x310a   :  { %2795 = vtanh.f32 %v1875_v28 }
0x310d   :  { %v2794_v55 = vpop.eup %2793 }
0x310e   :  { %v2136_v8 = vmul.f32 %v2794_v55, %v2134_v53  ;;  %vm2141_vm3 = vweird.f32 %v2794_v55 }
0x310f   :  { %vm2142_vm0 = vmor %vm2140_vm14, %vm2141_vm3 }
0x3110   :  { %v2137_v56 = vsub.f32 1.0, %v2136_v8  ;;  %v2796_v29 = vpop.eup %2795 }
0x3111   :  { %v1879_v2 = vmul.f32 %v2857_v34, %v2796_v29 }
0x3112   :  { %v2138_v50 = vmul.f32 %v2794_v55, %v2137_v56 }
0x3113   :  { %v1883_v60 = vsel %vm315_vm4, %v1879_v2, 0.0 }
0x3114   :  { %v2139_v52 = vadd.f32 %v2794_v55, %v2138_v50 }
0x3116   :  { %v2143_v57 = vsel %vm2142_vm0, %v2794_v55, %v2139_v52 }
0x3117   :  { %v2148_v33 = vsel %vm2145_vm1, %v2147_v18, %v2143_v57 }
0x3118   :  { %v2160_v3 = vsub.f32 1.0, %v2148_v33  ;;  %v2168_v25 = vmul.f32 %v2166_v14, %v2148_v33 }
0x316c   :  { %v2151_v20 = vpop.permute.xlu0 %2150 }
0x316d   :  { %v2153_v49 = vmul.f32 %v2151_v20, %v2148_v33 }
0x316f   :  { %2155 = vrot.lane.b32.xlu2 %v2153_v49, %s2886_s28 }
0x3177   :  { %2176 = vrot.lane.b32.xlu2 %v2174_v26, %s2885_s1 }
0x31a0   :  { %1884 = vadd.xlane.f32.xlu2 %v1883_v60 }
0x31c9   :  { %v2156_v1 = vpop.permute.xlu2 %2155 }
0x31ca   :  { %v2158_v40 = vadd.f32 %v2156_v1, %v3192_v0 }
0x31cc   :  { %2797 = vtanh.f32 %v2158_v40 }
0x31d1   :  { %v2177_v24 = vpop.permute.xlu2 %2176 }
0x31d2   :  { %v2798_v9 = vpop.eup %2797 }
0x31d3   :  { %2162 = vrot.lane.b32.xlu0 %v2798_v9, %s2888_s12 }
0x3213   :  { %v1885_v61 = vpop.xlane.xlu2 %1884 }
0x3214   :  { %v1887_v22 = vadd.f32 %v2858_v48, %v1885_v61 }
0x3216   :  { %v2628_v5 = vmul.f32 -1.442695, %v1887_v22 }
0x3218   :  { %2799 = vpow2.f32 %v2628_v5 }
0x321e   :  { %v2800_v23 = vpop.eup %2799 }
0x321f   :  { %v1895_v6 = vadd.f32 1.0, %v2800_v23 }
0x3221   :  { %2801 = vrcp.f32 %v1895_v6  ;;  %v1922_v31 = vand.u32 2147483648, %v1895_v6  ;;  %vm1916_vm15 = vweird.f32 %v1895_v6  ;;  %v1920_v14 = vand.u32 2147483647, %v1895_v6 }
0x3223   :  { %v1923_v62 = vor.u32 1.1754944e-38, %v1922_v31  ;;  %vm1921_vm6 = vcmp.eq.f32.partialorder %v1920_v14, 8.507059e+37 }
0x3245   :  { %v2163_v10 = vpop.permute.xlu0 %2162 }
0x3246   :  { %v2165_v11 = vmul.f32 %v2163_v10, %v2160_v3 }
0x3248   :  { %v2169_v12 = vadd.f32 %v2168_v25, %v2165_v11 }
0x324a   :  { %v2170_v59 = vmul.f32 %v2169_v12, %v3759_v4  ;;  %v2802_v4 = vpop.eup %2801 }
0x324b   :  { %v1912_v15 = vmul.f32 %v2802_v4, %v1895_v6  ;;  %vm1917_vm4 = vweird.f32 %v2802_v4 }
0x324c   :  { %v3825_v13 = vadd.f32 %v2177_v24, %v2170_v59  ;;  %vm1918_vm5 = vmor %vm1916_vm15, %vm1917_vm4 }
0x324d   :  { %v1913_v30 = vsub.f32 1.0, %v1912_v15 }
0x324e   :  { %v2181_v41 = vrot.slane %v3825_v13, 6 }
0x324f   :  { %v1914_v21 = vmul.f32 %v2802_v4, %v1913_v30 }
0x3250   :  { %2182 = vrot.lane.b32.xlu0 %v2181_v41, %s2888_s12 }
0x3251   :  { %v1915_v19 = vadd.f32 %v2802_v4, %v1914_v21 }
0x3253   :  { %v1919_v47 = vsel %vm1918_vm5, %v2802_v4, %v1915_v19 }
0x3254   :  { %v1924_v58 = vsel %vm1921_vm6, %v1923_v62, %v1919_v47 }
0x3255   :  { %v2252_v35 = vsub.f32 1.0, %v1924_v58 }
0x32c2   :  { %v2183_v0 = vpop.permute.xlu0 %2182 }
0x32c3   :  { %2635 = vmatmul.msk.f32.vlgmr.msra.gmra.mxu0 %vm128_vm2, %v2183_v0 }
0x3340   :  { %v2203_v36 = vpop.f32.mrf.mxu0 }
0x3341   :  { %v2204_v46 = vadd.f32 %v3791_v51, %v2203_v36 }
0x3343   :  { %2227 = vrot.lane.b32.xlu1 %v2204_v46, %s2886_s28  ;;  %v2206_v54 = vadd.f32 %v2204_v46, %v3301_v7 }
0x3345   :  { %v2636_v37 = vmul.f32 -1.442695, %v2206_v54 }
0x3347   :  { %2803 = vpow2.f32 %v2636_v37 }
0x334b   :  { %2255 = vperm.xlu1 %2652, %v2252_v35  }
0x334d   :  { %v2804_v38 = vpop.eup %2803 }
0x334e   :  { %v2210_v39 = vadd.f32 1.0, %v2804_v38 }
0x3350   :  { %2805 = vrcp.f32 %v2210_v39  ;;  %v2222_v53 = vand.u32 2147483648, %v2210_v39  ;;  %vm2216_vm8 = vweird.f32 %v2210_v39  ;;  %v2220_v55 = vand.u32 2147483647, %v2210_v39 }
0x3352   :  { %v2223_v56 = vor.u32 1.1754944e-38, %v2222_v53  ;;  %vm2221_vm10 = vcmp.eq.f32.partialorder %v2220_v55, 8.507059e+37 }
0x3353   :  { %2248 = vperm.xlu1 %2652, %v1924_v58  }
0x3356   :  { %v2806_v44 = vpop.eup %2805 }
0x3357   :  { %v2212_v45 = vmul.f32 %v2806_v44, %v2210_v39  ;;  %vm2217_vm7 = vweird.f32 %v2806_v44 }
0x3358   :  { %vm2218_vm9 = vmor %vm2216_vm8, %vm2217_vm7  ;;  %vm2551_vm8 = vcmask 254976  }
0x3359   :  { %v2213_v43 = vsub.f32 1.0, %v2212_v45 }
0x335b   :  { %v2214_v63 = vmul.f32 %v2806_v44, %v2213_v43 }
0x335d   :  { %v2215_v17 = vadd.f32 %v2806_v44, %v2214_v63 }
0x335f   :  { %v2219_v8 = vsel %vm2218_vm9, %v2806_v44, %v2215_v17 }
0x3360   :  { %v2224_v50 = vsel %vm2221_vm10, %v2223_v56, %v2219_v8 }
0x3361   :  { %v2237_v49 = vsub.f32 1.0, %v2224_v50  ;;  %v2244_v27 = vmul.f32 %v2224_v50, %v2181_v41 }
0x33b5   :  { %v2228_v52 = vpop.permute.xlu1 %2227 }
0x33b6   :  { %v2230_v32 = vmul.f32 %v2228_v52, %v2224_v50 }
0x33b8   :  { %2232 = vrot.lane.b32.xlu0 %v2230_v32, %s2886_s28 }
0x33bd   :  { %v3838_v20 = vpop.permute.xlu1 %2255 }
0x33be   :  { %v2259_v33 = vmul.f32 %v3838_v20, %v2183_v0 }
0x33c5   :  { %v3844_v34 = vpop.permute.xlu1 %2248 }
0x342a   :  { %v2233_v16 = vpop.permute.xlu0 %2232 }
0x342b   :  { %v2235_v57 = vadd.f32 %v2233_v16, %v3301_v7 }
0x342d   :  { %2807 = vtanh.f32 %v2235_v57 }
0x3433   :  { %v2808_v18 = vpop.eup %2807 }
0x3434   :  { %2239 = vrot.lane.b32.xlu0 %v2808_v18, %s2888_s12 }
0x343c   :  { %2261 = vrot.lane.b32.xlu0 %v2259_v33, %s2885_s1 }
0x34a6   :  { %v2240_v26 = vpop.permute.xlu0 %2239 }
0x34a7   :  { %v2242_v28 = vmul.f32 %v2240_v26, %v2237_v49 }
0x34a9   :  { %v2245_v29 = vadd.f32 %v2244_v27, %v2242_v28 }
0x34ab   :  { %v2251_v2 = vmul.f32 %v3844_v34, %v2245_v29 }
0x34ae   :  { %v2262_v60 = vpop.permute.xlu0 %2261 }
0x34af   :  { %v2264_v1 = vadd.f32 %v2262_v60, %v2251_v2 }
0x34b1   :  { %2266 = vrot.lane.b32.xlu1 %v2264_v1, %s2888_s12  ;;  %v2329_v25 = vrot.slane %v2264_v1, 6 }
0x3523   :  { %v2267_v40 = vpop.permute.xlu1 %2266 }
0x3524   :  { %2637 = vmatmul.msk.f32.vlgmr.msra.gmra.mxu1 %vm128_vm2, %v2267_v40 }
0x35a1   :  { %v2287_v9 = vpop.f32.mrf.mxu1 }
0x35a2   :  { %v2288_v3 = vadd.f32 %v3791_v51, %v2287_v9 }
0x35a4   :  { %v2291_v10 = vrot.slane %v2288_v3, 6 }
0x35a6   :  { %2313 = vrot.lane.b32.xlu0 %v2291_v10, %s2886_s28  ;;  %v2293_v11 = vadd.f32 %v2291_v10, %v3301_v7 }
0x35a8   :  { %v2638_v12 = vmul.f32 -1.442695, %v2293_v11 }
0x35aa   :  { %2809 = vpow2.f32 %v2638_v12 }
0x35ae   :  { %2334 = vrot.lane.b32.xlu0 %v2329_v25, %s2888_s12 }
0x35b0   :  { %v2810_v59 = vpop.eup %2809 }
0x35b1   :  { %v2297_v24 = vadd.f32 1.0, %v2810_v59 }
0x35b3   :  { %2811 = vrcp.f32 %v2297_v24  ;;  %v2309_v22 = vand.u32 2147483648, %v2297_v24  ;;  %vm2303_vm12 = vweird.f32 %v2297_v24  ;;  %v2307_v5 = vand.u32 2147483647, %v2297_v24 }
0x35b5   :  { %v2310_v6 = vor.u32 1.1754944e-38, %v2309_v22  ;;  %vm2308_vm3 = vcmp.eq.f32.partialorder %v2307_v5, 8.507059e+37 }
0x35b9   :  { %v2812_v13 = vpop.eup %2811 }
0x35ba   :  { %v2299_v41 = vmul.f32 %v2812_v13, %v2297_v24  ;;  %vm2304_vm11 = vweird.f32 %v2812_v13 }
0x35bb   :  { %vm2305_vm13 = vmor %vm2303_vm12, %vm2304_vm11 }
0x35bc   :  { %v2300_v0 = vsub.f32 1.0, %v2299_v41 }
0x35be   :  { %v2301_v61 = vmul.f32 %v2812_v13, %v2300_v0 }
0x35c0   :  { %v2302_v48 = vadd.f32 %v2812_v13, %v2301_v61 }
0x35c2   :  { %v2306_v23 = vsel %vm2305_vm13, %v2812_v13, %v2302_v48 }
0x35c3   :  { %v2311_v15 = vsel %vm2308_vm3, %v2310_v6, %v2306_v23 }
0x35c4   :  { %v2323_v14 = vsub.f32 1.0, %v2311_v15  ;;  %v2331_v58 = vmul.f32 %v2329_v25, %v2311_v15 }
0x3618   :  { %v2314_v4 = vpop.permute.xlu0 %2313 }
0x3619   :  { %v2316_v30 = vmul.f32 %v2314_v4, %v2311_v15 }
0x361b   :  { %2318 = vrot.lane.b32.xlu1 %v2316_v30, %s2886_s28 }
0x3620   :  { %v2335_v21 = vpop.permute.xlu0 %2334 }
0x3621   :  { %v2337_v19 = vmul.f32 %v2335_v21, %v3838_v20 }
0x3623   :  { %2339 = vrot.lane.b32.xlu2 %v2337_v19, %s2885_s1 }
0x367d   :  { %v2340_v37 = vpop.permute.xlu2 %2339 }
0x368d   :  { %v2319_v36 = vpop.permute.xlu1 %2318 }
0x368e   :  { %v2321_v31 = vadd.f32 %v2319_v36, %v3301_v7 }
0x3690   :  { %2813 = vtanh.f32 %v2321_v31 }
0x3696   :  { %v2814_v46 = vpop.eup %2813 }
0x3697   :  { %2325 = vrot.lane.b32.xlu1 %v2814_v46, %s2888_s12 }
0x3709   :  { %v2326_v47 = vpop.permute.xlu1 %2325 }
0x370a   :  { %v2328_v62 = vmul.f32 %v2326_v47, %v2323_v14 }
0x370c   :  { %v2332_v35 = vadd.f32 %v2331_v58, %v2328_v62 }
0x370e   :  { %v2333_v54 = vmul.f32 %v2332_v35, %v3844_v34 }
0x3710   :  { %v2342_v38 = vadd.f32 %v2340_v37, %v2333_v54 }
0x3712   :  { %v2344_v39 = vrot.slane %v2342_v38, 2  ;;  %v2408_v17 = vrot.slane %v2342_v38, 6 }
0x3714   :  { %2345 = vrot.lane.b32.xlu0 %v2344_v39, %s2888_s12 }
0x3786   :  { %v2346_v44 = vpop.permute.xlu0 %2345 }
0x3787   :  { %2639 = vmatmul.msk.f32.vlgmr.msra.gmra.mxu3 %vm128_vm2, %v2346_v44 }
0x380a   :  { %v2366_v45 = vpop.f32.mrf.mxu3 }
0x380b   :  { %v2367_v43 = vadd.f32 %v3791_v51, %v2366_v45 }
0x380d   :  { %v2370_v63 = vrot.slane %v2367_v43, 4 }
0x380f   :  { %2392 = vrot.lane.b32.xlu1 %v2370_v63, %s2886_s28  ;;  %v2372_v53 = vadd.f32 %v2370_v63, %v3301_v7 }
0x3811   :  { %v2640_v55 = vmul.f32 -1.442695, %v2372_v53 }
0x3813   :  { %2815 = vpow2.f32 %v2640_v55 }
0x3817   :  { %2413 = vrot.lane.b32.xlu1 %v2408_v17, %s2888_s12 }
0x3819   :  { %v2816_v8 = vpop.eup %2815 }
0x381a   :  { %v2376_v56 = vadd.f32 1.0, %v2816_v8 }
0x381c   :  { %2817 = vrcp.f32 %v2376_v56  ;;  %v2388_v18 = vand.u32 2147483648, %v2376_v56  ;;  %vm2382_vm0 = vweird.f32 %v2376_v56  ;;  %v2386_v33 = vand.u32 2147483647, %v2376_v56 }
0x381e   :  { %v2389_v26 = vor.u32 1.1754944e-38, %v2388_v18  ;;  %vm2387_vm4 = vcmp.eq.f32.partialorder %v2386_v33, 8.507059e+37 }
0x3822   :  { %v2818_v50 = vpop.eup %2817 }
0x3823   :  { %v2378_v52 = vmul.f32 %v2818_v50, %v2376_v56  ;;  %vm2383_vm14 = vweird.f32 %v2818_v50 }
0x3824   :  { %vm2384_vm1 = vmor %vm2382_vm0, %vm2383_vm14 }
0x3825   :  { %v2379_v32 = vsub.f32 1.0, %v2378_v52 }
0x3827   :  { %v2380_v16 = vmul.f32 %v2818_v50, %v2379_v32 }
0x3829   :  { %v2381_v57 = vadd.f32 %v2818_v50, %v2380_v16 }
0x382b   :  { %v2385_v49 = vsel %vm2384_vm1, %v2818_v50, %v2381_v57 }
0x382c   :  { %v2390_v28 = vsel %vm2387_vm4, %v2389_v26, %v2385_v49 }
0x382d   :  { %v2402_v3 = vsub.f32 1.0, %v2390_v28  ;;  %v2410_v25 = vmul.f32 %v2408_v17, %v2390_v28 }
0x3881   :  { %v2393_v27 = vpop.permute.xlu1 %2392 }
0x3882   :  { %v2395_v29 = vmul.f32 %v2393_v27, %v2390_v28 }
0x3884   :  { %2397 = vrot.lane.b32.xlu0 %v2395_v29, %s2886_s28 }
0x3889   :  { %v2414_v2 = vpop.permute.xlu1 %2413 }
0x388a   :  { %v2416_v60 = vmul.f32 %v2414_v2, %v3838_v20 }
0x388c   :  { %2418 = vrot.lane.b32.xlu1 %v2416_v60, %s2885_s1 }
0x38f6   :  { %v2398_v1 = vpop.permute.xlu0 %2397 }
0x38f7   :  { %v2400_v40 = vadd.f32 %v2398_v1, %v3301_v7 }
0x38f9   :  { %2819 = vtanh.f32 %v2400_v40 }
0x38fe   :  { %v2419_v24 = vpop.permute.xlu1 %2418 }
0x38ff   :  { %v2820_v9 = vpop.eup %2819 }
0x3900   :  { %2404 = vrot.lane.b32.xlu0 %v2820_v9, %s2888_s12 }
0x3972   :  { %v2405_v10 = vpop.permute.xlu0 %2404 }
0x3973   :  { %v2407_v11 = vmul.f32 %v2405_v10, %v2402_v3 }
0x3975   :  { %v2411_v12 = vadd.f32 %v2410_v25, %v2407_v11 }
0x3977   :  { %v2412_v59 = vmul.f32 %v2411_v12, %v3844_v34 }
0x3979   :  { %v2421_v13 = vadd.f32 %v2419_v24, %v2412_v59 }
0x397b   :  { %v2423_v41 = vrot.slane %v2421_v13, 4  ;;  %v2487_v0 = vrot.slane %v2421_v13, 6 }
0x397d   :  { %2424 = vrot.lane.b32.xlu2 %v2423_v41, %s2888_s12 }
0x3985   :  { %2492 = vrot.lane.b32.xlu2 %v2487_v0, %s2888_s12 }
0x39d7   :  { %v2425_v61 = vpop.permute.xlu2 %2424 }
0x39d8   :  { %2641 = vmatmul.msk.f32.vlgmr.msrb.gmra.mxu0 %vm128_vm2, %v2425_v61 }
0x39df   :  { %v2493_v54 = vpop.permute.xlu2 %2492 }
0x39e0   :  { %v2495_v37 = vmul.f32 %v2493_v54, %v3838_v20 }
0x3a55   :  { %v2445_v48 = vpop.f32.mrf.mxu0 }
0x3a56   :  { %v2446_v22 = vadd.f32 %v3791_v51, %v2445_v48 }
0x3a58   :  { %v2449_v5 = vrot.slane %v2446_v22, 2 }
0x3a5a   :  { %2471 = vrot.lane.b32.xlu0 %v2449_v5, %s2886_s28  ;;  %v2451_v23 = vadd.f32 %v2449_v5, %v3301_v7 }
0x3a5c   :  { %v2642_v6 = vmul.f32 -1.442695, %v2451_v23 }
0x3a5e   :  { %2821 = vpow2.f32 %v2642_v6 }
0x3a64   :  { %v2822_v4 = vpop.eup %2821 }
0x3a65   :  { %v2455_v15 = vadd.f32 1.0, %v2822_v4 }
0x3a67   :  { %2823 = vrcp.f32 %v2455_v15  ;;  %v2467_v46 = vand.u32 2147483648, %v2455_v15  ;;  %vm2461_vm5 = vweird.f32 %v2455_v15  ;;  %v2465_v14 = vand.u32 2147483647, %v2455_v15 }
0x3a69   :  { %v2468_v47 = vor.u32 1.1754944e-38, %v2467_v46  ;;  %vm2466_vm7 = vcmp.eq.f32.partialorder %v2465_v14, 8.507059e+37 }
0x3a6d   :  { %v2824_v30 = vpop.eup %2823 }
0x3a6e   :  { %v2457_v21 = vmul.f32 %v2824_v30, %v2455_v15  ;;  %vm2462_vm15 = vweird.f32 %v2824_v30 }
0x3a6f   :  { %vm2463_vm6 = vmor %vm2461_vm5, %vm2462_vm15 }
0x3a70   :  { %v2458_v19 = vsub.f32 1.0, %v2457_v21 }
0x3a72   :  { %v2459_v36 = vmul.f32 %v2824_v30, %v2458_v19 }
0x3a74   :  { %v2460_v31 = vadd.f32 %v2824_v30, %v2459_v36 }
0x3a76   :  { %v2464_v51 = vsel %vm2463_vm6, %v2824_v30, %v2460_v31 }
0x3a77   :  { %v2469_v58 = vsel %vm2466_vm7, %v2468_v47, %v2464_v51 }
0x3a78   :  { %v2481_v45 = vsub.f32 1.0, %v2469_v58  ;;  %v2489_v63 = vmul.f32 %v2487_v0, %v2469_v58 }
0x3acc   :  { %v2472_v62 = vpop.permute.xlu0 %2471 }
0x3acd   :  { %v2474_v35 = vmul.f32 %v2472_v62, %v2469_v58 }
0x3acf   :  { %2476 = vrot.lane.b32.xlu1 %v2474_v35, %s2886_s28 }
0x3ad7   :  { %2497 = vrot.lane.b32.xlu1 %v2495_v37, %s2885_s1  ;;  %s2558_s1 = sshll.u32 %s2889_s9, 4  ;;  %s2559_s1 = int_to_ptr.vmem [resolvable:$true] %s2558_s1 }
0x3b41   :  { %v2477_v38 = vpop.permute.xlu1 %2476 }
0x3b42   :  { %v2479_v39 = vadd.f32 %v2477_v38, %v3301_v7  ;;  %v2546_v7 = vpop.f32.mrf.mxu2 }
0x3b44   :  { %2825 = vtanh.f32 %v2479_v39 }
0x3b49   :  { %v2498_v8 = vpop.permute.xlu1 %2497 }
0x3b4a   :  { %v2826_v44 = vpop.eup %2825 }
0x3b4b   :  { %2483 = vrot.lane.b32.xlu0 %v2826_v44, %s2888_s12 }
0x3bbd   :  { %v2484_v43 = vpop.permute.xlu0 %2483 }
0x3bbe   :  { %v2486_v17 = vmul.f32 %v2484_v43, %v2481_v45 }
0x3bc0   :  { %v2490_v53 = vadd.f32 %v2489_v63, %v2486_v17 }
0x3bc2   :  { %v2491_v55 = vmul.f32 %v2490_v53, %v3844_v34 }
0x3bc4   :  { %v2500_v56 = vadd.f32 %v2498_v8, %v2491_v55 }
0x3bc6   :  { %v2502_v50 = vrot.slane %v2500_v56, 6 }
0x3bc8   :  { %2503 = vrot.lane.b32.xlu2 %v2502_v50, %s2888_s12 }
0x3c22   :  { %v2504_v20 = vpop.permute.xlu2 %2503 }
0x3c23   :  { %2643 = vmatmul.msk.f32.vlgmr.msrb.gmra.mxu1 %vm128_vm2, %v2504_v20 }
0x3ca0   :  { %v2524_v52 = vpop.f32.mrf.mxu1 }
0x3ca1   :  { %v2547_v32 = vadd.f32 %v2546_v7, %v2524_v52 }
0x3ca3   :  { %v2549_v16 = vadd.f32 %v2547_v32, %v3452_v42 }
0x3ca5   :  { %v2550_v34 = vmax.f32 %v2549_v16, 0.0 }
0x3ca7   :  { %2552 = vst.msk [vmem:[#allocation3] sm:$0x3] %vm2551_vm8, %v2550_v34 }
0x3ca8   :  { %2563 = dma.vmem_to_hbm [thread:$0]  %s2559_s1, 32, %s2561_s6, [#allocation4]  }
0x3ca9   :  { %2883 = dma.done.wait [#allocation4], 32  }
0x3caa   :  { %2884 = vsyncadd [#allocation4], 4294967264 }
0x3cab   :  { %2568 = vsyncpa [#allocation4], 1 }

</bundles_post_ra>
